<compile_context>
chip_gen: v7x
topology: tpu7x:2x2x1
jax: 0.10.0
libtpu: 0.0.40
codegen_flags: <defaults>
</compile_context>

<pallas_src>
import jax
import jax.numpy as jnp
from jax.experimental import pallas as pl
from jax.experimental.pallas import tpu as pltpu

D = 512                  # d  (feature / embedding dim)
K = 512                  # k  (attention hidden dim)
VMEM_LIMIT = 32 * 1024 * 1024


def _full_spec(shape):
    zeros = (0,) * len(shape)
    return pl.BlockSpec(shape, lambda *_: zeros)


# ----------------------------- fused AlternateCoAttention kernel -----------------------------

def _alt_coattn_kernel(q_ref, vt_ref,
                       wx1, bx1, whx1,
                       wx2, bx2, wg2, bg2, whx2,
                       wx3, bx3, wg3, bg3, whx3,
                       sb_ref,
                       xhat2_ref, xhat3_ref):
    B, T, d = q_ref.shape
    N = vt_ref.shape[1]
    k = wx1.shape[1]

    Q = q_ref[...]                                   # (B, T, d) f32
    Vt = vt_ref[...]                                 # (B, N, d) f32
    Qb = Q.reshape(B * T, d).astype(jnp.bfloat16)    # batch folded into M
    Vb = Vt.reshape(B * N, d).astype(jnp.bfloat16)

    def attend(pre3d, bias_scalar, whx_ref, X3):
        # pre3d: (B, L, k) f32 pre-activation; X3: (B, L, d) f32 attended context.
        Bq, L, kk = pre3d.shape
        H = jnp.tanh(pre3d)                          # f32, EUP
        # Linear(k, 1) head on the MXU: (B*L, k) @ (k, 1) -> (B, L, 1) logits.
        logits = jnp.dot(H.reshape(Bq * L, kk).astype(jnp.bfloat16), whx_ref[...],
                         preferred_element_type=jnp.float32).reshape(Bq, L, 1)
        logits = logits + bias_scalar                # scalar bias (cancels in softmax)
        # softmax over dim=1 (== torch.Softmax(dim=1) on (B, L, 1)), f32 throughout.
        m = jnp.max(logits, axis=1, keepdims=True)
        e = jnp.exp(logits - m)
        a = e / jnp.sum(e, axis=1, keepdims=True)    # (B, L, 1)
        return jnp.sum(a * X3, axis=1)               # (B, d) f32 weighted sum

    # ---- step 1: question self-attention -------------------------------------------------
    pre1 = (jnp.dot(Qb, wx1[...], preferred_element_type=jnp.float32)
            + bx1[...]).reshape(B, T, k)
    xh1 = attend(pre1, sb_ref[0], whx1, Q)           # (B, d)

    # ---- step 2: image attention gated by xh1 (gate matmul batched over B) ----------------
    g2 = (jnp.dot(xh1.astype(jnp.bfloat16), wg2[...],
                  preferred_element_type=jnp.float32) + bg2[...])            # (B, k)
    pre2 = (jnp.dot(Vb, wx2[...], preferred_element_type=jnp.float32)
            + bx2[...]).reshape(B, N, k) + g2[:, None, :]
    xh2 = attend(pre2, sb_ref[1], whx2, Vt)          # (B, d)  == x_hat_2

    # ---- step 3: question attention gated by xh2 ------------------------------------------
    g3 = (jnp.dot(xh2.astype(jnp.bfloat16), wg3[...],
                  preferred_element_type=jnp.float32) + bg3[...])            # (B, k)
    pre3 = (jnp.dot(Qb, wx3[...], preferred_element_type=jnp.float32)
            + bx3[...]).reshape(B, T, k) + g3[:, None, :]
    xh3 = attend(pre3, sb_ref[2], whx3, Q)           # (B, d)  == x_hat_3

    xhat2_ref[...] = xh2
    xhat3_ref[...] = xh3


def alternate_coattention(q_emb, images, params):
    """q_emb: (B, T, d) f32 embedded questions; images: (B, d, N) f32 (PyTorch layout)."""
    B, T, _ = q_emb.shape
    N = images.shape[2]
    images_t = jnp.transpose(images, (0, 2, 1))      # (B, N, d)

    weight_args = [params['W_x_1'], params['b_x_1'], params['w_hx_1'],
                   params['W_x_2'], params['b_x_2'], params['W_g_2'], params['b_g_2'],
                   params['w_hx_2'],
                   params['W_x_3'], params['b_x_3'], params['W_g_3'], params['b_g_3'],
                   params['w_hx_3']]
    scalar_biases = params['b_hx_scalars']           # (3,) f32 -> SMEM

    x_hat_2, x_hat_3 = pl.pallas_call(
        _alt_coattn_kernel,
        grid=(1,),
        in_specs=[_full_spec(q_emb.shape), _full_spec(images_t.shape)]
                 + [_full_spec(w.shape) for w in weight_args]
                 + [pl.BlockSpec(memory_space=pltpu.MemorySpace.SMEM)],
        out_specs=[_full_spec((B, D)), _full_spec((B, D))],
        out_shape=[jax.ShapeDtypeStruct((B, D), jnp.float32),
                   jax.ShapeDtypeStruct((B, D), jnp.float32)],
        compiler_params=pltpu.CompilerParams(
            dimension_semantics=("arbitrary",),
            vmem_limit_bytes=VMEM_LIMIT),
    )(q_emb, images_t, *weight_args, scalar_biases)
    return x_hat_2, x_hat_3


# ----------------------------- parameters & forward -----------------------------

def init_params(key, vocab_size):
    kiter = iter(jax.random.split(key, 64))
    nk = lambda: next(kiter)

    def linear(in_f, out_f):
        bound = float(1.0 / (in_f ** 0.5))
        W = jax.random.uniform(nk(), (in_f, out_f), jnp.float32, -bound, bound)
        b = jax.random.uniform(nk(), (1, out_f), jnp.float32, -bound, bound)
        return W.astype(jnp.bfloat16), b             # weights streamed as bf16

    def linear_to_scalar(in_f):
        bound = float(1.0 / (in_f ** 0.5))
        w = jax.random.uniform(nk(), (in_f, 1), jnp.float32, -bound, bound)
        b = jax.random.uniform(nk(), (), jnp.float32, -bound, bound)
        return w.astype(jnp.bfloat16), b

    emb = jax.random.normal(nk(), (vocab_size, D), jnp.float32) * 0.02

    W_x_1, b_x_1 = linear(D, K)
    W_g_1, b_g_1 = linear(D, K)       # exists in the torch module but unused in forward
    w_hx_1, b_hx_1 = linear_to_scalar(K)
    W_x_2, b_x_2 = linear(D, K)
    W_g_2, b_g_2 = linear(D, K)
    w_hx_2, b_hx_2 = linear_to_scalar(K)
    W_x_3, b_x_3 = linear(D, K)
    W_g_3, b_g_3 = linear(D, K)
    w_hx_3, b_hx_3 = linear_to_scalar(K)

    return dict(
        emb=emb,
        W_x_1=W_x_1, b_x_1=b_x_1, w_hx_1=w_hx_1,
        W_x_2=W_x_2, b_x_2=b_x_2, W_g_2=W_g_2, b_g_2=b_g_2, w_hx_2=w_hx_2,
        W_x_3=W_x_3, b_x_3=b_x_3, W_g_3=W_g_3, b_g_3=b_g_3, w_hx_3=w_hx_3,
        b_hx_scalars=jnp.stack([b_hx_1, b_hx_2, b_hx_3]).astype(jnp.float32),
        W_g_1=W_g_1, b_g_1=b_g_1,
    )


@jax.jit
def alternate_coattention_forward(params, questions, images):
    # questions: (B, T) int32 token ids; images: (B, d, N) float32
    q_emb = jnp.take(params['emb'], questions, axis=0)        # (B, T, d)
    x_hat_2, x_hat_3 = alternate_coattention(q_emb, images, params)
    return x_hat_2, x_hat_3


if __name__ == "__main__":
    key = jax.random.PRNGKey(0)
    kp, kq, ki = jax.random.split(key, 3)
    B, T, N, VOCAB = 2, 8, 16, 50
    params = init_params(kp, vocab_size=VOCAB)
    questions = jax.random.randint(kq, (B, T), 0, VOCAB, dtype=jnp.int32)
    images = jax.random.normal(ki, (B, D, N), jnp.float32)

    x_hat_2, x_hat_3 = alternate_coattention_forward(params, questions, images)
    jax.block_until_ready((x_hat_2, x_hat_3))
    assert x_hat_2.shape == (B, D) and x_hat_3.shape == (B, D)
    assert x_hat_2.dtype == jnp.float32 and x_hat_3.dtype == jnp.float32
    assert bool(jnp.all(jnp.isfinite(x_hat_2))) and bool(jnp.all(jnp.isfinite(x_hat_3)))
    print("KERNEL_OK")
</pallas_src>

<mosaic_0001>
module attributes {stable_mosaic.version = 11 : i64} {
  func.func @_alt_coattn_kernel(%arg0: i32, %arg1: memref<2x8x512xf32, #tpu.memory_space<vmem>>, %arg2: memref<2x16x512xf32, #tpu.memory_space<vmem>>, %arg3: memref<512x512xbf16, #tpu.memory_space<vmem>>, %arg4: memref<1x512xf32, #tpu.memory_space<vmem>>, %arg5: memref<512x1xbf16, #tpu.memory_space<vmem>>, %arg6: memref<512x512xbf16, #tpu.memory_space<vmem>>, %arg7: memref<1x512xf32, #tpu.memory_space<vmem>>, %arg8: memref<512x512xbf16, #tpu.memory_space<vmem>>, %arg9: memref<1x512xf32, #tpu.memory_space<vmem>>, %arg10: memref<512x1xbf16, #tpu.memory_space<vmem>>, %arg11: memref<512x512xbf16, #tpu.memory_space<vmem>>, %arg12: memref<1x512xf32, #tpu.memory_space<vmem>>, %arg13: memref<512x512xbf16, #tpu.memory_space<vmem>>, %arg14: memref<1x512xf32, #tpu.memory_space<vmem>>, %arg15: memref<512x1xbf16, #tpu.memory_space<vmem>>, %arg16: memref<3xf32, #tpu.memory_space<smem>>, %arg17: memref<2x512xf32, #tpu.memory_space<vmem>>, %arg18: memref<2x512xf32, #tpu.memory_space<vmem>>) attributes {dimension_semantics = [#tpu.dimension_semantics<arbitrary>], iteration_bounds = array<i64: 1>, scalar_prefetch = 0 : i64, scratch_operands = 0 : i64, tpu.core_type = #tpu.core_type<tc>, window_params = [{pipeline_mode = #tpu.pipeline_mode<synchronous>, transform_indices = @transform_0, window_bounds = array<i64: 2, 8, 512>}, {pipeline_mode = #tpu.pipeline_mode<synchronous>, transform_indices = @transform_1, window_bounds = array<i64: 2, 16, 512>}, {pipeline_mode = #tpu.pipeline_mode<synchronous>, transform_indices = @transform_2, window_bounds = array<i64: 512, 512>}, {pipeline_mode = #tpu.pipeline_mode<synchronous>, transform_indices = @transform_3, window_bounds = array<i64: 1, 512>}, {pipeline_mode = #tpu.pipeline_mode<synchronous>, transform_indices = @transform_4, window_bounds = array<i64: 512, 1>}, {pipeline_mode = #tpu.pipeline_mode<synchronous>, transform_indices = @transform_5, window_bounds = array<i64: 512, 512>}, {pipeline_mode = #tpu.pipeline_mode<synchronous>, transform_indices = @transform_6, window_bounds = array<i64: 1, 512>}, {pipeline_mode = #tpu.pipeline_mode<synchronous>, transform_indices = @transform_7, window_bounds = array<i64: 512, 512>}, {pipeline_mode = #tpu.pipeline_mode<synchronous>, transform_indices = @transform_8, window_bounds = array<i64: 1, 512>}, {pipeline_mode = #tpu.pipeline_mode<synchronous>, transform_indices = @transform_9, window_bounds = array<i64: 512, 1>}, {pipeline_mode = #tpu.pipeline_mode<synchronous>, transform_indices = @transform_10, window_bounds = array<i64: 512, 512>}, {pipeline_mode = #tpu.pipeline_mode<synchronous>, transform_indices = @transform_11, window_bounds = array<i64: 1, 512>}, {pipeline_mode = #tpu.pipeline_mode<synchronous>, transform_indices = @transform_12, window_bounds = array<i64: 512, 512>}, {pipeline_mode = #tpu.pipeline_mode<synchronous>, transform_indices = @transform_13, window_bounds = array<i64: 1, 512>}, {pipeline_mode = #tpu.pipeline_mode<synchronous>, transform_indices = @transform_14, window_bounds = array<i64: 512, 1>}, {transform_indices = @transform_15, window_bounds = array<i64: 3>}, {pipeline_mode = #tpu.pipeline_mode<synchronous>, transform_indices = @transform_16, window_bounds = array<i64: 2, 512>}, {pipeline_mode = #tpu.pipeline_mode<synchronous>, transform_indices = @transform_17, window_bounds = array<i64: 2, 512>}]} {
    %c0 = arith.constant 0 : index
    %c0_0 = arith.constant 0 : index
    %c0_1 = arith.constant 0 : index
    %0 = vector.load %arg1[%c0, %c0_0, %c0_1] : memref<2x8x512xf32, #tpu.memory_space<vmem>>, vector<2x8x512xf32>
    %c0_2 = arith.constant 0 : index
    %c0_3 = arith.constant 0 : index
    %c0_4 = arith.constant 0 : index
    %1 = vector.load %arg2[%c0_2, %c0_3, %c0_4] : memref<2x16x512xf32, #tpu.memory_space<vmem>>, vector<2x16x512xf32>
    %2 = vector.shape_cast %0 : vector<2x8x512xf32> to vector<16x512xf32>
    %3 = arith.truncf %2 : vector<16x512xf32> to vector<16x512xbf16>
    %4 = vector.shape_cast %1 : vector<2x16x512xf32> to vector<32x512xf32>
    %5 = arith.truncf %4 : vector<32x512xf32> to vector<32x512xbf16>
    %c0_5 = arith.constant 0 : index
    %c0_6 = arith.constant 0 : index
    %6 = vector.load %arg3[%c0_5, %c0_6] : memref<512x512xbf16, #tpu.memory_space<vmem>>, vector<512x512xbf16>
    %cst = arith.constant dense<0.000000e+00> : vector<16x512xf32>
    %7 = tpu.matmul %3, %6, %cst {dimension_numbers = #tpu.dot_dimension_numbers<[1], [0], [0], [1], [0, 0, 1, 1], [], []>} : vector<16x512xbf16>, vector<512x512xbf16>, vector<16x512xf32> -> vector<16x512xf32>
    %c0_7 = arith.constant 0 : index
    %c0_8 = arith.constant 0 : index
    %8 = vector.load %arg4[%c0_7, %c0_8] : memref<1x512xf32, #tpu.memory_space<vmem>>, vector<1x512xf32>
    %9 = vector.broadcast %8 : vector<1x512xf32> to vector<16x512xf32>
    %10 = arith.addf %7, %9 : vector<16x512xf32>
    %11 = vector.shape_cast %10 : vector<16x512xf32> to vector<2x8x512xf32>
    %c0_9 = arith.constant 0 : index
    %12 = memref.load %arg16[%c0_9] : memref<3xf32, #tpu.memory_space<smem>>
    %13 = math.tanh %11 : vector<2x8x512xf32>
    %14 = vector.shape_cast %13 : vector<2x8x512xf32> to vector<16x512xf32>
    %15 = arith.truncf %14 : vector<16x512xf32> to vector<16x512xbf16>
    %c0_10 = arith.constant 0 : index
    %c0_11 = arith.constant 0 : index
    %16 = vector.load %arg5[%c0_10, %c0_11] : memref<512x1xbf16, #tpu.memory_space<vmem>>, vector<512x1xbf16>
    %cst_12 = arith.constant dense<0.000000e+00> : vector<16x1xf32>
    %17 = tpu.matmul %15, %16, %cst_12 {dimension_numbers = #tpu.dot_dimension_numbers<[1], [0], [0], [1], [0, 0, 1, 1], [], []>} : vector<16x512xbf16>, vector<512x1xbf16>, vector<16x1xf32> -> vector<16x1xf32>
    %18 = vector.shape_cast %17 : vector<16x1xf32> to vector<2x8x1xf32>
    %19 = vector.broadcast %12 : f32 to vector<2x8x1xf32>
    %20 = arith.addf %18, %19 : vector<2x8x1xf32>
    %cst_13 = arith.constant dense<0xFF800000> : vector<2x1xf32>
    %21 = vector.multi_reduction <maximumf>, %20, %cst_13 [1] : vector<2x8x1xf32> to vector<2x1xf32>
    %22 = vector.shape_cast %21 : vector<2x1xf32> to vector<2x1x1xf32>
    %23 = vector.broadcast %22 : vector<2x1x1xf32> to vector<2x8x1xf32>
    %24 = arith.subf %20, %23 : vector<2x8x1xf32>
    %25 = math.exp %24 : vector<2x8x1xf32>
    %cst_14 = arith.constant dense<0.000000e+00> : vector<2x1xf32>
    %26 = vector.multi_reduction <add>, %25, %cst_14 [1] : vector<2x8x1xf32> to vector<2x1xf32>
    %27 = vector.shape_cast %26 : vector<2x1xf32> to vector<2x1x1xf32>
    %28 = vector.broadcast %27 : vector<2x1x1xf32> to vector<2x8x1xf32>
    %29 = arith.divf %25, %28 : vector<2x8x1xf32>
    %30 = vector.broadcast %29 : vector<2x8x1xf32> to vector<2x8x512xf32>
    %31 = arith.mulf %30, %0 : vector<2x8x512xf32>
    %cst_15 = arith.constant dense<0.000000e+00> : vector<2x512xf32>
    %32 = vector.multi_reduction <add>, %31, %cst_15 [1] : vector<2x8x512xf32> to vector<2x512xf32>
    %33 = arith.truncf %32 : vector<2x512xf32> to vector<2x512xbf16>
    %c0_16 = arith.constant 0 : index
    %c0_17 = arith.constant 0 : index
    %34 = vector.load %arg8[%c0_16, %c0_17] : memref<512x512xbf16, #tpu.memory_space<vmem>>, vector<512x512xbf16>
    %cst_18 = arith.constant dense<0.000000e+00> : vector<2x512xf32>
    %35 = tpu.matmul %33, %34, %cst_18 {dimension_numbers = #tpu.dot_dimension_numbers<[1], [0], [0], [1], [0, 0, 1, 1], [], []>} : vector<2x512xbf16>, vector<512x512xbf16>, vector<2x512xf32> -> vector<2x512xf32>
    %c0_19 = arith.constant 0 : index
    %c0_20 = arith.constant 0 : index
    %36 = vector.load %arg9[%c0_19, %c0_20] : memref<1x512xf32, #tpu.memory_space<vmem>>, vector<1x512xf32>
    %37 = vector.broadcast %36 : vector<1x512xf32> to vector<2x512xf32>
    %38 = arith.addf %35, %37 : vector<2x512xf32>
    %c0_21 = arith.constant 0 : index
    %c0_22 = arith.constant 0 : index
    %39 = vector.load %arg6[%c0_21, %c0_22] : memref<512x512xbf16, #tpu.memory_space<vmem>>, vector<512x512xbf16>
    %cst_23 = arith.constant dense<0.000000e+00> : vector<32x512xf32>
    %40 = tpu.matmul %5, %39, %cst_23 {dimension_numbers = #tpu.dot_dimension_numbers<[1], [0], [0], [1], [0, 0, 1, 1], [], []>} : vector<32x512xbf16>, vector<512x512xbf16>, vector<32x512xf32> -> vector<32x512xf32>
    %c0_24 = arith.constant 0 : index
    %c0_25 = arith.constant 0 : index
    %41 = vector.load %arg7[%c0_24, %c0_25] : memref<1x512xf32, #tpu.memory_space<vmem>>, vector<1x512xf32>
    %42 = vector.broadcast %41 : vector<1x512xf32> to vector<32x512xf32>
    %43 = arith.addf %40, %42 : vector<32x512xf32>
    %44 = vector.shape_cast %43 : vector<32x512xf32> to vector<2x16x512xf32>
    %45 = vector.shape_cast %38 : vector<2x512xf32> to vector<2x1x512xf32>
    %46 = vector.broadcast %45 : vector<2x1x512xf32> to vector<2x16x512xf32>
    %47 = arith.addf %44, %46 : vector<2x16x512xf32>
    %c1 = arith.constant 1 : index
    %48 = memref.load %arg16[%c1] : memref<3xf32, #tpu.memory_space<smem>>
    %49 = math.tanh %47 : vector<2x16x512xf32>
    %50 = vector.shape_cast %49 : vector<2x16x512xf32> to vector<32x512xf32>
    %51 = arith.truncf %50 : vector<32x512xf32> to vector<32x512xbf16>
    %c0_26 = arith.constant 0 : index
    %c0_27 = arith.constant 0 : index
    %52 = vector.load %arg10[%c0_26, %c0_27] : memref<512x1xbf16, #tpu.memory_space<vmem>>, vector<512x1xbf16>
    %cst_28 = arith.constant dense<0.000000e+00> : vector<32x1xf32>
    %53 = tpu.matmul %51, %52, %cst_28 {dimension_numbers = #tpu.dot_dimension_numbers<[1], [0], [0], [1], [0, 0, 1, 1], [], []>} : vector<32x512xbf16>, vector<512x1xbf16>, vector<32x1xf32> -> vector<32x1xf32>
    %54 = vector.shape_cast %53 : vector<32x1xf32> to vector<2x16x1xf32>
    %55 = vector.broadcast %48 : f32 to vector<2x16x1xf32>
    %56 = arith.addf %54, %55 : vector<2x16x1xf32>
    %cst_29 = arith.constant dense<0xFF800000> : vector<2x1xf32>
    %57 = vector.multi_reduction <maximumf>, %56, %cst_29 [1] : vector<2x16x1xf32> to vector<2x1xf32>
    %58 = vector.shape_cast %57 : vector<2x1xf32> to vector<2x1x1xf32>
    %59 = vector.broadcast %58 : vector<2x1x1xf32> to vector<2x16x1xf32>
    %60 = arith.subf %56, %59 : vector<2x16x1xf32>
    %61 = math.exp %60 : vector<2x16x1xf32>
    %cst_30 = arith.constant dense<0.000000e+00> : vector<2x1xf32>
    %62 = vector.multi_reduction <add>, %61, %cst_30 [1] : vector<2x16x1xf32> to vector<2x1xf32>
    %63 = vector.shape_cast %62 : vector<2x1xf32> to vector<2x1x1xf32>
    %64 = vector.broadcast %63 : vector<2x1x1xf32> to vector<2x16x1xf32>
    %65 = arith.divf %61, %64 : vector<2x16x1xf32>
    %66 = vector.broadcast %65 : vector<2x16x1xf32> to vector<2x16x512xf32>
    %67 = arith.mulf %66, %1 : vector<2x16x512xf32>
    %cst_31 = arith.constant dense<0.000000e+00> : vector<2x512xf32>
    %68 = vector.multi_reduction <add>, %67, %cst_31 [1] : vector<2x16x512xf32> to vector<2x512xf32>
    %69 = arith.truncf %68 : vector<2x512xf32> to vector<2x512xbf16>
    %c0_32 = arith.constant 0 : index
    %c0_33 = arith.constant 0 : index
    %70 = vector.load %arg13[%c0_32, %c0_33] : memref<512x512xbf16, #tpu.memory_space<vmem>>, vector<512x512xbf16>
    %cst_34 = arith.constant dense<0.000000e+00> : vector<2x512xf32>
    %71 = tpu.matmul %69, %70, %cst_34 {dimension_numbers = #tpu.dot_dimension_numbers<[1], [0], [0], [1], [0, 0, 1, 1], [], []>} : vector<2x512xbf16>, vector<512x512xbf16>, vector<2x512xf32> -> vector<2x512xf32>
    %c0_35 = arith.constant 0 : index
    %c0_36 = arith.constant 0 : index
    %72 = vector.load %arg14[%c0_35, %c0_36] : memref<1x512xf32, #tpu.memory_space<vmem>>, vector<1x512xf32>
    %73 = vector.broadcast %72 : vector<1x512xf32> to vector<2x512xf32>
    %74 = arith.addf %71, %73 : vector<2x512xf32>
    %c0_37 = arith.constant 0 : index
    %c0_38 = arith.constant 0 : index
    %75 = vector.load %arg11[%c0_37, %c0_38] : memref<512x512xbf16, #tpu.memory_space<vmem>>, vector<512x512xbf16>
    %cst_39 = arith.constant dense<0.000000e+00> : vector<16x512xf32>
    %76 = tpu.matmul %3, %75, %cst_39 {dimension_numbers = #tpu.dot_dimension_numbers<[1], [0], [0], [1], [0, 0, 1, 1], [], []>} : vector<16x512xbf16>, vector<512x512xbf16>, vector<16x512xf32> -> vector<16x512xf32>
    %c0_40 = arith.constant 0 : index
    %c0_41 = arith.constant 0 : index
    %77 = vector.load %arg12[%c0_40, %c0_41] : memref<1x512xf32, #tpu.memory_space<vmem>>, vector<1x512xf32>
    %78 = vector.broadcast %77 : vector<1x512xf32> to vector<16x512xf32>
    %79 = arith.addf %76, %78 : vector<16x512xf32>
    %80 = vector.shape_cast %79 : vector<16x512xf32> to vector<2x8x512xf32>
    %81 = vector.shape_cast %74 : vector<2x512xf32> to vector<2x1x512xf32>
    %82 = vector.broadcast %81 : vector<2x1x512xf32> to vector<2x8x512xf32>
    %83 = arith.addf %80, %82 : vector<2x8x512xf32>
    %c2 = arith.constant 2 : index
    %84 = memref.load %arg16[%c2] : memref<3xf32, #tpu.memory_space<smem>>
    %85 = math.tanh %83 : vector<2x8x512xf32>
    %86 = vector.shape_cast %85 : vector<2x8x512xf32> to vector<16x512xf32>
    %87 = arith.truncf %86 : vector<16x512xf32> to vector<16x512xbf16>
    %c0_42 = arith.constant 0 : index
    %c0_43 = arith.constant 0 : index
    %88 = vector.load %arg15[%c0_42, %c0_43] : memref<512x1xbf16, #tpu.memory_space<vmem>>, vector<512x1xbf16>
    %cst_44 = arith.constant dense<0.000000e+00> : vector<16x1xf32>
    %89 = tpu.matmul %87, %88, %cst_44 {dimension_numbers = #tpu.dot_dimension_numbers<[1], [0], [0], [1], [0, 0, 1, 1], [], []>} : vector<16x512xbf16>, vector<512x1xbf16>, vector<16x1xf32> -> vector<16x1xf32>
    %90 = vector.shape_cast %89 : vector<16x1xf32> to vector<2x8x1xf32>
    %91 = vector.broadcast %84 : f32 to vector<2x8x1xf32>
    %92 = arith.addf %90, %91 : vector<2x8x1xf32>
    %cst_45 = arith.constant dense<0xFF800000> : vector<2x1xf32>
    %93 = vector.multi_reduction <maximumf>, %92, %cst_45 [1] : vector<2x8x1xf32> to vector<2x1xf32>
    %94 = vector.shape_cast %93 : vector<2x1xf32> to vector<2x1x1xf32>
    %95 = vector.broadcast %94 : vector<2x1x1xf32> to vector<2x8x1xf32>
    %96 = arith.subf %92, %95 : vector<2x8x1xf32>
    %97 = math.exp %96 : vector<2x8x1xf32>
    %cst_46 = arith.constant dense<0.000000e+00> : vector<2x1xf32>
    %98 = vector.multi_reduction <add>, %97, %cst_46 [1] : vector<2x8x1xf32> to vector<2x1xf32>
    %99 = vector.shape_cast %98 : vector<2x1xf32> to vector<2x1x1xf32>
    %100 = vector.broadcast %99 : vector<2x1x1xf32> to vector<2x8x1xf32>
    %101 = arith.divf %97, %100 : vector<2x8x1xf32>
    %102 = vector.broadcast %101 : vector<2x8x1xf32> to vector<2x8x512xf32>
    %103 = arith.mulf %102, %0 : vector<2x8x512xf32>
    %cst_47 = arith.constant dense<0.000000e+00> : vector<2x512xf32>
    %104 = vector.multi_reduction <add>, %103, %cst_47 [1] : vector<2x8x512xf32> to vector<2x512xf32>
    %c0_48 = arith.constant 0 : index
    %c0_49 = arith.constant 0 : index
    %105 = vector.load %arg17[%c0_48, %c0_49] : memref<2x512xf32, #tpu.memory_space<vmem>>, vector<2x512xf32>
    tpu.vector_store %arg17[%c0_48, %c0_49], %68 {strides = array<i32>} : memref<2x512xf32, #tpu.memory_space<vmem>>, vector<2x512xf32>,
    %c0_50 = arith.constant 0 : index
    %c0_51 = arith.constant 0 : index
    %106 = vector.load %arg18[%c0_50, %c0_51] : memref<2x512xf32, #tpu.memory_space<vmem>>, vector<2x512xf32>
    tpu.vector_store %arg18[%c0_50, %c0_51], %104 {strides = array<i32>} : memref<2x512xf32, #tpu.memory_space<vmem>>, vector<2x512xf32>,
    return
  }
  func.func @transform_0(%arg0: i32) -> (i32, i32, i32) {
    %c0_i32 = arith.constant 0 : i32
    %c0_i32_0 = arith.constant 0 : i32
    %c0_i32_1 = arith.constant 0 : i32
    %c0_i32_2 = arith.constant 0 : i32
    return %c0_i32, %c0_i32_0, %c0_i32_1 : i32, i32, i32
  }
  func.func @transform_1(%arg0: i32) -> (i32, i32, i32) {
    %c0_i32 = arith.constant 0 : i32
    %c0_i32_0 = arith.constant 0 : i32
    %c0_i32_1 = arith.constant 0 : i32
    %c0_i32_2 = arith.constant 0 : i32
    return %c0_i32, %c0_i32_0, %c0_i32_1 : i32, i32, i32
  }
  func.func @transform_2(%arg0: i32) -> (i32, i32) {
    %c0_i32 = arith.constant 0 : i32
    %c0_i32_0 = arith.constant 0 : i32
    %c0_i32_1 = arith.constant 0 : i32
    return %c0_i32, %c0_i32_0 : i32, i32
  }
  func.func @transform_3(%arg0: i32) -> (i32, i32) {
    %c0_i32 = arith.constant 0 : i32
    %c0_i32_0 = arith.constant 0 : i32
    %c0_i32_1 = arith.constant 0 : i32
    return %c0_i32, %c0_i32_0 : i32, i32
  }
  func.func @transform_4(%arg0: i32) -> (i32, i32) {
    %c0_i32 = arith.constant 0 : i32
    %c0_i32_0 = arith.constant 0 : i32
    %c0_i32_1 = arith.constant 0 : i32
    return %c0_i32, %c0_i32_0 : i32, i32
  }
  func.func @transform_5(%arg0: i32) -> (i32, i32) {
    %c0_i32 = arith.constant 0 : i32
    %c0_i32_0 = arith.constant 0 : i32
    %c0_i32_1 = arith.constant 0 : i32
    return %c0_i32, %c0_i32_0 : i32, i32
  }
  func.func @transform_6(%arg0: i32) -> (i32, i32) {
    %c0_i32 = arith.constant 0 : i32
    %c0_i32_0 = arith.constant 0 : i32
    %c0_i32_1 = arith.constant 0 : i32
    return %c0_i32, %c0_i32_0 : i32, i32
  }
  func.func @transform_7(%arg0: i32) -> (i32, i32) {
    %c0_i32 = arith.constant 0 : i32
    %c0_i32_0 = arith.constant 0 : i32
    %c0_i32_1 = arith.constant 0 : i32
    return %c0_i32, %c0_i32_0 : i32, i32
  }
  func.func @transform_8(%arg0: i32) -> (i32, i32) {
    %c0_i32 = arith.constant 0 : i32
    %c0_i32_0 = arith.constant 0 : i32
    %c0_i32_1 = arith.constant 0 : i32
    return %c0_i32, %c0_i32_0 : i32, i32
  }
  func.func @transform_9(%arg0: i32) -> (i32, i32) {
    %c0_i32 = arith.constant 0 : i32
    %c0_i32_0 = arith.constant 0 : i32
    %c0_i32_1 = arith.constant 0 : i32
    return %c0_i32, %c0_i32_0 : i32, i32
  }
  func.func @transform_10(%arg0: i32) -> (i32, i32) {
    %c0_i32 = arith.constant 0 : i32
    %c0_i32_0 = arith.constant 0 : i32
    %c0_i32_1 = arith.constant 0 : i32
    return %c0_i32, %c0_i32_0 : i32, i32
  }
  func.func @transform_11(%arg0: i32) -> (i32, i32) {
    %c0_i32 = arith.constant 0 : i32
    %c0_i32_0 = arith.constant 0 : i32
    %c0_i32_1 = arith.constant 0 : i32
    return %c0_i32, %c0_i32_0 : i32, i32
  }
  func.func @transform_12(%arg0: i32) -> (i32, i32) {
    %c0_i32 = arith.constant 0 : i32
    %c0_i32_0 = arith.constant 0 : i32
    %c0_i32_1 = arith.constant 0 : i32
    return %c0_i32, %c0_i32_0 : i32, i32
  }
  func.func @transform_13(%arg0: i32) -> (i32, i32) {
    %c0_i32 = arith.constant 0 : i32
    %c0_i32_0 = arith.constant 0 : i32
    %c0_i32_1 = arith.constant 0 : i32
    return %c0_i32, %c0_i32_0 : i32, i32
  }
  func.func @transform_14(%arg0: i32) -> (i32, i32) {
    %c0_i32 = arith.constant 0 : i32
    %c0_i32_0 = arith.constant 0 : i32
    %c0_i32_1 = arith.constant 0 : i32
    return %c0_i32, %c0_i32_0 : i32, i32
  }
  func.func @transform_15(%arg0: i32) -> i32 {
    %c0_i32 = arith.constant 0 : i32
    %c0_i32_0 = arith.constant 0 : i32
    return %c0_i32 : i32
  }
  func.func @transform_16(%arg0: i32) -> (i32, i32) {
    %c0_i32 = arith.constant 0 : i32
    %c0_i32_0 = arith.constant 0 : i32
    %c0_i32_1 = arith.constant 0 : i32
    return %c0_i32, %c0_i32_0 : i32, i32
  }
  func.func @transform_17(%arg0: i32) -> (i32, i32) {
    %c0_i32 = arith.constant 0 : i32
    %c0_i32_0 = arith.constant 0 : i32
    %c0_i32_1 = arith.constant 0 : i32
    return %c0_i32, %c0_i32_0 : i32, i32
  }
}

</mosaic_0001>

<bundles_post_ra>
// kernel: alternate_coattention_forward.1
= control target key start
LH: loop header
LB: loop body
LE: loop exit
PB: predicated region body
PF: predicated region fallthrough
CT: control target
= control target key end

     0   :  { %s10371_s0 = inlined_call_operand.vmem [shape: f32[2,8,512], index: 0, kind: input, shape index: {}]   ;;  %s10372_s1 = inlined_call_operand.vmem [shape: f32[2,16,512], index: 1, kind: input, shape index: {}]   ;;  %s10373_s2 = inlined_call_operand.vmem [shape: bf16[512,512], index: 2, kind: input, shape index: {}]   ;;  %s10374_s3 = inlined_call_operand.vmem [shape: f32[1,512], index: 3, kind: input, shape index: {}]   ;;  %s10375_s4 = inlined_call_operand.vmem [shape: bf16[512,1], index: 4, kind: input, shape index: {}]   ;;  %s10376_s5 = inlined_call_operand.hbm [shape: bf16[512,512], index: 5, kind: input, shape index: {}]   ;;  %s10377_s6 = inlined_call_operand.vmem [shape: f32[1,512], index: 6, kind: input, shape index: {}]   ;;  %s10378_s7 = inlined_call_operand.hbm [shape: bf16[512,512], index: 7, kind: input, shape index: {}]   ;;  %s10379_s8 = inlined_call_operand.vmem [shape: f32[1,512], index: 8, kind: input, shape index: {}]   ;;  %s10380_s9 = inlined_call_operand.vmem [shape: bf16[512,1], index: 9, kind: input, shape index: {}]   ;;  %s10381_s10 = inlined_call_operand.hbm [shape: bf16[512,512], index: 10, kind: input, shape index: {}]   ;;  %s10382_s11 = inlined_call_operand.vmem [shape: f32[1,512], index: 11, kind: input, shape index: {}]   ;;  %s10383_s12 = inlined_call_operand.hbm [shape: bf16[512,512], index: 12, kind: input, shape index: {}]   ;;  %s10384_s13 = inlined_call_operand.vmem [shape: f32[1,512], index: 13, kind: input, shape index: {}]   ;;  %s10385_s14 = inlined_call_operand.vmem [shape: bf16[512,1], index: 14, kind: input, shape index: {}]   ;;  %s10386_s15 = inlined_call_operand.vmem [shape: f32[3], index: 15, kind: input, shape index: {}]   ;;  %s10387_s16 = inlined_call_operand.hbm [shape: f32[2,512], index: 16, kind: output, shape index: {0}]   ;;  %s10388_s17 = inlined_call_operand.hbm [shape: f32[2,512], index: 17, kind: output, shape index: {1}]  }
   0x1   :  { %10391 = sst [smem:[#allocation21_spill]] %s10371_s0 }
   0x2   :  { %10392 = sst [smem:[#allocation22_spill]] %s10372_s1 }
   0x3   :  { %23 = vsyncpa [#allocation3], 0 }
   0x4   :  { %24 = vsyncpa [#allocation7], 0 }
   0x5   :  { %25 = vsyncpa [#allocation10], 0 }
   0x6   :  { %26 = vsyncpa [#allocation5], 0 }
   0x7   :  { %27 = vsyncpa [#allocation4], 0 }
   0x8   :  { %28 = vsyncpa [#allocation14], 0  ;;  %s9145_s24 = smov [#allocation6]   ;;  %s9146_s26 = smov [#allocation2]  }
   0x9   :  { %s58_s25 = sshll.u32 %s9145_s24, 4  ;;  %s44_s27 = sshll.u32 %s9146_s26, 4  ;;  %s59_s25 = int_to_ptr.vmem [resolvable:$true] %s58_s25  ;;  %s9247_s27 = int_to_ptr.vmem [resolvable:$true] %s44_s27 }
   0xa   :  { %s8989_s0 = scalar_lea.hbm %s10378_s7, 16384 }
   0xb   :  { %p8990_p0 = scmp.ne.s32.totalorder %s10378_s7, %s8989_s0  ;;  %p8993_p1 = scmp.lt.u32.totalorder %s8989_s0, %s10378_s7 }
   0xd   :  { %p8995_p2 = pnand %p8993_p1, %p8990_p0 }
   0xf   :  { %8998 = shalt.err (!%p8995_p2)
}
  0x10   :  { %s8999_s20 = scalar_lea.vmem %s59_s25, 16384  ;;  %p9004_p4 = scmp.lt.s32.totalorder %s59_s25, %s59_s25 }
  0x11   :  { %p9000_p3 = scmp.ne.s32.totalorder %s59_s25, %s8999_s20  ;;  %p9005_p5 = scmp.lt.s32.totalorder %s8999_s20, %s8999_s20 }
  0x13   :  { %p9006_p6 = por %p9005_p5, %p9004_p4 }
  0x15   :  { %p9007_p7 = pnand %p9006_p6, %p9000_p3 }
  0x17   :  { %9010 = shalt.err (!%p9007_p7)
}
  0x18   :  { %s9147_s21 = smov 256   ;;  %s9148_s22 = smov 16  }
  0x19   :  { %64 = dma.hbm_to_vmem [thread:$0]  %s10378_s7, 16384, %s59_s25, [#allocation7], %s9147_s21, %s9147_s21, %s9148_s22  }
  0x1a   :  { %s9011_s29 = scalar_lea.hbm %s10376_s5, 16384 }
  0x1b   :  { %p9012_p8 = scmp.ne.s32.totalorder %s10376_s5, %s9011_s29  ;;  %p9015_p9 = scmp.lt.u32.totalorder %s9011_s29, %s10376_s5 }
  0x1d   :  { %p9017_p10 = pnand %p9015_p9, %p9012_p8 }
  0x1f   :  { %9020 = shalt.err (!%p9017_p10)
}
  0x20   :  { %s9021_s1 = scalar_lea.vmem %s9247_s27, 16384  ;;  %p9026_p12 = scmp.lt.s32.totalorder %s9247_s27, %s9247_s27 }
  0x21   :  { %p9022_p11 = scmp.ne.s32.totalorder %s9247_s27, %s9021_s1  ;;  %p9027_p13 = scmp.lt.s32.totalorder %s9021_s1, %s9021_s1 }
  0x23   :  { %p9028_p0 = por %p9027_p13, %p9026_p12 }
  0x25   :  { %p9029_p1 = pnand %p9028_p0, %p9022_p11 }
  0x27   :  { %9032 = shalt.err (!%p9029_p1)
}
  0x28   :  { %50 = dma.hbm_to_vmem [thread:$0]  %s10376_s5, 16384, %s9247_s27, [#allocation3], %s9147_s21, %s9147_s21, %s9148_s22  }
  0x29   :  { %s9149_s20 = smov [#allocation8]   ;;  %s9150_s24 = smov [#allocation9]  }
  0x2a   :  { %s74_s23 = sshll.u32 %s9149_s20, 4  ;;  %s88_s26 = sshll.u32 %s9150_s24, 4  ;;  %s75_s23 = int_to_ptr.vmem [resolvable:$true] %s74_s23  ;;  %s9284_s26 = int_to_ptr.vmem [resolvable:$true] %s88_s26 }
  0x2b   :  { %s9033_s0 = scalar_lea.hbm %s10381_s10, 16384 }
  0x2c   :  { %p9034_p2 = scmp.ne.s32.totalorder %s10381_s10, %s9033_s0  ;;  %p9037_p3 = scmp.lt.u32.totalorder %s9033_s0, %s10381_s10 }
  0x2e   :  { %p9039_p4 = pnand %p9037_p3, %p9034_p2 }
  0x30   :  { %9042 = shalt.err (!%p9039_p4)
}
  0x31   :  { %s9043_s5 = scalar_lea.vmem %s75_s23, 16384  ;;  %p9048_p6 = scmp.lt.s32.totalorder %s75_s23, %s75_s23 }
  0x32   :  { %p9044_p5 = scmp.ne.s32.totalorder %s75_s23, %s9043_s5  ;;  %p9049_p7 = scmp.lt.s32.totalorder %s9043_s5, %s9043_s5 }
  0x34   :  { %p9050_p8 = por %p9049_p7, %p9048_p6 }
  0x36   :  { %p9051_p9 = pnand %p9050_p8, %p9044_p5 }
  0x38   :  { %9054 = shalt.err (!%p9051_p9)
}
  0x39   :  { %80 = dma.hbm_to_vmem [thread:$0]  %s10381_s10, 16384, %s75_s23, [#allocation7], %s9147_s21, %s9147_s21, %s9148_s22  }
  0x3a   :  { %s9055_s24 = scalar_lea.hbm %s10383_s12, 16384 }
  0x3b   :  { %p9056_p10 = scmp.ne.s32.totalorder %s10383_s12, %s9055_s24  ;;  %p9059_p11 = scmp.lt.u32.totalorder %s9055_s24, %s10383_s12 }
  0x3d   :  { %p9061_p12 = pnand %p9059_p11, %p9056_p10 }
  0x3f   :  { %9064 = shalt.err (!%p9061_p12)
}
  0x40   :  { %s9065_s18 = scalar_lea.vmem %s9284_s26, 16384  ;;  %p9070_p0 = scmp.lt.s32.totalorder %s9284_s26, %s9284_s26 }
  0x41   :  { %p9066_p13 = scmp.ne.s32.totalorder %s9284_s26, %s9065_s18  ;;  %p9071_p1 = scmp.lt.s32.totalorder %s9065_s18, %s9065_s18 }
  0x43   :  { %p9072_p2 = por %p9071_p1, %p9070_p0 }
  0x45   :  { %p9073_p3 = pnand %p9072_p2, %p9066_p13 }
  0x47   :  { %9076 = shalt.err (!%p9073_p3)
}
  0x48   :  { %94 = dma.hbm_to_vmem [thread:$0]  %s10383_s12, 16384, %s9284_s26, [#allocation10], %s9147_s21, %s9147_s21, %s9148_s22  }
  0x49   :  { %s105_s5 = sshll.u32 %s10386_s15, 4  ;;  %s106_s5 = int_to_ptr.vmem [resolvable:$true] %s105_s5 }
  0x4a   :  { %s9077_s27 = scalar_lea.vmem %s106_s5, 16  ;;  %p9082_p5 = scmp.lt.s32.totalorder %s106_s5, %s106_s5 }
  0x4b   :  { %p9078_p4 = scmp.ne.s32.totalorder %s106_s5, %s9077_s27  ;;  %p9083_p6 = scmp.lt.s32.totalorder %s9077_s27, %s9077_s27 }
  0x4d   :  { %p9084_p7 = por %p9083_p6, %p9082_p5 }
  0x4f   :  { %p9085_p8 = pnand %p9084_p7, %p9078_p4 }
  0x51   :  { %9088 = shalt.err (!%p9085_p8)
}
  0x52   :  { %s9151_s7 = smov [#allocation11]  }
  0x53   :  { %108 = dma.vmem_to_smem %s106_s5, 16, %s9151_s7, [#allocation5]  }
  0x54   :  { %9133 = dma.done.wait [#allocation3], 16384  }
  0x55   :  { %9134 = vsyncadd [#allocation3], 4294950912 }
  0x56   :  { %9135 = dma.done.wait [#allocation7], 32768  }
  0x57   :  { %9136 = vsyncadd [#allocation7], 4294934528 }
  0x58   :  { %9137 = dma.done.wait [#allocation10], 16384  }
  0x59   :  { %9138 = vsyncadd [#allocation10], 4294950912 }
  0x5a   :  { %9139 = dma.done.wait [#allocation5], 16  }
  0x5b   :  { %9140 = vsyncadd [#allocation5], 4294967280 }
  0x5c   :  { %124 = sfence }
  0x5d   :  { %v7815_v0 = vld [vmem:[%s10373_s2 + $0x4] ss:$16 sps:$4 sm:$0xff]   ;;  %v7817_v1 = vld [vmem:[%s10373_s2 + $0xc] ss:$16 sps:$4 sm:$0xff]   ;;  %v7819_v2 = vld [vmem:[%s10373_s2] ss:$16 sps:$4 sm:$0xff]  }
  0x5e   :  { %952 = vmatprep.subr.bf16.mxu0 %v7815_v0  ;;  %v7820_v3 = vld [vmem:[%s10373_s2 + $0x8] ss:$16 sps:$4 sm:$0xff]   ;;  %1038 = vmatprep.subr.bf16.mxu1 %v7817_v1  ;;  %v7821_v4 = vld [vmem:[%s10373_s2 + $0x24] ss:$16 sps:$4 sm:$0xff]   ;;  %v7823_v5 = vld [vmem:[%s10373_s2 + $0x2c] ss:$16 sps:$4 sm:$0xff]  }
  0x5f   :  { %953 = vmatpush1.bf16.msra.mxu0 %v7819_v2  ;;  %1039 = vmatpush1.bf16.msra.mxu1 %v7820_v3  ;;  %v7825_v6 = vld [vmem:[%s10373_s2 + $0x20] ss:$16 sps:$4 sm:$0xff]   ;;  %v7826_v7 = vld [vmem:[%s10373_s2 + $0x28] ss:$16 sps:$4 sm:$0xff]   ;;  %v7827_v8 = vld [vmem:[%s10373_s2 + $0x44] ss:$16 sps:$4 sm:$0xff]  }
  0x60   :  { %954 = vmatprep.subr.bf16.mxu0 %v7821_v4  ;;  %1040 = vmatprep.subr.bf16.mxu1 %v7823_v5  ;;  %v7829_v9 = vld [vmem:[%s10373_s2 + $0x4c] ss:$16 sps:$4 sm:$0xff]   ;;  %v7831_v10 = vld [vmem:[%s10373_s2 + $0x40] ss:$16 sps:$4 sm:$0xff]   ;;  %v7832_v11 = vld [vmem:[%s10373_s2 + $0x48] ss:$16 sps:$4 sm:$0xff]  }
  0x61   :  { %v7833_v12 = vld [vmem:[%s10373_s2 + $0x64] ss:$16 sps:$4 sm:$0xff]   ;;  %v7835_v13 = vld [vmem:[%s10373_s2 + $0x6c] ss:$16 sps:$4 sm:$0xff]   ;;  %v7837_v14 = vld [vmem:[%s10373_s2 + $0x60] ss:$16 sps:$4 sm:$0xff]  }
  0x62   :  { %v7838_v15 = vld [vmem:[%s10373_s2 + $0x68] ss:$16 sps:$4 sm:$0xff]   ;;  %v7839_v16 = vld [vmem:[%s10373_s2 + $0x84] ss:$16 sps:$4 sm:$0xff]   ;;  %v7841_v17 = vld [vmem:[%s10373_s2 + $0x8c] ss:$16 sps:$4 sm:$0xff]  }
  0x63   :  { %955 = vmatpush1.bf16.msra.mxu0 %v7825_v6  ;;  %1041 = vmatpush1.bf16.msra.mxu1 %v7826_v7  ;;  %v7843_v18 = vld [vmem:[%s10373_s2 + $0x80] ss:$16 sps:$4 sm:$0xff]   ;;  %v7844_v19 = vld [vmem:[%s10373_s2 + $0x88] ss:$16 sps:$4 sm:$0xff]   ;;  %v7845_v20 = vld [vmem:[%s10373_s2 + $0xa4] ss:$16 sps:$4 sm:$0xff]  }
  0x64   :  { %956 = vmatprep.subr.bf16.mxu0 %v7827_v8  ;;  %1042 = vmatprep.subr.bf16.mxu1 %v7829_v9  ;;  %v7847_v21 = vld [vmem:[%s10373_s2 + $0xac] ss:$16 sps:$4 sm:$0xff]   ;;  %v7849_v22 = vld [vmem:[%s10373_s2 + $0xa0] ss:$16 sps:$4 sm:$0xff]   ;;  %v7850_v23 = vld [vmem:[%s10373_s2 + $0xa8] ss:$16 sps:$4 sm:$0xff]  }
  0x65   :  { %v7851_v24 = vld [vmem:[%s10373_s2 + $0xc4] ss:$16 sps:$4 sm:$0xff]   ;;  %v7853_v25 = vld [vmem:[%s10373_s2 + $0xcc] ss:$16 sps:$4 sm:$0xff]   ;;  %v7855_v26 = vld [vmem:[%s10373_s2 + $0xc0] ss:$16 sps:$4 sm:$0xff]  }
  0x66   :  { %v7856_v27 = vld [vmem:[%s10373_s2 + $0xc8] ss:$16 sps:$4 sm:$0xff]   ;;  %v7857_v28 = vld [vmem:[%s10373_s2 + $0xe4] ss:$16 sps:$4 sm:$0xff]   ;;  %v7859_v29 = vld [vmem:[%s10373_s2 + $0xec] ss:$16 sps:$4 sm:$0xff]  }
  0x67   :  { %957 = vmatpush1.bf16.msra.mxu0 %v7831_v10  ;;  %1043 = vmatpush1.bf16.msra.mxu1 %v7832_v11  ;;  %v7861_v30 = vld [vmem:[%s10373_s2 + $0xe0] ss:$16 sps:$4 sm:$0xff]   ;;  %v7862_v31 = vld [vmem:[%s10373_s2 + $0xe8] ss:$16 sps:$4 sm:$0xff]   ;;  %v7863_v32 = vld [vmem:[%s10373_s2 + $0x104] ss:$16 sps:$4 sm:$0xff]  }
  0x68   :  { %958 = vmatprep.subr.bf16.mxu0 %v7833_v12  ;;  %1044 = vmatprep.subr.bf16.mxu1 %v7835_v13  ;;  %v7865_v33 = vld [vmem:[%s10373_s2 + $0x10c] ss:$16 sps:$4 sm:$0xff]   ;;  %v7867_v34 = vld [vmem:[%s10373_s2 + $0x100] ss:$16 sps:$4 sm:$0xff]   ;;  %v7868_v35 = vld [vmem:[%s10373_s2 + $0x108] ss:$16 sps:$4 sm:$0xff]  }
  0x69   :  { %v7869_v36 = vld [vmem:[%s10373_s2 + $0x124] ss:$16 sps:$4 sm:$0xff]   ;;  %v7871_v37 = vld [vmem:[%s10373_s2 + $0x12c] ss:$16 sps:$4 sm:$0xff]   ;;  %v7873_v38 = vld [vmem:[%s10373_s2 + $0x120] ss:$16 sps:$4 sm:$0xff]  }
  0x6a   :  { %v7874_v39 = vld [vmem:[%s10373_s2 + $0x128] ss:$16 sps:$4 sm:$0xff]   ;;  %v7875_v40 = vld [vmem:[%s10373_s2 + $0x144] ss:$16 sps:$4 sm:$0xff]   ;;  %v7877_v41 = vld [vmem:[%s10373_s2 + $0x14c] ss:$16 sps:$4 sm:$0xff]  }
  0x6b   :  { %959 = vmatpush1.bf16.msra.mxu0 %v7837_v14  ;;  %1045 = vmatpush1.bf16.msra.mxu1 %v7838_v15  ;;  %v7879_v42 = vld [vmem:[%s10373_s2 + $0x140] ss:$16 sps:$4 sm:$0xff]   ;;  %v7880_v43 = vld [vmem:[%s10373_s2 + $0x148] ss:$16 sps:$4 sm:$0xff]   ;;  %v7881_v44 = vld [vmem:[%s10373_s2 + $0x164] ss:$16 sps:$4 sm:$0xff]  }
  0x6c   :  { %960 = vmatprep.subr.bf16.mxu0 %v7839_v16  ;;  %1046 = vmatprep.subr.bf16.mxu1 %v7841_v17  ;;  %v7883_v45 = vld [vmem:[%s10373_s2 + $0x16c] ss:$16 sps:$4 sm:$0xff]   ;;  %s10393_s23 = sld [smem:[#allocation21_spill]]  ;;  %v7885_v48 = vld [vmem:[%s10373_s2 + $0x160] ss:$16 sps:$4 sm:$0xff]   ;;  %vm1478_vm0 = vcmask 7168  }
  0x6d   :  { %v7886_v49 = vld [vmem:[%s10373_s2 + $0x168] ss:$16 sps:$4 sm:$0xff]   ;;  %v7887_v51 = vld [vmem:[%s10373_s2 + $0x184] ss:$16 sps:$4 sm:$0xff]   ;;  %v7889_v52 = vld [vmem:[%s10373_s2 + $0x18c] ss:$16 sps:$4 sm:$0xff]  }
  0x6e   :  { %v7891_v53 = vld [vmem:[%s10373_s2 + $0x180] ss:$16 sps:$4 sm:$0xff]   ;;  %v7892_v54 = vld [vmem:[%s10373_s2 + $0x188] ss:$16 sps:$4 sm:$0xff]   ;;  %v7893_v55 = vld [vmem:[%s10373_s2 + $0x1a4] ss:$16 sps:$4 sm:$0xff]  }
  0x6f   :  { %961 = vmatpush1.bf16.msra.mxu0 %v7843_v18  ;;  %1047 = vmatpush1.bf16.msra.mxu1 %v7844_v19  ;;  %v7895_v56 = vld [vmem:[%s10373_s2 + $0x1ac] ss:$16 sps:$4 sm:$0xff]   ;;  %v7897_v57 = vld [vmem:[%s10373_s2 + $0x1a0] ss:$16 sps:$4 sm:$0xff]   ;;  %v7898_v58 = vld [vmem:[%s10373_s2 + $0x1a8] ss:$16 sps:$4 sm:$0xff]  }
  0x70   :  { %962 = vmatprep.subr.bf16.mxu0 %v7845_v20  ;;  %1048 = vmatprep.subr.bf16.mxu1 %v7847_v21  ;;  %v7899_v59 = vld [vmem:[%s10373_s2 + $0x1c4] ss:$16 sps:$4 sm:$0xff]   ;;  %v7901_v60 = vld [vmem:[%s10373_s2 + $0x1cc] ss:$16 sps:$4 sm:$0xff]   ;;  %v7903_v61 = vld [vmem:[%s10373_s2 + $0x1c0] ss:$16 sps:$4 sm:$0xff]  }
  0x71   :  { %v7904_v62 = vld [vmem:[%s10373_s2 + $0x1c8] ss:$16 sps:$4 sm:$0xff]   ;;  %v7905_v63 = vld [vmem:[%s10373_s2 + $0x1e4] ss:$16 sps:$4 sm:$0xff]   ;;  %v7907_v0 = vld [vmem:[%s10373_s2 + $0x1ec] ss:$16 sps:$4 sm:$0xff]  }
  0x72   :  { %v127_v46 = vld [vmem:[%s10393_s23 + $0x8] sm:$0xff]  ;;  %v7909_v1 = vld [vmem:[%s10373_s2 + $0x1e0] ss:$16 sps:$4 sm:$0xff]   ;;  %v7913_v3 = vld [vmem:[%s10373_s2 + $0x204] ss:$16 sps:$4 sm:$0xff]   ;;  %vm1757_vm1 = vcmask 1041409  }
  0x73   :  { %963 = vmatpush1.bf16.msra.mxu0 %v7849_v22  ;;  %1049 = vmatpush1.bf16.msra.mxu1 %v7850_v23  ;;  %v131_v47 = vld [vmem:[%s10393_s23 + $0x28] sm:$0xff]  ;;  %v126_v4 = vld [vmem:[%s10393_s23] sm:$0xff]  ;;  %s10394_s25 = sld [smem:[#allocation22_spill]]  ;;  %vm6740_vm2 = vcmask 1043459   ;;  %vm6742_vm3 = vcmask 1045509   ;;  %vm6744_vm4 = vcmask 1047559  }
  0x74   :  { %964 = vmatprep.subr.bf16.mxu0 %v7851_v24  ;;  %1050 = vmatprep.subr.bf16.mxu1 %v7853_v25  ;;  %v9474_v50 = vpack.c.bf16 %v131_v47, %v127_v46  ;;  %v7910_v2 = vld [vmem:[%s10373_s2 + $0x1e8] ss:$16 sps:$4 sm:$0xff]   ;;  %v130_v5 = vld [vmem:[%s10393_s23 + $0x20] sm:$0xff]  ;;  %v7916_v6 = vld [vmem:[%s10373_s2 + $0x20c] ss:$16 sps:$4 sm:$0xff]  }
  0x75   :  { %v7911_v7 = vld [vmem:[%s10373_s2 + $0x200] ss:$16 sps:$4 sm:$0xff]   ;;  %v7914_v8 = vld [vmem:[%s10373_s2 + $0x208] ss:$16 sps:$4 sm:$0xff]   ;;  %v9544_v9 = vpack.c.bf16 %v130_v5, %v126_v4  ;;  %v7919_v10 = vld [vmem:[%s10373_s2 + $0x224] ss:$16 sps:$4 sm:$0xff]  }
  0x76   :  { %984 = vmatprep.mubr.bf16.mxu0 %v9474_v50  ;;  %1070 = vmatprep.mubr.bf16.mxu1 %v9474_v50  ;;  %v7922_v11 = vld [vmem:[%s10373_s2 + $0x22c] ss:$16 sps:$4 sm:$0xff]   ;;  %v7917_v12 = vld [vmem:[%s10373_s2 + $0x220] ss:$16 sps:$4 sm:$0xff]   ;;  %v7920_v13 = vld [vmem:[%s10373_s2 + $0x228] ss:$16 sps:$4 sm:$0xff]  }
  0x77   :  { %965 = vmatpush1.bf16.msra.mxu0 %v7855_v26  ;;  %1051 = vmatpush1.bf16.msra.mxu1 %v7856_v27  ;;  %v7925_v14 = vld [vmem:[%s10373_s2 + $0x244] ss:$16 sps:$4 sm:$0xff]   ;;  %v7928_v15 = vld [vmem:[%s10373_s2 + $0x24c] ss:$16 sps:$4 sm:$0xff]   ;;  %v7923_v16 = vld [vmem:[%s10373_s2 + $0x240] ss:$16 sps:$4 sm:$0xff]  }
  0x78   :  { %966 = vmatprep.subr.bf16.mxu0 %v7857_v28  ;;  %1052 = vmatprep.subr.bf16.mxu1 %v7859_v29  ;;  %v7926_v17 = vld [vmem:[%s10373_s2 + $0x248] ss:$16 sps:$4 sm:$0xff]   ;;  %v7931_v18 = vld [vmem:[%s10373_s2 + $0x264] ss:$16 sps:$4 sm:$0xff]   ;;  %v7934_v19 = vld [vmem:[%s10373_s2 + $0x26c] ss:$16 sps:$4 sm:$0xff]  }
  0x79   :  { %v7929_v20 = vld [vmem:[%s10373_s2 + $0x260] ss:$16 sps:$4 sm:$0xff]   ;;  %v7932_v21 = vld [vmem:[%s10373_s2 + $0x268] ss:$16 sps:$4 sm:$0xff]   ;;  %v7937_v22 = vld [vmem:[%s10373_s2 + $0x284] ss:$16 sps:$4 sm:$0xff]  }
  0x7a   :  { %v7940_v23 = vld [vmem:[%s10373_s2 + $0x28c] ss:$16 sps:$4 sm:$0xff]   ;;  %v7935_v24 = vld [vmem:[%s10373_s2 + $0x280] ss:$16 sps:$4 sm:$0xff]   ;;  %v7938_v25 = vld [vmem:[%s10373_s2 + $0x288] ss:$16 sps:$4 sm:$0xff]  }
  0x7b   :  { %967 = vmatpush1.bf16.msra.mxu0 %v7861_v30  ;;  %1053 = vmatpush1.bf16.msra.mxu1 %v7862_v31  ;;  %v7943_v26 = vld [vmem:[%s10373_s2 + $0x2a4] ss:$16 sps:$4 sm:$0xff]   ;;  %v7946_v27 = vld [vmem:[%s10373_s2 + $0x2ac] ss:$16 sps:$4 sm:$0xff]   ;;  %v7941_v28 = vld [vmem:[%s10373_s2 + $0x2a0] ss:$16 sps:$4 sm:$0xff]  }
  0x7c   :  { %968 = vmatprep.subr.bf16.mxu0 %v7863_v32  ;;  %1054 = vmatprep.subr.bf16.mxu1 %v7865_v33  ;;  %v7944_v29 = vld [vmem:[%s10373_s2 + $0x2a8] ss:$16 sps:$4 sm:$0xff]   ;;  %v7949_v30 = vld [vmem:[%s10373_s2 + $0x2c4] ss:$16 sps:$4 sm:$0xff]   ;;  %v7952_v31 = vld [vmem:[%s10373_s2 + $0x2cc] ss:$16 sps:$4 sm:$0xff]  }
  0x7d   :  { %v129_v32 = vld [vmem:[%s10393_s23 + $0x18] sm:$0xff]  ;;  %v7947_v33 = vld [vmem:[%s10373_s2 + $0x2c0] ss:$16 sps:$4 sm:$0xff]  }
  0x7e   :  { %v7970_v46 = vld [vmem:[%s10373_s2 + $0x32c] ss:$16 sps:$4 sm:$0xff]   ;;  %v7965_v47 = vld [vmem:[%s10373_s2 + $0x320] ss:$16 sps:$4 sm:$0xff]   ;;  %v7998_v5 = vld [vmem:[%s10373_s2 + $0x3c8] ss:$16 sps:$4 sm:$0xff]  }
  0x7f   :  { %969 = vmatpush1.bf16.msra.mxu0 %v7867_v34  ;;  %1055 = vmatpush1.bf16.msra.mxu1 %v7868_v35  ;;  %v7950_v34 = vld [vmem:[%s10373_s2 + $0x2c8] ss:$16 sps:$4 sm:$0xff]   ;;  %v7995_v4 = vld [vmem:[%s10373_s2 + $0x3c0] ss:$16 sps:$4 sm:$0xff]  }
  0x80   :  { %970 = vmatprep.subr.bf16.mxu0 %v7869_v36  ;;  %1056 = vmatprep.subr.bf16.mxu1 %v7871_v37  ;;  %v133_v35 = vld [vmem:[%s10393_s23 + $0x38] sm:$0xff]  ;;  %v7955_v36 = vld [vmem:[%s10373_s2 + $0x2e4] ss:$16 sps:$4 sm:$0xff]  }
  0x81   :  { %v9629_v37 = vpack.c.bf16 %v133_v35, %v129_v32  ;;  %v8025_v32 = vld [vmem:[%s10375_s4 + $0x20] sm:$0xff]   ;;  %v8028_v35 = vld [vmem:[%s10375_s4 + $0xe8] sm:$0xff]  }
  0x83   :  { %971 = vmatpush1.bf16.msra.mxu0 %v7873_v38  ;;  %1057 = vmatpush1.bf16.msra.mxu1 %v7874_v39  ;;  %v7958_v38 = vld [vmem:[%s10373_s2 + $0x2ec] ss:$16 sps:$4 sm:$0xff]   ;;  %v7953_v39 = vld [vmem:[%s10373_s2 + $0x2e0] ss:$16 sps:$4 sm:$0xff]  }
  0x84   :  { %972 = vmatprep.subr.bf16.mxu0 %v7875_v40  ;;  %1058 = vmatprep.subr.bf16.mxu1 %v7877_v41  ;;  %v7956_v40 = vld [vmem:[%s10373_s2 + $0x2e8] ss:$16 sps:$4 sm:$0xff]   ;;  %v7961_v41 = vld [vmem:[%s10373_s2 + $0x304] ss:$16 sps:$4 sm:$0xff]  }
  0x87   :  { %973 = vmatpush1.bf16.msra.mxu0 %v7879_v42  ;;  %1059 = vmatpush1.bf16.msra.mxu1 %v7880_v43  ;;  %v7964_v42 = vld [vmem:[%s10373_s2 + $0x30c] ss:$16 sps:$4 sm:$0xff]   ;;  %v7959_v43 = vld [vmem:[%s10373_s2 + $0x300] ss:$16 sps:$4 sm:$0xff]  }
  0x88   :  { %974 = vmatprep.subr.bf16.mxu0 %v7881_v44  ;;  %1060 = vmatprep.subr.bf16.mxu1 %v7883_v45  ;;  %v7962_v44 = vld [vmem:[%s10373_s2 + $0x308] ss:$16 sps:$4 sm:$0xff]   ;;  %v7967_v45 = vld [vmem:[%s10373_s2 + $0x324] ss:$16 sps:$4 sm:$0xff]  }
  0x8b   :  { %975 = vmatpush1.bf16.msra.mxu0 %v7885_v48  ;;  %1061 = vmatpush1.bf16.msra.mxu1 %v7886_v49  ;;  %v7968_v48 = vld [vmem:[%s10373_s2 + $0x328] ss:$16 sps:$4 sm:$0xff]   ;;  %v7973_v49 = vld [vmem:[%s10373_s2 + $0x344] ss:$16 sps:$4 sm:$0xff]  }
  0x8c   :  { %976 = vmatprep.subr.bf16.mxu0 %v7887_v51  ;;  %1062 = vmatprep.subr.bf16.mxu1 %v7889_v52  ;;  %v7976_v51 = vld [vmem:[%s10373_s2 + $0x34c] ss:$16 sps:$4 sm:$0xff]   ;;  %v7971_v52 = vld [vmem:[%s10373_s2 + $0x340] ss:$16 sps:$4 sm:$0xff]  }
  0x8f   :  { %977 = vmatpush1.bf16.msra.mxu0 %v7891_v53  ;;  %1063 = vmatpush1.bf16.msra.mxu1 %v7892_v54  ;;  %v7974_v53 = vld [vmem:[%s10373_s2 + $0x348] ss:$16 sps:$4 sm:$0xff]   ;;  %v7979_v54 = vld [vmem:[%s10373_s2 + $0x364] ss:$16 sps:$4 sm:$0xff]  }
  0x90   :  { %978 = vmatprep.subr.bf16.mxu0 %v7893_v55  ;;  %1064 = vmatprep.subr.bf16.mxu1 %v7895_v56  ;;  %v7982_v55 = vld [vmem:[%s10373_s2 + $0x36c] ss:$16 sps:$4 sm:$0xff]   ;;  %v7977_v56 = vld [vmem:[%s10373_s2 + $0x360] ss:$16 sps:$4 sm:$0xff]  }
  0x93   :  { %979 = vmatpush1.bf16.msra.mxu0 %v7897_v57  ;;  %1065 = vmatpush1.bf16.msra.mxu1 %v7898_v58  ;;  %v7980_v57 = vld [vmem:[%s10373_s2 + $0x368] ss:$16 sps:$4 sm:$0xff]   ;;  %v7985_v58 = vld [vmem:[%s10373_s2 + $0x384] ss:$16 sps:$4 sm:$0xff]  }
  0x94   :  { %980 = vmatprep.subr.bf16.mxu0 %v7899_v59  ;;  %1066 = vmatprep.subr.bf16.mxu1 %v7901_v60  ;;  %v7988_v59 = vld [vmem:[%s10373_s2 + $0x38c] ss:$16 sps:$4 sm:$0xff]   ;;  %v7983_v60 = vld [vmem:[%s10373_s2 + $0x380] ss:$16 sps:$4 sm:$0xff]  }
  0x97   :  { %981 = vmatpush1.bf16.msra.mxu0 %v7903_v61  ;;  %1067 = vmatpush1.bf16.msra.mxu1 %v7904_v62  ;;  %v7986_v61 = vld [vmem:[%s10373_s2 + $0x388] ss:$16 sps:$4 sm:$0xff]   ;;  %v7991_v62 = vld [vmem:[%s10373_s2 + $0x3a4] ss:$16 sps:$4 sm:$0xff]  }
  0x98   :  { %982 = vmatprep.subr.bf16.mxu0 %v7905_v63  ;;  %1068 = vmatprep.subr.bf16.mxu1 %v7907_v0  ;;  %v7994_v63 = vld [vmem:[%s10373_s2 + $0x3ac] ss:$16 sps:$4 sm:$0xff]   ;;  %v7989_v0 = vld [vmem:[%s10373_s2 + $0x3a0] ss:$16 sps:$4 sm:$0xff]  }
  0x9b   :  { %983 = vmatpush1.bf16.msra.mxu0 %v7909_v1  ;;  %1069 = vmatpush1.bf16.msra.mxu1 %v7910_v2  ;;  %v7992_v1 = vld [vmem:[%s10373_s2 + $0x3a8] ss:$16 sps:$4 sm:$0xff]   ;;  %v7997_v2 = vld [vmem:[%s10373_s2 + $0x3c4] ss:$16 sps:$4 sm:$0xff]  }
  0x9c   :  { %995 = vmatprep.subr.bf16.mxu0 %v7913_v3  ;;  %1081 = vmatprep.subr.bf16.mxu1 %v7916_v6  ;;  %v8000_v3 = vld [vmem:[%s10373_s2 + $0x3cc] ss:$16 sps:$4 sm:$0xff]   ;;  %v8003_v6 = vld [vmem:[%s10373_s2 + $0x3e4] ss:$16 sps:$4 sm:$0xff]  }
  0x9e   :  { %985 = vmatmul.mubr.bf16.vlgmr.msra.gmra.mrb[0].mxu0 %v9544_v9  ;;  %1071 = vmatmul.mubr.bf16.vlgmr.msra.gmra.mrb[0].mxu1 %v9544_v9 }
  0x9f   :  { %996 = vmatpush1.bf16.msra.mxu0 %v7911_v7  ;;  %1082 = vmatpush1.bf16.msra.mxu1 %v7914_v8  ;;  %v8006_v7 = vld [vmem:[%s10373_s2 + $0x3ec] ss:$16 sps:$4 sm:$0xff]   ;;  %v8001_v8 = vld [vmem:[%s10373_s2 + $0x3e0] ss:$16 sps:$4 sm:$0xff]  }
  0xa0   :  { %997 = vmatprep.subr.bf16.mxu0 %v7919_v10  ;;  %1083 = vmatprep.subr.bf16.mxu1 %v7922_v11  ;;  %v8004_v10 = vld [vmem:[%s10373_s2 + $0x3e8] ss:$16 sps:$4 sm:$0xff]   ;;  %v128_v11 = vld [vmem:[%s10393_s23 + $0x10] sm:$0xff] }
  0xa1   :  { %1027 = vmatprep.mubr.bf16.mxu0 %v9629_v37  ;;  %1113 = vmatprep.mubr.bf16.mxu1 %v9629_v37 }
  0xa3   :  { %998 = vmatpush1.bf16.msra.mxu0 %v7917_v12  ;;  %1084 = vmatpush1.bf16.msra.mxu1 %v7920_v13  ;;  %v132_v12 = vld [vmem:[%s10393_s23 + $0x30] sm:$0xff]  ;;  %v8007_v13 = vld [vmem:[%s10375_s4 + $0x40] sm:$0xff]  }
  0xa4   :  { %999 = vmatprep.subr.bf16.mxu0 %v7925_v14  ;;  %1085 = vmatprep.subr.bf16.mxu1 %v7928_v15  ;;  %v8008_v14 = vld [vmem:[%s10375_s4 + $0xc0] sm:$0xff]  }
  0xa5   :  { %v8009_v15 = vld [vmem:[%s10375_s4] sm:$0xff]  }
  0xa7   :  { %1000 = vmatpush1.bf16.msra.mxu0 %v7923_v16  ;;  %1086 = vmatpush1.bf16.msra.mxu1 %v7926_v17  ;;  %v8010_v16 = vld [vmem:[%s10375_s4 + $0x80] sm:$0xff]   ;;  %v9756_v17 = vpack.c.bf16 %v132_v12, %v128_v11 }
  0xa8   :  { %1001 = vmatprep.subr.bf16.mxu0 %v7931_v18  ;;  %1087 = vmatprep.subr.bf16.mxu1 %v7934_v19  ;;  %v8011_v18 = vld [vmem:[%s10375_s4 + $0x48] sm:$0xff]  }
  0xa9   :  { %v8012_v19 = vld [vmem:[%s10375_s4 + $0xc8] sm:$0xff]  }
  0xab   :  { %1002 = vmatpush1.bf16.msra.mxu0 %v7929_v20  ;;  %1088 = vmatpush1.bf16.msra.mxu1 %v7932_v21  ;;  %v8013_v20 = vld [vmem:[%s10375_s4 + $0x8] sm:$0xff]  }
  0xac   :  { %1003 = vmatprep.subr.bf16.mxu0 %v7937_v22  ;;  %1089 = vmatprep.subr.bf16.mxu1 %v7940_v23  ;;  %v8014_v21 = vld [vmem:[%s10375_s4 + $0x88] sm:$0xff]   ;;  %v8015_v22 = vld [vmem:[%s10375_s4 + $0x50] sm:$0xff]  }
  0xad   :  { %v8016_v23 = vld [vmem:[%s10375_s4 + $0xd0] sm:$0xff]  }
  0xaf   :  { %1004 = vmatpush1.bf16.msra.mxu0 %v7935_v24  ;;  %1090 = vmatpush1.bf16.msra.mxu1 %v7938_v25  ;;  %v8017_v24 = vld [vmem:[%s10375_s4 + $0x10] sm:$0xff]  }
  0xb0   :  { %1005 = vmatprep.subr.bf16.mxu0 %v7943_v26  ;;  %1091 = vmatprep.subr.bf16.mxu1 %v7946_v27  ;;  %v8018_v25 = vld [vmem:[%s10375_s4 + $0x90] sm:$0xff]   ;;  %v8019_v26 = vld [vmem:[%s10375_s4 + $0x58] sm:$0xff]  }
  0xb1   :  { %v8020_v27 = vld [vmem:[%s10375_s4 + $0xd8] sm:$0xff]  }
  0xb3   :  { %1006 = vmatpush1.bf16.msra.mxu0 %v7941_v28  ;;  %1092 = vmatpush1.bf16.msra.mxu1 %v7944_v29  ;;  %v8021_v28 = vld [vmem:[%s10375_s4 + $0x18] sm:$0xff]  }
  0xb4   :  { %1007 = vmatprep.subr.bf16.mxu0 %v7949_v30  ;;  %1093 = vmatprep.subr.bf16.mxu1 %v7952_v31  ;;  %v8022_v29 = vld [vmem:[%s10375_s4 + $0x98] sm:$0xff]   ;;  %v8023_v30 = vld [vmem:[%s10375_s4 + $0x60] sm:$0xff]  }
  0xb5   :  { %v8024_v31 = vld [vmem:[%s10375_s4 + $0xe0] sm:$0xff]  }
  0xb7   :  { %1008 = vmatpush1.bf16.msra.mxu0 %v7947_v33  ;;  %1094 = vmatpush1.bf16.msra.mxu1 %v7950_v34  ;;  %v8026_v33 = vld [vmem:[%s10375_s4 + $0xa0] sm:$0xff]   ;;  %v8027_v34 = vld [vmem:[%s10375_s4 + $0x68] sm:$0xff]  }
  0xb8   :  { %1009 = vmatprep.subr.bf16.mxu0 %v7955_v36  ;;  %1095 = vmatprep.subr.bf16.mxu1 %v7958_v38  ;;  %v8029_v36 = vld [vmem:[%s10375_s4 + $0x28] sm:$0xff]  }
  0xb9   :  { %v8030_v38 = vld [vmem:[%s10375_s4 + $0xa8] sm:$0xff]  }
  0xbb   :  { %1010 = vmatpush1.bf16.msra.mxu0 %v7953_v39  ;;  %1096 = vmatpush1.bf16.msra.mxu1 %v7956_v40  ;;  %v8031_v39 = vld [vmem:[%s10375_s4 + $0x70] sm:$0xff]  }
  0xbc   :  { %1011 = vmatprep.subr.bf16.mxu0 %v7961_v41  ;;  %1097 = vmatprep.subr.bf16.mxu1 %v7964_v42  ;;  %v8032_v40 = vld [vmem:[%s10375_s4 + $0xf0] sm:$0xff]  }
  0xbd   :  { %v8033_v41 = vld [vmem:[%s10375_s4 + $0x30] sm:$0xff]  }
  0xbe   :  { %v8034_v42 = vld [vmem:[%s10375_s4 + $0xb0] sm:$0xff]  }
  0xbf   :  { %1012 = vmatpush1.bf16.msra.mxu0 %v7959_v43  ;;  %1098 = vmatpush1.bf16.msra.mxu1 %v7962_v44  ;;  %v8035_v43 = vld [vmem:[%s10375_s4 + $0x78] sm:$0xff]  }
  0xc0   :  { %1013 = vmatprep.subr.bf16.mxu0 %v7967_v45  ;;  %1099 = vmatprep.subr.bf16.mxu1 %v7970_v46  ;;  %v8036_v44 = vld [vmem:[%s10375_s4 + $0xf8] sm:$0xff]  }
  0xc1   :  { %v8037_v45 = vld [vmem:[%s10375_s4 + $0x38] sm:$0xff]  }
  0xc2   :  { %v8038_v46 = vld [vmem:[%s10375_s4 + $0xb8] sm:$0xff]  }
  0xc3   :  { %1014 = vmatpush1.bf16.msra.mxu0 %v7965_v47  ;;  %1100 = vmatpush1.bf16.msra.mxu1 %v7968_v48  ;;  %v292_v47 = vlaneseq }
  0xc4   :  { %1015 = vmatprep.subr.bf16.mxu0 %v7973_v49  ;;  %1101 = vmatprep.subr.bf16.mxu1 %v7976_v51 }
  0xc5   :  { %v9844_v48 = vshrl.u32 %v292_v47, 7  ;;  %v8071_v47 = vld [vmem:[#allocation6 + $0xa4] ss:$16 sps:$4 sm:$0xff]  }
  0xc7   :  { %1016 = vmatpush1.bf16.msra.mxu0 %v7971_v52  ;;  %1102 = vmatpush1.bf16.msra.mxu1 %v7974_v53  ;;  %v9847_v49 = vsub.s32 0, %v9844_v48  ;;  %v9850_v51 = vsub.s32 2, %v9844_v48  ;;  %v290_v52 = vld [vmem:[%s10374_s3] sm:$0xf]  ;;  %v9856_v53 = vsub.s32 1, %v9844_v48  ;;  %s1124_s3 = sld [smem:[#allocation11]] }
  0xc8   :  { %1017 = vmatprep.subr.bf16.mxu0 %v7979_v54  ;;  %1103 = vmatprep.subr.bf16.mxu1 %v7982_v55  ;;  %v9859_v54 = vsub.s32 3, %v9844_v48 }
  0xc9   :  { %v295_v55 = vrot.slane %v290_v52, %v9847_v49 }
  0xcb   :  { %1018 = vmatpush1.bf16.msra.mxu0 %v7977_v56  ;;  %1104 = vmatpush1.bf16.msra.mxu1 %v7980_v57  ;;  %v303_v56 = vrot.slane %v290_v52, %v9850_v51  ;;  %v299_v57 = vrot.slane %v290_v52, %v9856_v53 }
  0xcc   :  { %1019 = vmatprep.subr.bf16.mxu0 %v7985_v58  ;;  %1105 = vmatprep.subr.bf16.mxu1 %v7988_v59  ;;  %v307_v58 = vrot.slane %v290_v52, %v9859_v54  ;;  %v8074_v52 = vld [vmem:[#allocation6 + $0xac] ss:$16 sps:$4 sm:$0xff]  }
  0xcf   :  { %1020 = vmatpush1.bf16.msra.mxu0 %v7983_v60  ;;  %1106 = vmatpush1.bf16.msra.mxu1 %v7986_v61 }
  0xd0   :  { %1021 = vmatprep.subr.bf16.mxu0 %v7991_v62  ;;  %1107 = vmatprep.subr.bf16.mxu1 %v7994_v63 }
  0xd3   :  { %1022 = vmatpush1.bf16.msra.mxu0 %v7989_v0  ;;  %1108 = vmatpush1.bf16.msra.mxu1 %v7992_v1 }
  0xd4   :  { %1023 = vmatprep.subr.bf16.mxu0 %v7997_v2  ;;  %1109 = vmatprep.subr.bf16.mxu1 %v8000_v3 }
  0xd7   :  { %1024 = vmatpush1.bf16.msra.mxu0 %v7995_v4  ;;  %1110 = vmatpush1.bf16.msra.mxu1 %v7998_v5 }
  0xd8   :  { %1025 = vmatprep.subr.bf16.mxu0 %v8003_v6  ;;  %1111 = vmatprep.subr.bf16.mxu1 %v8006_v7 }
  0xdb   :  { %1026 = vmatpush1.bf16.msra.mxu0 %v8001_v8  ;;  %1112 = vmatpush1.bf16.msra.mxu1 %v8004_v10 }
  0xdc   :  { %7569 = vmatprep.subr.bf16.mxu0 %v8007_v13  ;;  %7591 = vmatprep.subr.bf16.mxu1 %v8008_v14 }
  0xde   :  { %1028 = vmatmul.mubr.bf16.vlgmr.msra.gmra.mrb[0].mxu0 %v9756_v17  ;;  %1114 = vmatmul.mubr.bf16.vlgmr.msra.gmra.mrb[0].mxu1 %v9756_v17 }
  0xdf   :  { %7570 = vmatpush3.bf16.msra.mxu0 %v8009_v15  ;;  %7592 = vmatpush3.bf16.msra.mxu1 %v8010_v16 }
  0xe0   :  { %7571 = vmatprep.subr.bf16.mxu0 %v8011_v18  ;;  %7593 = vmatprep.subr.bf16.mxu1 %v8012_v19 }
  0xe3   :  { %7572 = vmatpush3.bf16.msra.mxu0 %v8013_v20  ;;  %7594 = vmatpush3.bf16.msra.mxu1 %v8014_v21 }
  0xe4   :  { %7573 = vmatprep.subr.bf16.mxu0 %v8015_v22  ;;  %7595 = vmatprep.subr.bf16.mxu1 %v8016_v23 }
  0xe7   :  { %7574 = vmatpush3.bf16.msra.mxu0 %v8017_v24  ;;  %7596 = vmatpush3.bf16.msra.mxu1 %v8018_v25  ;;  %v9152_v25 = vmov 0  }
  0xe8   :  { %7575 = vmatprep.subr.bf16.mxu0 %v8019_v26  ;;  %7597 = vmatprep.subr.bf16.mxu1 %v8020_v27  ;;  %v8039_v26 = vld [vmem:[#allocation6] ss:$16 sps:$4 sm:$0xff]   ;;  %v8041_v27 = vld [vmem:[#allocation6 + $0x4] ss:$16 sps:$4 sm:$0xff]  }
  0xe9   :  { %7813 = vset.pattern.permute.xlu0 %v9152_v25  ;;  %7814 = vset.pattern.permute.xlu1 %v9152_v25 }
  0xeb   :  { %7576 = vmatpush3.bf16.msra.mxu0 %v8021_v28  ;;  %7598 = vmatpush3.bf16.msra.mxu1 %v8022_v29  ;;  %v8042_v28 = vld [vmem:[#allocation6 + $0x8] ss:$16 sps:$4 sm:$0xff]   ;;  %v8044_v29 = vld [vmem:[#allocation6 + $0xc] ss:$16 sps:$4 sm:$0xff]  }
  0xec   :  { %7577 = vmatprep.subr.bf16.mxu0 %v8023_v30  ;;  %7599 = vmatprep.subr.bf16.mxu1 %v8024_v31  ;;  %v8047_v30 = vld [vmem:[#allocation6 + $0x24] ss:$16 sps:$4 sm:$0xff]   ;;  %v8050_v31 = vld [vmem:[#allocation6 + $0x2c] ss:$16 sps:$4 sm:$0xff]  }
  0xef   :  { %7578 = vmatpush3.bf16.msra.mxu0 %v8025_v32  ;;  %7600 = vmatpush3.bf16.msra.mxu1 %v8026_v33  ;;  %v8045_v32 = vld [vmem:[#allocation6 + $0x20] ss:$16 sps:$4 sm:$0xff]   ;;  %v8048_v33 = vld [vmem:[#allocation6 + $0x28] ss:$16 sps:$4 sm:$0xff]  }
  0xf0   :  { %7579 = vmatprep.subr.bf16.mxu0 %v8027_v34  ;;  %7601 = vmatprep.subr.bf16.mxu1 %v8028_v35  ;;  %v8053_v34 = vld [vmem:[#allocation6 + $0x44] ss:$16 sps:$4 sm:$0xff]   ;;  %v8056_v35 = vld [vmem:[#allocation6 + $0x4c] ss:$16 sps:$4 sm:$0xff]  }
  0xf3   :  { %7580 = vmatpush3.bf16.msra.mxu0 %v8029_v36  ;;  %7602 = vmatpush3.bf16.msra.mxu1 %v8030_v38  ;;  %v8051_v36 = vld [vmem:[#allocation6 + $0x40] ss:$16 sps:$4 sm:$0xff]   ;;  %v8054_v38 = vld [vmem:[#allocation6 + $0x48] ss:$16 sps:$4 sm:$0xff]  }
  0xf4   :  { %7581 = vmatprep.subr.bf16.mxu0 %v8031_v39  ;;  %7603 = vmatprep.subr.bf16.mxu1 %v8032_v40  ;;  %v8059_v39 = vld [vmem:[#allocation6 + $0x64] ss:$16 sps:$4 sm:$0xff]   ;;  %v8062_v40 = vld [vmem:[#allocation6 + $0x6c] ss:$16 sps:$4 sm:$0xff]  }
  0xf7   :  { %7582 = vmatpush3.bf16.msra.mxu0 %v8033_v41  ;;  %7604 = vmatpush3.bf16.msra.mxu1 %v8034_v42  ;;  %v8057_v41 = vld [vmem:[#allocation6 + $0x60] ss:$16 sps:$4 sm:$0xff]   ;;  %v8060_v42 = vld [vmem:[#allocation6 + $0x68] ss:$16 sps:$4 sm:$0xff]  }
  0xf8   :  { %7583 = vmatprep.subr.bf16.mxu0 %v8035_v43  ;;  %7605 = vmatprep.subr.bf16.mxu1 %v8036_v44  ;;  %v8065_v43 = vld [vmem:[#allocation6 + $0x84] ss:$16 sps:$4 sm:$0xff]   ;;  %v8068_v44 = vld [vmem:[#allocation6 + $0x8c] ss:$16 sps:$4 sm:$0xff]  }
  0xfb   :  { %7584 = vmatpush3.bf16.msra.mxu0 %v8037_v45  ;;  %7606 = vmatpush3.bf16.msra.mxu1 %v8038_v46  ;;  %v8063_v45 = vld [vmem:[#allocation6 + $0x80] ss:$16 sps:$4 sm:$0xff]   ;;  %v8066_v46 = vld [vmem:[#allocation6 + $0x88] ss:$16 sps:$4 sm:$0xff]  }
  0xfc   :  { %2410 = vmatprep.subr.bf16.mxu0 %v8041_v27  ;;  %2492 = vmatprep.subr.bf16.mxu1 %v8044_v29 }
 0x1b1   :  { %v1029_v59 = vpop.f32.mrb[0].mxu0  ;;  %v1115_v60 = vpop.f32.mrb[0].mxu1 }
 0x1b2   :  { %v7713_v61 = vadd.f32 %v1029_v59, %v295_v55  ;;  %v7717_v62 = vadd.f32 %v1115_v60, %v303_v56  ;;  %v1031_v63 = vpop.f32.mrb[1].mxu0  ;;  %v1117_v0 = vpop.f32.mrb[1].mxu1  ;;  %v8075_v59 = vld [vmem:[#allocation6 + $0xc0] ss:$16 sps:$4 sm:$0xff]   ;;  %v8078_v60 = vld [vmem:[#allocation6 + $0xc8] ss:$16 sps:$4 sm:$0xff]  }
 0x1b3   :  { %v7714_v1 = vadd.f32 %v1031_v63, %v299_v57  ;;  %v7718_v2 = vadd.f32 %v1117_v0, %v307_v58  ;;  %v1033_v3 = vpop.f32.mrb[2].mxu0  ;;  %v1119_v4 = vpop.f32.mrb[2].mxu1  ;;  %v8081_v63 = vld [vmem:[#allocation6 + $0xe0] ss:$16 sps:$4 sm:$0xff]   ;;  %v8084_v0 = vld [vmem:[#allocation6 + $0xe8] ss:$16 sps:$4 sm:$0xff]  }
 0x1b4   :  { %8871 = vtanh.f32 %v7713_v61  ;;  %v7715_v5 = vadd.f32 %v1033_v3, %v295_v55  ;;  %v1035_v6 = vpop.f32.mrb[3].mxu0  ;;  %v1121_v7 = vpop.f32.mrb[3].mxu1  ;;  %v7719_v8 = vadd.f32 %v1119_v4, %v303_v56  ;;  %v8069_v55 = vld [vmem:[#allocation6 + $0xa0] ss:$16 sps:$4 sm:$0xff]   ;;  %v8072_v56 = vld [vmem:[#allocation6 + $0xa8] ss:$16 sps:$4 sm:$0xff]  }
 0x1b5   :  { %8873 = vtanh.f32 %v7717_v62  ;;  %v7716_v10 = vadd.f32 %v1035_v6, %v299_v57  ;;  %v7720_v11 = vadd.f32 %v1121_v7, %v307_v58  ;;  %v8077_v57 = vld [vmem:[#allocation6 + $0xc4] ss:$16 sps:$4 sm:$0xff]   ;;  %v8080_v58 = vld [vmem:[#allocation6 + $0xcc] ss:$16 sps:$4 sm:$0xff]   ;;  %v8087_v3 = vld [vmem:[#allocation6 + $0x100] ss:$16 sps:$4 sm:$0xff]  }
 0x1b6   :  { %8875 = vtanh.f32 %v7714_v1  ;;  %v8083_v61 = vld [vmem:[#allocation6 + $0xe4] ss:$16 sps:$4 sm:$0xff]   ;;  %v8086_v62 = vld [vmem:[#allocation6 + $0xec] ss:$16 sps:$4 sm:$0xff]   ;;  %v8090_v4 = vld [vmem:[#allocation6 + $0x108] ss:$16 sps:$4 sm:$0xff]  }
 0x1b7   :  { %8877 = vtanh.f32 %v7718_v2  ;;  %v8089_v1 = vld [vmem:[#allocation6 + $0x104] ss:$16 sps:$4 sm:$0xff]   ;;  %v8092_v2 = vld [vmem:[#allocation6 + $0x10c] ss:$16 sps:$4 sm:$0xff]   ;;  %v8093_v7 = vld [vmem:[#allocation6 + $0x120] ss:$16 sps:$4 sm:$0xff]  }
 0x1b8   :  { %8879 = vtanh.f32 %v7715_v5  ;;  %v8095_v5 = vld [vmem:[#allocation6 + $0x124] ss:$16 sps:$4 sm:$0xff]   ;;  %v8098_v6 = vld [vmem:[#allocation6 + $0x12c] ss:$16 sps:$4 sm:$0xff]  }
 0x1b9   :  { %8881 = vtanh.f32 %v7719_v8  ;;  %v8096_v8 = vld [vmem:[#allocation6 + $0x128] ss:$16 sps:$4 sm:$0xff]  }
 0x1ba   :  { %8883 = vtanh.f32 %v7716_v10 }
 0x1bb   :  { %8885 = vtanh.f32 %v7720_v11 }
 0x1be   :  { %v8872_v12 = vpop.eup %8871 }
 0x1bf   :  { %v8874_v13 = vpop.eup %8873 }
 0x1c0   :  { %v8876_v14 = vpop.eup %8875 }
 0x1c1   :  { %v8878_v15 = vpop.eup %8877 }
 0x1c2   :  { %v8880_v16 = vpop.eup %8879 }
 0x1c3   :  { %v8882_v18 = vpop.eup %8881  ;;  %v1133_v19 = vpack.c.bf16 %v8880_v16, %v8872_v12 }
 0x1c4   :  { %v8884_v20 = vpop.eup %8883  ;;  %v1135_v21 = vpack.c.bf16 %v8882_v18, %v8874_v13 }
 0x1c5   :  { %v8886_v22 = vpop.eup %8885  ;;  %v1134_v23 = vpack.c.bf16 %v8884_v20, %v8876_v14  ;;  %v1475_v20 = vstv %s1124_s3 }
 0x1c6   :  { %v1136_v24 = vpack.c.bf16 %v8886_v22, %v8878_v15 }
 0x1c7   :  { %1425 = vmatprep.mubr.bf16.mxu0 %v1134_v23 }
 0x1c8   :  { %1466 = vmatprep.mubr.bf16.mxu1 %v1136_v24  ;;  %1426 = vmatmul.mubr.bf16.vlgmr.msra.gmra.mrb[4].mxu0 %v1133_v19 }
 0x1c9   :  { %1467 = vmatmul.mubr.bf16.vlgmr.msra.gmra.mrb[4].mxu1 %v1135_v21  ;;  %2411 = vmatpush1.bf16.msra.mxu0 %v8039_v26 }
 0x1ca   :  { %2493 = vmatpush1.bf16.msra.mxu1 %v8042_v28  ;;  %2412 = vmatprep.subr.bf16.mxu0 %v8047_v30 }
 0x1cb   :  { %2494 = vmatprep.subr.bf16.mxu1 %v8050_v31 }
 0x1cd   :  { %2413 = vmatpush1.bf16.msra.mxu0 %v8045_v32 }
 0x1ce   :  { %2495 = vmatpush1.bf16.msra.mxu1 %v8048_v33  ;;  %2414 = vmatprep.subr.bf16.mxu0 %v8053_v34 }
 0x1cf   :  { %2496 = vmatprep.subr.bf16.mxu1 %v8056_v35 }
 0x1d1   :  { %2415 = vmatpush1.bf16.msra.mxu0 %v8051_v36 }
 0x1d2   :  { %2497 = vmatpush1.bf16.msra.mxu1 %v8054_v38  ;;  %2416 = vmatprep.subr.bf16.mxu0 %v8059_v39 }
 0x1d3   :  { %2498 = vmatprep.subr.bf16.mxu1 %v8062_v40 }
 0x1d5   :  { %2417 = vmatpush1.bf16.msra.mxu0 %v8057_v41 }
 0x1d6   :  { %2499 = vmatpush1.bf16.msra.mxu1 %v8060_v42  ;;  %2418 = vmatprep.subr.bf16.mxu0 %v8065_v43 }
 0x1d7   :  { %2500 = vmatprep.subr.bf16.mxu1 %v8068_v44 }
 0x1d9   :  { %2419 = vmatpush1.bf16.msra.mxu0 %v8063_v45 }
 0x1da   :  { %2501 = vmatpush1.bf16.msra.mxu1 %v8066_v46  ;;  %2420 = vmatprep.subr.bf16.mxu0 %v8071_v47 }
 0x1db   :  { %2502 = vmatprep.subr.bf16.mxu1 %v8074_v52 }
 0x1dd   :  { %2421 = vmatpush1.bf16.msra.mxu0 %v8069_v55 }
 0x1de   :  { %2503 = vmatpush1.bf16.msra.mxu1 %v8072_v56  ;;  %2422 = vmatprep.subr.bf16.mxu0 %v8077_v57 }
 0x1df   :  { %2504 = vmatprep.subr.bf16.mxu1 %v8080_v58 }
 0x1e1   :  { %2423 = vmatpush1.bf16.msra.mxu0 %v8075_v59 }
 0x1e2   :  { %2505 = vmatpush1.bf16.msra.mxu1 %v8078_v60  ;;  %2424 = vmatprep.subr.bf16.mxu0 %v8083_v61 }
 0x1e3   :  { %2506 = vmatprep.subr.bf16.mxu1 %v8086_v62 }
 0x1e5   :  { %2425 = vmatpush1.bf16.msra.mxu0 %v8081_v63 }
 0x1e6   :  { %2507 = vmatpush1.bf16.msra.mxu1 %v8084_v0  ;;  %2426 = vmatprep.subr.bf16.mxu0 %v8089_v1 }
 0x1e7   :  { %2508 = vmatprep.subr.bf16.mxu1 %v8092_v2 }
 0x1e9   :  { %2427 = vmatpush1.bf16.msra.mxu0 %v8087_v3 }
 0x1ea   :  { %2509 = vmatpush1.bf16.msra.mxu1 %v8090_v4  ;;  %2428 = vmatprep.subr.bf16.mxu0 %v8095_v5 }
 0x1eb   :  { %2510 = vmatprep.subr.bf16.mxu1 %v8098_v6 }
 0x1ed   :  { %2429 = vmatpush1.bf16.msra.mxu0 %v8093_v7 }
 0x1ee   :  { %2511 = vmatpush1.bf16.msra.mxu1 %v8096_v8  ;;  %v8101_v8 = vld [vmem:[#allocation6 + $0x144] ss:$16 sps:$4 sm:$0xff]  }
 0x1ef   :  { %2430 = vmatprep.subr.bf16.mxu0 %v8101_v8 }
 0x29b   :  { %v7585_v10 = vpop.f32.mrb[4].mxu0 }
 0x29c   :  { %v7607_v11 = vpop.f32.mrb[4].mxu1  ;;  %v7586_v12 = vpop.f32.mrb[5].mxu0 }
 0x29d   :  { %v7587_v13 = vadd.f32 %v7586_v12, %v7585_v10  ;;  %v7608_v14 = vpop.f32.mrb[5].mxu1  ;;  %v7588_v15 = vpop.f32.mrb[6].mxu0  ;;  %v8104_v10 = vld [vmem:[#allocation6 + $0x14c] ss:$16 sps:$4 sm:$0xff]   ;;  %v8102_v12 = vld [vmem:[#allocation6 + $0x148] ss:$16 sps:$4 sm:$0xff]  }
 0x29e   :  { %v7609_v16 = vadd.f32 %v7608_v14, %v7607_v11  ;;  %v7610_v18 = vpop.f32.mrb[6].mxu1  ;;  %v7589_v19 = vpop.f32.mrb[7].mxu0  ;;  %v8099_v11 = vld [vmem:[#allocation6 + $0x140] ss:$16 sps:$4 sm:$0xff]   ;;  %2512 = vmatprep.subr.bf16.mxu1 %v8104_v10  ;;  %v8107_v14 = vld [vmem:[#allocation6 + $0x164] ss:$16 sps:$4 sm:$0xff]  }
 0x29f   :  { %v7590_v21 = vadd.f32 %v7589_v19, %v7588_v15  ;;  %v7611_v22 = vpop.f32.mrb[7].mxu1  ;;  %2431 = vmatpush1.bf16.msra.mxu0 %v8099_v11  ;;  %2513 = vmatpush1.bf16.msra.mxu1 %v8102_v12  ;;  %v8110_v15 = vld [vmem:[#allocation6 + $0x16c] ss:$16 sps:$4 sm:$0xff]   ;;  %v8113_v19 = vld [vmem:[#allocation6 + $0x184] ss:$16 sps:$4 sm:$0xff]  }
 0x2a0   :  { %v1469_v23 = vadd.f32 %v7609_v16, %v7587_v13  ;;  %v7612_v24 = vadd.f32 %v7611_v22, %v7610_v18  ;;  %v8105_v16 = vld [vmem:[#allocation6 + $0x160] ss:$16 sps:$4 sm:$0xff]   ;;  %v8108_v18 = vld [vmem:[#allocation6 + $0x168] ss:$16 sps:$4 sm:$0xff]   ;;  %2432 = vmatprep.subr.bf16.mxu0 %v8107_v14  ;;  %2514 = vmatprep.subr.bf16.mxu1 %v8110_v15 }
 0x2a1   :  { %v8114_v22 = vld [vmem:[#allocation6 + $0x188] ss:$16 sps:$4 sm:$0xff]  }
 0x2a2   :  { %v1476_v25 = vadd.f32 %v1475_v20, %v1469_v23  ;;  %v1472_v26 = vadd.f32 %v7612_v24, %v7590_v21  ;;  %v8111_v21 = vld [vmem:[#allocation6 + $0x180] ss:$16 sps:$4 sm:$0xff]   ;;  %v8119_v23 = vld [vmem:[#allocation6 + $0x1a4] ss:$16 sps:$4 sm:$0xff]   ;;  %v8122_v24 = vld [vmem:[#allocation6 + $0x1ac] ss:$16 sps:$4 sm:$0xff]  }
 0x2a3   :  { %2433 = vmatpush1.bf16.msra.mxu0 %v8105_v16  ;;  %2515 = vmatpush1.bf16.msra.mxu1 %v8108_v18 }
 0x2a4   :  { %v1479_v27 = vsel %vm1478_vm0, %v1476_v25, -inf  ;;  %v1477_v28 = vadd.f32 %v1475_v20, %v1472_v26  ;;  %v8116_v20 = vld [vmem:[#allocation6 + $0x18c] ss:$16 sps:$4 sm:$0xff]   ;;  %2434 = vmatprep.subr.bf16.mxu0 %v8113_v19  ;;  %v8120_v26 = vld [vmem:[#allocation6 + $0x1a8] ss:$16 sps:$4 sm:$0xff]  }
 0x2a5   :  { %v1480_v29 = vrot.slane %v1479_v27, 4  ;;  %2516 = vmatprep.subr.bf16.mxu1 %v8116_v20 }
 0x2a6   :  { %v1486_v30 = vsel %vm1478_vm0, %v1477_v28, -inf }
 0x2a7   :  { %v1481_v31 = vmax.f32 %v1479_v27, %v1480_v29  ;;  %v1487_v32 = vrot.slane %v1486_v30, 4  ;;  %2435 = vmatpush1.bf16.msra.mxu0 %v8111_v21  ;;  %2517 = vmatpush1.bf16.msra.mxu1 %v8114_v22  ;;  %v8125_v27 = vld [vmem:[#allocation6 + $0x1c4] ss:$16 sps:$4 sm:$0xff]   ;;  %v8123_v29 = vld [vmem:[#allocation6 + $0x1c0] ss:$16 sps:$4 sm:$0xff]  }
 0x2a8   :  { %2436 = vmatprep.subr.bf16.mxu0 %v8119_v23  ;;  %2518 = vmatprep.subr.bf16.mxu1 %v8122_v24 }
 0x2a9   :  { %v1482_v33 = vrot.slane %v1481_v31, 2  ;;  %v1488_v34 = vmax.f32 %v1486_v30, %v1487_v32  ;;  %v8126_v30 = vld [vmem:[#allocation6 + $0x1c8] ss:$16 sps:$4 sm:$0xff]   ;;  %v8131_v32 = vld [vmem:[#allocation6 + $0x1e4] ss:$16 sps:$4 sm:$0xff]  }
 0x2ab   :  { %v1483_v35 = vmax.f32 %v1481_v31, %v1482_v33  ;;  %v1489_v36 = vrot.slane %v1488_v34, 2  ;;  %2519 = vmatpush1.bf16.msra.mxu1 %v8120_v26  ;;  %v8129_v31 = vld [vmem:[#allocation6 + $0x1e0] ss:$16 sps:$4 sm:$0xff]   ;;  %v8132_v33 = vld [vmem:[#allocation6 + $0x1e8] ss:$16 sps:$4 sm:$0xff]  }
 0x2ad   :  { %v1484_v38 = vrot.slane %v1483_v35, 1  ;;  %v1490_v39 = vmax.f32 %v1488_v34, %v1489_v36  ;;  %v8134_v34 = vld [vmem:[#allocation6 + $0x1ec] ss:$16 sps:$4 sm:$0xff]  }
 0x2ae   :  { %v8140_v36 = vld [vmem:[#allocation6 + $0x20c] ss:$16 sps:$4 sm:$0xff]  }
 0x2af   :  { %v1485_v40 = vmax.f32 %v1483_v35, %v1484_v38  ;;  %v1491_v41 = vrot.slane %v1490_v39, 1  ;;  %v8137_v35 = vld [vmem:[#allocation6 + $0x204] ss:$16 sps:$4 sm:$0xff]  }
 0x2b1   :  { %v1493_v42 = vsub.f32 %v1476_v25, %v1485_v40  ;;  %v1492_v43 = vmax.f32 %v1490_v39, %v1491_v41  ;;  %v8117_v25 = vld [vmem:[#allocation6 + $0x1a0] ss:$16 sps:$4 sm:$0xff]   ;;  %v8964_v41 = vld [vmem:[%s10393_s23 + $0x8] sm:$0xff] }
 0x2b2   :  { %2437 = vmatpush1.bf16.msra.mxu0 %v8117_v25  ;;  %v8963_v39 = vld [vmem:[%s10393_s23] sm:$0xff] }
 0x2b3   :  { %v1495_v44 = vmul.f32 1.442695, %v1493_v42  ;;  %v1494_v45 = vsub.f32 %v1477_v28, %v1492_v43  ;;  %v8128_v28 = vld [vmem:[#allocation6 + $0x1cc] ss:$16 sps:$4 sm:$0xff]   ;;  %2438 = vmatprep.subr.bf16.mxu0 %v8125_v27 }
 0x2b4   :  { %2520 = vmatprep.subr.bf16.mxu1 %v8128_v28  ;;  %v8965_v43 = vld [vmem:[%s10393_s23 + $0x18] sm:$0xff] }
 0x2b5   :  { %8887 = vpow2.f32 %v1495_v44  ;;  %v1497_v46 = vmul.f32 1.442695, %v1494_v45  ;;  %2521 = vmatpush1.bf16.msra.mxu1 %v8126_v30 }
 0x2b6   :  { %2439 = vmatpush1.bf16.msra.mxu0 %v8123_v29  ;;  %2522 = vmatprep.subr.bf16.mxu1 %v8134_v34 }
 0x2b7   :  { %8889 = vpow2.f32 %v1497_v46  ;;  %2440 = vmatprep.subr.bf16.mxu0 %v8131_v32 }
 0x2b9   :  { %2523 = vmatpush1.bf16.msra.mxu1 %v8132_v33 }
 0x2ba   :  { %2441 = vmatpush1.bf16.msra.mxu0 %v8129_v31  ;;  %2533 = vmatprep.subr.bf16.mxu1 %v8140_v36 }
 0x2bb   :  { %2451 = vmatprep.subr.bf16.mxu0 %v8137_v35 }
 0x2bf   :  { %v8888_v47 = vpop.eup %8887 }
 0x2c0   :  { %v1499_v52 = vsel %vm1478_vm0, %v8888_v47, 0.0 }
 0x2c1   :  { %v8890_v55 = vpop.eup %8889  ;;  %v1500_v56 = vrot.slane %v1499_v52, 4 }
 0x2c2   :  { %v1506_v57 = vsel %vm1478_vm0, %v8890_v55, 0.0 }
 0x2c3   :  { %v1507_v58 = vrot.slane %v1506_v57, 4  ;;  %v1501_v59 = vadd.f32 %v1500_v56, %v1499_v52 }
 0x2c5   :  { %v1502_v60 = vrot.slane %v1501_v59, 2  ;;  %v1508_v61 = vadd.f32 %v1507_v58, %v1506_v57  ;;  %v8966_v58 = vld [vmem:[%s10393_s23 + $0x20] sm:$0xff] }
 0x2c7   :  { %v1503_v62 = vadd.f32 %v1502_v60, %v1501_v59  ;;  %v1509_v63 = vrot.slane %v1508_v61, 2  ;;  %v8967_v60 = vld [vmem:[%s10393_s23 + $0x28] sm:$0xff] }
 0x2c9   :  { %v1504_v0 = vrot.slane %v1503_v62, 1  ;;  %v1510_v1 = vadd.f32 %v1509_v63, %v1508_v61 }
 0x2cb   :  { %v1505_v2 = vadd.f32 %v1504_v0, %v1503_v62  ;;  %v1511_v3 = vrot.slane %v1510_v1, 1  ;;  %v8968_v62 = vld [vmem:[%s10393_s23 + $0x38] sm:$0xff] }
 0x2cd   :  { %8891 = vrcp.f32 %v1505_v2  ;;  %v1512_v4 = vadd.f32 %v1511_v3, %v1510_v1 }
 0x2cf   :  { %8893 = vrcp.f32 %v1512_v4 }
 0x2d7   :  { %v8892_v5 = vpop.eup %8891 }
 0x2d8   :  { %v1514_v6 = vmul.f32 %v8892_v5, %v8888_v47 }
 0x2d9   :  { %v8894_v7 = vpop.eup %8893 }
 0x2da   :  { %1519 = vperm.xlu0 %7813, %v1514_v6   ;;  %v1516_v13 = vmul.f32 %v8894_v7, %v8890_v55 }
 0x2de   :  { %1524 = vperm.xlu0 %7813, %v1516_v13  }
 0x359   :  { %v9869_v38 = vpop.permute.xlu0 %1519 }
 0x35a   :  { %v1527_v40 = vmul.f32 %v8963_v39, %v9869_v38  ;;  %v1528_v42 = vmul.f32 %v8964_v41, %v9869_v38  ;;  %v1530_v44 = vmul.f32 %v8965_v43, %v9869_v38 }
 0x35c   :  { %v1535_v45 = vrot.slane %v1527_v40, 4  ;;  %v1541_v46 = vrot.slane %v1528_v42, 4  ;;  %v1553_v47 = vrot.slane %v1530_v44, 4 }
 0x35d   :  { %v9883_v52 = vpop.permute.xlu0 %1524 }
 0x35e   :  { %v1536_v55 = vadd.f32 %v1535_v45, %v1527_v40  ;;  %v1542_v56 = vadd.f32 %v1541_v46, %v1528_v42  ;;  %v1554_v57 = vadd.f32 %v1553_v47, %v1530_v44  ;;  %v1531_v59 = vmul.f32 %v8966_v58, %v9883_v52 }
 0x35f   :  { %v1532_v61 = vmul.f32 %v8967_v60, %v9883_v52  ;;  %v1534_v63 = vmul.f32 %v8968_v62, %v9883_v52  ;;  %v8143_v60 = vld [vmem:[#allocation6 + $0x224] ss:$16 sps:$4 sm:$0xff]  }
 0x360   :  { %v1537_v0 = vrot.slane %v1536_v55, 2  ;;  %v1543_v1 = vrot.slane %v1542_v56, 2  ;;  %v1555_v2 = vrot.slane %v1554_v57, 2  ;;  %v1559_v3 = vrot.slane %v1531_v59, 4 }
 0x361   :  { %v1565_v4 = vrot.slane %v1532_v61, 4  ;;  %v1577_v5 = vrot.slane %v1534_v63, 4 }
 0x362   :  { %v1538_v6 = vadd.f32 %v1537_v0, %v1536_v55  ;;  %v1544_v7 = vadd.f32 %v1543_v1, %v1542_v56  ;;  %v1556_v8 = vadd.f32 %v1555_v2, %v1554_v57  ;;  %v1560_v10 = vadd.f32 %v1559_v3, %v1531_v59  ;;  %v8135_v56 = vld [vmem:[#allocation6 + $0x200] ss:$16 sps:$4 sm:$0xff]   ;;  %v8138_v57 = vld [vmem:[#allocation6 + $0x208] ss:$16 sps:$4 sm:$0xff]   ;;  %v8149_v1 = vld [vmem:[#allocation6 + $0x244] ss:$16 sps:$4 sm:$0xff]  }
 0x363   :  { %v1566_v11 = vadd.f32 %v1565_v4, %v1532_v61  ;;  %v1578_v12 = vadd.f32 %v1577_v5, %v1534_v63  ;;  %v8146_v61 = vld [vmem:[#allocation6 + $0x22c] ss:$16 sps:$4 sm:$0xff]   ;;  %v8141_v63 = vld [vmem:[#allocation6 + $0x220] ss:$16 sps:$4 sm:$0xff]   ;;  %v8144_v0 = vld [vmem:[#allocation6 + $0x228] ss:$16 sps:$4 sm:$0xff]  }
 0x364   :  { %v1539_v13 = vrot.slane %v1538_v6, 1  ;;  %v1545_v14 = vrot.slane %v1544_v7, 1  ;;  %v1557_v15 = vrot.slane %v1556_v8, 1  ;;  %v1561_v16 = vrot.slane %v1560_v10, 2  ;;  %v8152_v2 = vld [vmem:[#allocation6 + $0x24c] ss:$16 sps:$4 sm:$0xff]  }
 0x365   :  { %v1567_v18 = vrot.slane %v1566_v11, 2  ;;  %v1579_v19 = vrot.slane %v1578_v12, 2  ;;  %v8147_v3 = vld [vmem:[#allocation6 + $0x240] ss:$16 sps:$4 sm:$0xff]   ;;  %v8150_v4 = vld [vmem:[#allocation6 + $0x248] ss:$16 sps:$4 sm:$0xff]  }
 0x366   :  { %v1546_v20 = vadd.f32 %v1545_v14, %v1544_v7  ;;  %v1540_v21 = vadd.f32 %v1539_v13, %v1538_v6  ;;  %v1562_v22 = vadd.f32 %v1561_v16, %v1560_v10  ;;  %v1558_v25 = vadd.f32 %v1557_v15, %v1556_v8  ;;  %v8155_v5 = vld [vmem:[#allocation6 + $0x264] ss:$16 sps:$4 sm:$0xff]   ;;  %v8158_v6 = vld [vmem:[#allocation6 + $0x26c] ss:$16 sps:$4 sm:$0xff]   ;;  %v8153_v7 = vld [vmem:[#allocation6 + $0x260] ss:$16 sps:$4 sm:$0xff]  }
 0x367   :  { %v1568_v23 = vadd.f32 %v1567_v18, %v1566_v11  ;;  %v1580_v24 = vadd.f32 %v1579_v19, %v1578_v12  ;;  %v8156_v8 = vld [vmem:[#allocation6 + $0x268] ss:$16 sps:$4 sm:$0xff]   ;;  %v8161_v10 = vld [vmem:[#allocation6 + $0x284] ss:$16 sps:$4 sm:$0xff]   ;;  %v8164_v11 = vld [vmem:[#allocation6 + $0x28c] ss:$16 sps:$4 sm:$0xff]  }
 0x368   :  { %v1563_v26 = vrot.slane %v1562_v22, 1  ;;  %v1584_v29 = vpack.c.bf16 %v1546_v20, %v1546_v20  ;;  %v1583_v30 = vpack.c.bf16 %v1540_v21, %v1540_v21  ;;  %v1586_v34 = vpack.c.bf16 %v1558_v25, %v1558_v25  ;;  %v8159_v12 = vld [vmem:[#allocation6 + $0x280] ss:$16 sps:$4 sm:$0xff]   ;;  %v8162_v13 = vld [vmem:[#allocation6 + $0x288] ss:$16 sps:$4 sm:$0xff]  }
 0x369   :  { %v1569_v27 = vrot.slane %v1568_v23, 1  ;;  %v1581_v28 = vrot.slane %v1580_v24, 1  ;;  %v8167_v14 = vld [vmem:[#allocation6 + $0x2a4] ss:$16 sps:$4 sm:$0xff]   ;;  %v8170_v15 = vld [vmem:[#allocation6 + $0x2ac] ss:$16 sps:$4 sm:$0xff]  }
 0x36a   :  { %v1564_v31 = vadd.f32 %v1563_v26, %v1562_v22  ;;  %v1750_v40 = vunpack.c.l.b16 %v1584_v29  ;;  %v1749_v42 = vunpack.c.l.b16 %v1583_v30  ;;  %v1752_v45 = vunpack.c.l.b16 %v1586_v34  ;;  %v8165_v16 = vld [vmem:[#allocation6 + $0x2a0] ss:$16 sps:$4 sm:$0xff]   ;;  %v8168_v18 = vld [vmem:[#allocation6 + $0x2a8] ss:$16 sps:$4 sm:$0xff]   ;;  %v8173_v19 = vld [vmem:[#allocation6 + $0x2c4] ss:$16 sps:$4 sm:$0xff]  }
 0x36b   :  { %v1570_v32 = vadd.f32 %v1569_v27, %v1568_v23  ;;  %v1582_v33 = vadd.f32 %v1581_v28, %v1580_v24  ;;  %v8176_v20 = vld [vmem:[#allocation6 + $0x2cc] ss:$16 sps:$4 sm:$0xff]   ;;  %v8171_v21 = vld [vmem:[#allocation6 + $0x2c0] ss:$16 sps:$4 sm:$0xff]   ;;  %v8174_v22 = vld [vmem:[#allocation6 + $0x2c8] ss:$16 sps:$4 sm:$0xff]  }
 0x36c   :  { %v1587_v35 = vpack.c.bf16 %v1564_v31, %v1564_v31  ;;  %v8179_v23 = vld [vmem:[#allocation6 + $0x2e4] ss:$16 sps:$4 sm:$0xff]   ;;  %v8182_v24 = vld [vmem:[#allocation6 + $0x2ec] ss:$16 sps:$4 sm:$0xff]   ;;  %v8177_v29 = vld [vmem:[#allocation6 + $0x2e0] ss:$16 sps:$4 sm:$0xff]  }
 0x36d   :  { %v1588_v36 = vpack.c.bf16 %v1570_v32, %v1570_v32  ;;  %v1590_v39 = vpack.c.bf16 %v1582_v33, %v1582_v33  ;;  %v8969_v25 = vld [vmem:[%s10393_s23 + $0x30] sm:$0xff]  ;;  %v8180_v30 = vld [vmem:[#allocation6 + $0x2e8] ss:$16 sps:$4 sm:$0xff]   ;;  %v8188_v32 = vld [vmem:[#allocation6 + $0x30c] ss:$16 sps:$4 sm:$0xff]  }
 0x36e   :  { %v1753_v43 = vunpack.c.l.b16 %v1587_v35  ;;  %v1533_v26 = vmul.f32 %v8969_v25, %v9883_v52  ;;  %v8970_v27 = vld [vmem:[%s10393_s23 + $0x10] sm:$0xff]  ;;  %v8186_v52 = vld [vmem:[#allocation6 + $0x308] ss:$16 sps:$4 sm:$0xff]   ;;  %v8236_v25 = vld [vmem:[#allocation2 + $0xc] ss:$16 sps:$4 sm:$0xff]  }
 0x36f   :  { %v1754_v41 = vunpack.c.l.b16 %v1588_v36  ;;  %v1756_v44 = vunpack.c.l.b16 %v1590_v39  ;;  %v1529_v28 = vmul.f32 %v8970_v27, %v9869_v38  ;;  %v8185_v31 = vld [vmem:[#allocation6 + $0x304] ss:$16 sps:$4 sm:$0xff]   ;;  %v8183_v35 = vld [vmem:[#allocation6 + $0x300] ss:$16 sps:$4 sm:$0xff]   ;;  %v8194_v39 = vld [vmem:[#allocation6 + $0x32c] ss:$16 sps:$4 sm:$0xff]  }
 0x370   :  { %v1758_v47 = vsel %vm1757_vm1, %v1753_v43, %v1749_v42  ;;  %v1571_v33 = vrot.slane %v1533_v26, 4  ;;  %v8191_v36 = vld [vmem:[#allocation6 + $0x324] ss:$16 sps:$4 sm:$0xff]   ;;  %v8192_v42 = vld [vmem:[#allocation6 + $0x328] ss:$16 sps:$4 sm:$0xff]  }
 0x371   :  { %v1759_v46 = vsel %vm1757_vm1, %v1754_v41, %v1750_v40  ;;  %v1762_v58 = vpack.c.b16 %v1758_v47, %v1758_v47  ;;  %v1761_v59 = vsel %vm1757_vm1, %v1756_v44, %v1752_v45  ;;  %v1547_v34 = vrot.slane %v1529_v28, 4  ;;  %v8189_v41 = vld [vmem:[#allocation6 + $0x320] ss:$16 sps:$4 sm:$0xff]   ;;  %v8197_v43 = vld [vmem:[#allocation6 + $0x344] ss:$16 sps:$4 sm:$0xff]   ;;  %v135_v27 = vld [vmem:[%s10394_s25 + $0x8] sm:$0xff] }
 0x372   :  { %v1763_v55 = vpack.c.b16 %v1759_v46, %v1759_v46  ;;  %v1765_v62 = vpack.c.b16 %v1761_v59, %v1761_v59  ;;  %v1572_v40 = vadd.f32 %v1571_v33, %v1533_v26  ;;  %v8200_v44 = vld [vmem:[#allocation6 + $0x34c] ss:$16 sps:$4 sm:$0xff]   ;;  %v8195_v47 = vld [vmem:[#allocation6 + $0x340] ss:$16 sps:$4 sm:$0xff]  }
 0x373   :  { %v1548_v38 = vadd.f32 %v1547_v34, %v1529_v28  ;;  %v139_v28 = vld [vmem:[%s10394_s25 + $0x28] sm:$0xff] }
 0x374   :  { %2442 = vmatprep.mubr.bf16.mxu0 %v1763_v55  ;;  %2524 = vmatprep.mubr.bf16.mxu1 %v1763_v55  ;;  %v1573_v45 = vrot.slane %v1572_v40, 2  ;;  %v8198_v55 = vld [vmem:[#allocation6 + $0x348] ss:$16 sps:$4 sm:$0xff]   ;;  %v8242_v33 = vld [vmem:[#allocation2 + $0x2c] ss:$16 sps:$4 sm:$0xff]   ;;  %v155_v34 = vpack.c.bf16 %v139_v28, %v135_v27 }
 0x375   :  { %2443 = vmatmul.mubr.bf16.vlgmr.msra.gmra.mrb[8].mxu0 %v1762_v58  ;;  %2525 = vmatmul.mubr.bf16.vlgmr.msra.gmra.mrb[8].mxu1 %v1762_v58  ;;  %v1549_v46 = vrot.slane %v1548_v38, 2  ;;  %v8314_v27 = vld [vmem:[#allocation2 + $0x1ac] ss:$16 sps:$4 sm:$0xff]   ;;  %v8309_v28 = vld [vmem:[#allocation2 + $0x1a0] ss:$16 sps:$4 sm:$0xff]  }
 0x376   :  { %2452 = vmatpush1.bf16.msra.mxu0 %v8135_v56  ;;  %2534 = vmatpush1.bf16.msra.mxu1 %v8138_v57  ;;  %v8203_v56 = vld [vmem:[#allocation6 + $0x364] ss:$16 sps:$4 sm:$0xff]   ;;  %v8206_v57 = vld [vmem:[#allocation6 + $0x36c] ss:$16 sps:$4 sm:$0xff]   ;;  %v1574_v58 = vadd.f32 %v1573_v45, %v1572_v40  ;;  %v8243_v40 = vld [vmem:[#allocation2 + $0x40] ss:$16 sps:$4 sm:$0xff]  }
 0x377   :  { %2483 = vmatprep.mubr.bf16.mxu0 %v1765_v62  ;;  %2565 = vmatprep.mubr.bf16.mxu1 %v1765_v62  ;;  %v1550_v59 = vadd.f32 %v1549_v46, %v1548_v38  ;;  %v8209_v62 = vld [vmem:[#allocation6 + $0x384] ss:$16 sps:$4 sm:$0xff]   ;;  %v8246_v38 = vld [vmem:[#allocation2 + $0x48] ss:$16 sps:$4 sm:$0xff]   ;;  %v8260_v46 = vld [vmem:[#allocation2 + $0x8c] ss:$16 sps:$4 sm:$0xff]  }
 0x378   :  { %2453 = vmatprep.subr.bf16.mxu0 %v8143_v60  ;;  %2535 = vmatprep.subr.bf16.mxu1 %v8146_v61  ;;  %v8201_v60 = vld [vmem:[#allocation6 + $0x360] ss:$16 sps:$4 sm:$0xff]   ;;  %v8204_v61 = vld [vmem:[#allocation6 + $0x368] ss:$16 sps:$4 sm:$0xff]   ;;  %v8257_v45 = vld [vmem:[#allocation2 + $0x84] ss:$16 sps:$4 sm:$0xff]  }
 0x37a   :  { %2454 = vmatpush1.bf16.msra.mxu0 %v8141_v63  ;;  %2536 = vmatpush1.bf16.msra.mxu1 %v8144_v0  ;;  %v8212_v63 = vld [vmem:[#allocation6 + $0x38c] ss:$16 sps:$4 sm:$0xff]   ;;  %v1575_v0 = vrot.slane %v1574_v58, 1 }
 0x37b   :  { %2455 = vmatprep.subr.bf16.mxu0 %v8149_v1  ;;  %2537 = vmatprep.subr.bf16.mxu1 %v8152_v2  ;;  %v1551_v1 = vrot.slane %v1550_v59, 1  ;;  %v8207_v2 = vld [vmem:[#allocation6 + $0x380] ss:$16 sps:$4 sm:$0xff]  }
 0x37e   :  { %2456 = vmatpush1.bf16.msra.mxu0 %v8147_v3  ;;  %2538 = vmatpush1.bf16.msra.mxu1 %v8150_v4  ;;  %v8210_v3 = vld [vmem:[#allocation6 + $0x388] ss:$16 sps:$4 sm:$0xff]   ;;  %v8215_v4 = vld [vmem:[#allocation6 + $0x3a4] ss:$16 sps:$4 sm:$0xff]  }
 0x37f   :  { %2457 = vmatprep.subr.bf16.mxu0 %v8155_v5  ;;  %2539 = vmatprep.subr.bf16.mxu1 %v8158_v6  ;;  %v8218_v5 = vld [vmem:[#allocation6 + $0x3ac] ss:$16 sps:$4 sm:$0xff]   ;;  %v1576_v6 = vadd.f32 %v1575_v0, %v1574_v58  ;;  %v8261_v58 = vld [vmem:[#allocation2 + $0xa0] ss:$16 sps:$4 sm:$0xff]   ;;  %v8275_v0 = vld [vmem:[#allocation2 + $0xe4] ss:$16 sps:$4 sm:$0xff]  }
 0x382   :  { %2458 = vmatpush1.bf16.msra.mxu0 %v8153_v7  ;;  %2540 = vmatpush1.bf16.msra.mxu1 %v8156_v8  ;;  %v1552_v7 = vadd.f32 %v1551_v1, %v1550_v59  ;;  %v8213_v8 = vld [vmem:[#allocation6 + $0x3a0] ss:$16 sps:$4 sm:$0xff]   ;;  %v8264_v59 = vld [vmem:[#allocation2 + $0xa8] ss:$16 sps:$4 sm:$0xff]   ;;  %v8278_v1 = vld [vmem:[#allocation2 + $0xec] ss:$16 sps:$4 sm:$0xff]  }
 0x383   :  { %2459 = vmatprep.subr.bf16.mxu0 %v8161_v10  ;;  %2541 = vmatprep.subr.bf16.mxu1 %v8164_v11  ;;  %v8216_v10 = vld [vmem:[#allocation6 + $0x3a8] ss:$16 sps:$4 sm:$0xff]   ;;  %v8221_v11 = vld [vmem:[#allocation6 + $0x3c4] ss:$16 sps:$4 sm:$0xff]  }
 0x386   :  { %2460 = vmatpush1.bf16.msra.mxu0 %v8159_v12  ;;  %2542 = vmatpush1.bf16.msra.mxu1 %v8162_v13  ;;  %v8224_v12 = vld [vmem:[#allocation6 + $0x3cc] ss:$16 sps:$4 sm:$0xff]   ;;  %v1589_v13 = vpack.c.bf16 %v1576_v6, %v1576_v6  ;;  %v8279_v6 = vld [vmem:[#allocation2 + $0x100] ss:$16 sps:$4 sm:$0xff]  }
 0x387   :  { %2461 = vmatprep.subr.bf16.mxu0 %v8167_v14  ;;  %2543 = vmatprep.subr.bf16.mxu1 %v8170_v15  ;;  %v1585_v14 = vpack.c.bf16 %v1552_v7, %v1552_v7  ;;  %v8219_v15 = vld [vmem:[#allocation6 + $0x3c0] ss:$16 sps:$4 sm:$0xff]   ;;  %v8282_v7 = vld [vmem:[#allocation2 + $0x108] ss:$16 sps:$4 sm:$0xff]  }
 0x38a   :  { %2462 = vmatpush1.bf16.msra.mxu0 %v8165_v16  ;;  %2544 = vmatpush1.bf16.msra.mxu1 %v8168_v18  ;;  %v8222_v16 = vld [vmem:[#allocation6 + $0x3c8] ss:$16 sps:$4 sm:$0xff]   ;;  %v8227_v18 = vld [vmem:[#allocation6 + $0x3e4] ss:$16 sps:$4 sm:$0xff]  }
 0x38b   :  { %2463 = vmatprep.subr.bf16.mxu0 %v8173_v19  ;;  %2545 = vmatprep.subr.bf16.mxu1 %v8176_v20  ;;  %v8230_v19 = vld [vmem:[#allocation6 + $0x3ec] ss:$16 sps:$4 sm:$0xff]   ;;  %v1755_v20 = vunpack.c.l.b16 %v1589_v13  ;;  %v8293_v13 = vld [vmem:[#allocation2 + $0x144] ss:$16 sps:$4 sm:$0xff]  }
 0x38e   :  { %2464 = vmatpush1.bf16.msra.mxu0 %v8171_v21  ;;  %2546 = vmatpush1.bf16.msra.mxu1 %v8174_v22  ;;  %v8225_v21 = vld [vmem:[#allocation6 + $0x3e0] ss:$16 sps:$4 sm:$0xff]   ;;  %v8228_v22 = vld [vmem:[#allocation6 + $0x3e8] ss:$16 sps:$4 sm:$0xff]  }
 0x38f   :  { %2465 = vmatprep.subr.bf16.mxu0 %v8179_v23  ;;  %2547 = vmatprep.subr.bf16.mxu1 %v8182_v24  ;;  %v1751_v23 = vunpack.c.l.b16 %v1585_v14  ;;  %v8233_v24 = vld [vmem:[#allocation2 + $0x4] ss:$16 sps:$4 sm:$0xff]   ;;  %v8296_v14 = vld [vmem:[#allocation2 + $0x14c] ss:$16 sps:$4 sm:$0xff]  }
 0x391   :  { %v1760_v26 = vsel %vm1757_vm1, %v1755_v20, %v1751_v23  ;;  %v8297_v20 = vld [vmem:[#allocation2 + $0x160] ss:$16 sps:$4 sm:$0xff]   ;;  %v8308_v23 = vld [vmem:[#allocation2 + $0x18c] ss:$16 sps:$4 sm:$0xff]  }
 0x392   :  { %2466 = vmatpush1.bf16.msra.mxu0 %v8177_v29  ;;  %2548 = vmatpush1.bf16.msra.mxu1 %v8180_v30  ;;  %v8231_v29 = vld [vmem:[#allocation2] ss:$16 sps:$4 sm:$0xff]   ;;  %v8234_v30 = vld [vmem:[#allocation2 + $0x8] ss:$16 sps:$4 sm:$0xff]  }
 0x393   :  { %2467 = vmatprep.subr.bf16.mxu0 %v8185_v31  ;;  %2549 = vmatprep.subr.bf16.mxu1 %v8188_v32  ;;  %v1764_v31 = vpack.c.b16 %v1760_v26, %v1760_v26  ;;  %v8239_v32 = vld [vmem:[#allocation2 + $0x24] ss:$16 sps:$4 sm:$0xff]  }
 0x394   :  { %v8311_v26 = vld [vmem:[#allocation2 + $0x1a4] ss:$16 sps:$4 sm:$0xff]  }
 0x396   :  { %2468 = vmatpush1.bf16.msra.mxu0 %v8183_v35  ;;  %2550 = vmatpush1.bf16.msra.mxu1 %v8186_v52  ;;  %v8237_v35 = vld [vmem:[#allocation2 + $0x20] ss:$16 sps:$4 sm:$0xff]   ;;  %v8240_v52 = vld [vmem:[#allocation2 + $0x28] ss:$16 sps:$4 sm:$0xff]  }
 0x397   :  { %2469 = vmatprep.subr.bf16.mxu0 %v8191_v36  ;;  %2551 = vmatprep.subr.bf16.mxu1 %v8194_v39  ;;  %v8245_v36 = vld [vmem:[#allocation2 + $0x44] ss:$16 sps:$4 sm:$0xff]   ;;  %v8248_v39 = vld [vmem:[#allocation2 + $0x4c] ss:$16 sps:$4 sm:$0xff]  }
 0x39a   :  { %2470 = vmatpush1.bf16.msra.mxu0 %v8189_v41  ;;  %2552 = vmatpush1.bf16.msra.mxu1 %v8192_v42  ;;  %v8251_v41 = vld [vmem:[#allocation2 + $0x64] ss:$16 sps:$4 sm:$0xff]   ;;  %v8254_v42 = vld [vmem:[#allocation2 + $0x6c] ss:$16 sps:$4 sm:$0xff]  }
 0x39b   :  { %2471 = vmatprep.subr.bf16.mxu0 %v8197_v43  ;;  %2553 = vmatprep.subr.bf16.mxu1 %v8200_v44  ;;  %v8249_v43 = vld [vmem:[#allocation2 + $0x60] ss:$16 sps:$4 sm:$0xff]   ;;  %v8252_v44 = vld [vmem:[#allocation2 + $0x68] ss:$16 sps:$4 sm:$0xff]  }
 0x39e   :  { %2472 = vmatpush1.bf16.msra.mxu0 %v8195_v47  ;;  %2554 = vmatpush1.bf16.msra.mxu1 %v8198_v55  ;;  %v8255_v47 = vld [vmem:[#allocation2 + $0x80] ss:$16 sps:$4 sm:$0xff]   ;;  %v8258_v55 = vld [vmem:[#allocation2 + $0x88] ss:$16 sps:$4 sm:$0xff]  }
 0x39f   :  { %2473 = vmatprep.subr.bf16.mxu0 %v8203_v56  ;;  %2555 = vmatprep.subr.bf16.mxu1 %v8206_v57  ;;  %v8263_v56 = vld [vmem:[#allocation2 + $0xa4] ss:$16 sps:$4 sm:$0xff]   ;;  %v8266_v57 = vld [vmem:[#allocation2 + $0xac] ss:$16 sps:$4 sm:$0xff]  }
 0x3a2   :  { %2474 = vmatpush1.bf16.msra.mxu0 %v8201_v60  ;;  %2556 = vmatpush1.bf16.msra.mxu1 %v8204_v61  ;;  %v8269_v60 = vld [vmem:[#allocation2 + $0xc4] ss:$16 sps:$4 sm:$0xff]   ;;  %v8272_v61 = vld [vmem:[#allocation2 + $0xcc] ss:$16 sps:$4 sm:$0xff]  }
 0x3a3   :  { %2475 = vmatprep.subr.bf16.mxu0 %v8209_v62  ;;  %2557 = vmatprep.subr.bf16.mxu1 %v8212_v63  ;;  %v8267_v62 = vld [vmem:[#allocation2 + $0xc0] ss:$16 sps:$4 sm:$0xff]   ;;  %v8270_v63 = vld [vmem:[#allocation2 + $0xc8] ss:$16 sps:$4 sm:$0xff]  }
 0x3a6   :  { %2476 = vmatpush1.bf16.msra.mxu0 %v8207_v2  ;;  %2558 = vmatpush1.bf16.msra.mxu1 %v8210_v3  ;;  %v8273_v2 = vld [vmem:[#allocation2 + $0xe0] ss:$16 sps:$4 sm:$0xff]   ;;  %v8276_v3 = vld [vmem:[#allocation2 + $0xe8] ss:$16 sps:$4 sm:$0xff]  }
 0x3a7   :  { %2477 = vmatprep.subr.bf16.mxu0 %v8215_v4  ;;  %2559 = vmatprep.subr.bf16.mxu1 %v8218_v5  ;;  %v8281_v4 = vld [vmem:[#allocation2 + $0x104] ss:$16 sps:$4 sm:$0xff]   ;;  %v8284_v5 = vld [vmem:[#allocation2 + $0x10c] ss:$16 sps:$4 sm:$0xff]  }
 0x3aa   :  { %2478 = vmatpush1.bf16.msra.mxu0 %v8213_v8  ;;  %2560 = vmatpush1.bf16.msra.mxu1 %v8216_v10  ;;  %v8287_v8 = vld [vmem:[#allocation2 + $0x124] ss:$16 sps:$4 sm:$0xff]   ;;  %v8290_v10 = vld [vmem:[#allocation2 + $0x12c] ss:$16 sps:$4 sm:$0xff]  }
 0x3ab   :  { %2479 = vmatprep.subr.bf16.mxu0 %v8221_v11  ;;  %2561 = vmatprep.subr.bf16.mxu1 %v8224_v12  ;;  %v8285_v11 = vld [vmem:[#allocation2 + $0x120] ss:$16 sps:$4 sm:$0xff]   ;;  %v8288_v12 = vld [vmem:[#allocation2 + $0x128] ss:$16 sps:$4 sm:$0xff]  }
 0x3ae   :  { %2480 = vmatpush1.bf16.msra.mxu0 %v8219_v15  ;;  %2562 = vmatpush1.bf16.msra.mxu1 %v8222_v16  ;;  %v8291_v15 = vld [vmem:[#allocation2 + $0x140] ss:$16 sps:$4 sm:$0xff]   ;;  %v8294_v16 = vld [vmem:[#allocation2 + $0x148] ss:$16 sps:$4 sm:$0xff]  }
 0x3af   :  { %2481 = vmatprep.subr.bf16.mxu0 %v8227_v18  ;;  %2563 = vmatprep.subr.bf16.mxu1 %v8230_v19  ;;  %v8299_v18 = vld [vmem:[#allocation2 + $0x164] ss:$16 sps:$4 sm:$0xff]   ;;  %v8302_v19 = vld [vmem:[#allocation2 + $0x16c] ss:$16 sps:$4 sm:$0xff]  }
 0x3b2   :  { %2482 = vmatpush1.bf16.msra.mxu0 %v8225_v21  ;;  %2564 = vmatpush1.bf16.msra.mxu1 %v8228_v22  ;;  %v8300_v21 = vld [vmem:[#allocation2 + $0x168] ss:$16 sps:$4 sm:$0xff]   ;;  %v8305_v22 = vld [vmem:[#allocation2 + $0x184] ss:$16 sps:$4 sm:$0xff]  }
 0x3b3   :  { %3364 = vmatprep.subr.bf16.mxu0 %v8233_v24  ;;  %3470 = vmatprep.subr.bf16.mxu1 %v8236_v25  ;;  %v8303_v24 = vld [vmem:[#allocation2 + $0x180] ss:$16 sps:$4 sm:$0xff]   ;;  %v8306_v25 = vld [vmem:[#allocation2 + $0x188] ss:$16 sps:$4 sm:$0xff]  }
 0x3b5   :  { %2484 = vmatmul.mubr.bf16.vlgmr.msra.gmra.mrb[8].mxu0 %v1764_v31  ;;  %2566 = vmatmul.mubr.bf16.vlgmr.msra.gmra.mrb[8].mxu1 %v1764_v31  ;;  %v8320_v31 = vld [vmem:[#allocation2 + $0x1cc] ss:$16 sps:$4 sm:$0xff]  }
 0x3b6   :  { %3365 = vmatpush1.bf16.msra.mxu0 %v8231_v29  ;;  %3471 = vmatpush1.bf16.msra.mxu1 %v8234_v30  ;;  %v8312_v29 = vld [vmem:[#allocation2 + $0x1a8] ss:$16 sps:$4 sm:$0xff]   ;;  %v8317_v30 = vld [vmem:[#allocation2 + $0x1c4] ss:$16 sps:$4 sm:$0xff]  }
 0x3b7   :  { %3366 = vmatprep.subr.bf16.mxu0 %v8239_v32  ;;  %3472 = vmatprep.subr.bf16.mxu1 %v8242_v33  ;;  %v8315_v32 = vld [vmem:[#allocation2 + $0x1c0] ss:$16 sps:$4 sm:$0xff]   ;;  %v8318_v33 = vld [vmem:[#allocation2 + $0x1c8] ss:$16 sps:$4 sm:$0xff]  }
 0x3b8   :  { %3396 = vmatprep.mubr.bf16.mxu0 %v155_v34  ;;  %3502 = vmatprep.mubr.bf16.mxu1 %v155_v34  ;;  %v8323_v34 = vld [vmem:[#allocation2 + $0x1e4] ss:$16 sps:$4 sm:$0xff]  }
 0x3ba   :  { %3367 = vmatpush1.bf16.msra.mxu0 %v8237_v35  ;;  %3473 = vmatpush1.bf16.msra.mxu1 %v8240_v52  ;;  %v8326_v35 = vld [vmem:[#allocation2 + $0x1ec] ss:$16 sps:$4 sm:$0xff]   ;;  %v8321_v52 = vld [vmem:[#allocation2 + $0x1e0] ss:$16 sps:$4 sm:$0xff]  }
 0x3bb   :  { %3368 = vmatprep.subr.bf16.mxu0 %v8245_v36  ;;  %3474 = vmatprep.subr.bf16.mxu1 %v8248_v39  ;;  %v8324_v36 = vld [vmem:[#allocation2 + $0x1e8] ss:$16 sps:$4 sm:$0xff]   ;;  %v134_v39 = vld [vmem:[%s10394_s25] sm:$0xff] }
 0x3be   :  { %3369 = vmatpush1.bf16.msra.mxu0 %v8243_v40  ;;  %3475 = vmatpush1.bf16.msra.mxu1 %v8246_v38  ;;  %v138_v40 = vld [vmem:[%s10394_s25 + $0x20] sm:$0xff] }
 0x3bf   :  { %3370 = vmatprep.subr.bf16.mxu0 %v8251_v41  ;;  %3476 = vmatprep.subr.bf16.mxu1 %v8254_v42  ;;  %v8329_v38 = vld [vmem:[#allocation2 + $0x204] ss:$16 sps:$4 sm:$0xff]   ;;  %v8332_v41 = vld [vmem:[#allocation2 + $0x20c] ss:$16 sps:$4 sm:$0xff]   ;;  %v154_v42 = vpack.c.bf16 %v138_v40, %v134_v39  ;;  %v8390_v39 = vld [vmem:[#allocation2 + $0x348] ss:$16 sps:$4 sm:$0xff]  }
 0x3c0   :  { %v8395_v40 = vld [vmem:[#allocation2 + $0x364] ss:$16 sps:$4 sm:$0xff]  }
 0x3c2   :  { %3371 = vmatpush1.bf16.msra.mxu0 %v8249_v43  ;;  %3477 = vmatpush1.bf16.msra.mxu1 %v8252_v44  ;;  %v143_v43 = vld [vmem:[%s10394_s25 + $0x48] sm:$0xff] }
 0x3c3   :  { %3372 = vmatprep.subr.bf16.mxu0 %v8257_v45  ;;  %3478 = vmatprep.subr.bf16.mxu1 %v8260_v46  ;;  %v147_v44 = vld [vmem:[%s10394_s25 + $0x68] sm:$0xff]  ;;  %v8327_v45 = vld [vmem:[#allocation2 + $0x200] ss:$16 sps:$4 sm:$0xff]  }
 0x3c4   :  { %v8330_v46 = vld [vmem:[#allocation2 + $0x208] ss:$16 sps:$4 sm:$0xff]  }
 0x3c6   :  { %3373 = vmatpush1.bf16.msra.mxu0 %v8255_v47  ;;  %3479 = vmatpush1.bf16.msra.mxu1 %v8258_v55  ;;  %v8335_v47 = vld [vmem:[#allocation2 + $0x224] ss:$16 sps:$4 sm:$0xff]   ;;  %v8338_v55 = vld [vmem:[#allocation2 + $0x22c] ss:$16 sps:$4 sm:$0xff]  }
 0x3c7   :  { %3374 = vmatprep.subr.bf16.mxu0 %v8263_v56  ;;  %3480 = vmatprep.subr.bf16.mxu1 %v8266_v57  ;;  %v159_v56 = vpack.c.bf16 %v147_v44, %v143_v43  ;;  %v8333_v57 = vld [vmem:[#allocation2 + $0x220] ss:$16 sps:$4 sm:$0xff]   ;;  %v8401_v43 = vld [vmem:[#allocation2 + $0x384] ss:$16 sps:$4 sm:$0xff]   ;;  %v8404_v44 = vld [vmem:[#allocation2 + $0x38c] ss:$16 sps:$4 sm:$0xff]  }
 0x3ca   :  { %3375 = vmatpush1.bf16.msra.mxu0 %v8261_v58  ;;  %3481 = vmatpush1.bf16.msra.mxu1 %v8264_v59  ;;  %v8336_v58 = vld [vmem:[#allocation2 + $0x228] ss:$16 sps:$4 sm:$0xff]   ;;  %v142_v59 = vld [vmem:[%s10394_s25 + $0x40] sm:$0xff] }
 0x3cb   :  { %3376 = vmatprep.subr.bf16.mxu0 %v8269_v60  ;;  %3482 = vmatprep.subr.bf16.mxu1 %v8272_v61  ;;  %v146_v60 = vld [vmem:[%s10394_s25 + $0x60] sm:$0xff] }
 0x3cc   :  { %v8341_v61 = vld [vmem:[#allocation2 + $0x244] ss:$16 sps:$4 sm:$0xff]  }
 0x3ce   :  { %3377 = vmatpush1.bf16.msra.mxu0 %v8267_v62  ;;  %3483 = vmatpush1.bf16.msra.mxu1 %v8270_v63  ;;  %v8344_v62 = vld [vmem:[#allocation2 + $0x24c] ss:$16 sps:$4 sm:$0xff]   ;;  %v158_v63 = vpack.c.bf16 %v146_v60, %v142_v59  ;;  %v8411_v60 = vld [vmem:[#allocation2 + $0x3c0] ss:$16 sps:$4 sm:$0xff]  }
 0x3cf   :  { %3378 = vmatprep.subr.bf16.mxu0 %v8275_v0  ;;  %3484 = vmatprep.subr.bf16.mxu1 %v8278_v1  ;;  %v137_v0 = vld [vmem:[%s10394_s25 + $0x18] sm:$0xff] }
 0x3d0   :  { %v141_v1 = vld [vmem:[%s10394_s25 + $0x38] sm:$0xff] }
 0x3d1   :  { %v8416_v59 = vld [vmem:[#allocation2 + $0x3cc] ss:$16 sps:$4 sm:$0xff]  }
 0x3d2   :  { %3379 = vmatpush1.bf16.msra.mxu0 %v8273_v2  ;;  %3485 = vmatpush1.bf16.msra.mxu1 %v8276_v3  ;;  %v8339_v2 = vld [vmem:[#allocation2 + $0x240] ss:$16 sps:$4 sm:$0xff]   ;;  %v8342_v3 = vld [vmem:[#allocation2 + $0x248] ss:$16 sps:$4 sm:$0xff]  }
 0x3d3   :  { %3380 = vmatprep.subr.bf16.mxu0 %v8281_v4  ;;  %3486 = vmatprep.subr.bf16.mxu1 %v8284_v5  ;;  %v8347_v4 = vld [vmem:[#allocation2 + $0x264] ss:$16 sps:$4 sm:$0xff]   ;;  %v8350_v5 = vld [vmem:[#allocation2 + $0x26c] ss:$16 sps:$4 sm:$0xff]  }
 0x3d6   :  { %3381 = vmatpush1.bf16.msra.mxu0 %v8279_v6  ;;  %3487 = vmatpush1.bf16.msra.mxu1 %v8282_v7  ;;  %v157_v6 = vpack.c.bf16 %v141_v1, %v137_v0  ;;  %v8345_v7 = vld [vmem:[#allocation2 + $0x260] ss:$16 sps:$4 sm:$0xff]   ;;  %v8420_v1 = vld [vmem:[#allocation2 + $0x3e8] ss:$16 sps:$4 sm:$0xff]  }
 0x3d7   :  { %3382 = vmatprep.subr.bf16.mxu0 %v8287_v8  ;;  %3488 = vmatprep.subr.bf16.mxu1 %v8290_v10  ;;  %v8348_v8 = vld [vmem:[#allocation2 + $0x268] ss:$16 sps:$4 sm:$0xff]   ;;  %v8353_v10 = vld [vmem:[#allocation2 + $0x284] ss:$16 sps:$4 sm:$0xff]   ;;  %v8417_v0 = vld [vmem:[#allocation2 + $0x3e0] ss:$16 sps:$4 sm:$0xff]  }
 0x3da   :  { %3383 = vmatpush1.bf16.msra.mxu0 %v8285_v11  ;;  %3489 = vmatpush1.bf16.msra.mxu1 %v8288_v12  ;;  %v8356_v11 = vld [vmem:[#allocation2 + $0x28c] ss:$16 sps:$4 sm:$0xff]   ;;  %v8351_v12 = vld [vmem:[#allocation2 + $0x280] ss:$16 sps:$4 sm:$0xff]  }
 0x3db   :  { %3384 = vmatprep.subr.bf16.mxu0 %v8293_v13  ;;  %3490 = vmatprep.subr.bf16.mxu1 %v8296_v14  ;;  %v8354_v13 = vld [vmem:[#allocation2 + $0x288] ss:$16 sps:$4 sm:$0xff]   ;;  %v8359_v14 = vld [vmem:[#allocation2 + $0x2a4] ss:$16 sps:$4 sm:$0xff]  }
 0x3de   :  { %3385 = vmatpush1.bf16.msra.mxu0 %v8291_v15  ;;  %3491 = vmatpush1.bf16.msra.mxu1 %v8294_v16  ;;  %v8362_v15 = vld [vmem:[#allocation2 + $0x2ac] ss:$16 sps:$4 sm:$0xff]   ;;  %v8357_v16 = vld [vmem:[#allocation2 + $0x2a0] ss:$16 sps:$4 sm:$0xff]  }
 0x3df   :  { %3386 = vmatprep.subr.bf16.mxu0 %v8299_v18  ;;  %3492 = vmatprep.subr.bf16.mxu1 %v8302_v19  ;;  %v8360_v18 = vld [vmem:[#allocation2 + $0x2a8] ss:$16 sps:$4 sm:$0xff]   ;;  %v8365_v19 = vld [vmem:[#allocation2 + $0x2c4] ss:$16 sps:$4 sm:$0xff]  }
 0x3e2   :  { %3387 = vmatpush1.bf16.msra.mxu0 %v8297_v20  ;;  %3493 = vmatpush1.bf16.msra.mxu1 %v8300_v21  ;;  %v8368_v20 = vld [vmem:[#allocation2 + $0x2cc] ss:$16 sps:$4 sm:$0xff]   ;;  %v8363_v21 = vld [vmem:[#allocation2 + $0x2c0] ss:$16 sps:$4 sm:$0xff]  }
 0x3e3   :  { %3388 = vmatprep.subr.bf16.mxu0 %v8305_v22  ;;  %3494 = vmatprep.subr.bf16.mxu1 %v8308_v23  ;;  %v8366_v22 = vld [vmem:[#allocation2 + $0x2c8] ss:$16 sps:$4 sm:$0xff]   ;;  %v8371_v23 = vld [vmem:[#allocation2 + $0x2e4] ss:$16 sps:$4 sm:$0xff]  }
 0x3e6   :  { %3389 = vmatpush1.bf16.msra.mxu0 %v8303_v24  ;;  %3495 = vmatpush1.bf16.msra.mxu1 %v8306_v25  ;;  %v8374_v24 = vld [vmem:[#allocation2 + $0x2ec] ss:$16 sps:$4 sm:$0xff]   ;;  %v8369_v25 = vld [vmem:[#allocation2 + $0x2e0] ss:$16 sps:$4 sm:$0xff]  }
 0x3e7   :  { %3390 = vmatprep.subr.bf16.mxu0 %v8311_v26  ;;  %3496 = vmatprep.subr.bf16.mxu1 %v8314_v27  ;;  %v8372_v26 = vld [vmem:[#allocation2 + $0x2e8] ss:$16 sps:$4 sm:$0xff]   ;;  %v8377_v27 = vld [vmem:[#allocation2 + $0x304] ss:$16 sps:$4 sm:$0xff]  }
 0x3ea   :  { %3391 = vmatpush1.bf16.msra.mxu0 %v8309_v28  ;;  %3497 = vmatpush1.bf16.msra.mxu1 %v8312_v29  ;;  %v8380_v28 = vld [vmem:[#allocation2 + $0x30c] ss:$16 sps:$4 sm:$0xff]   ;;  %v8375_v29 = vld [vmem:[#allocation2 + $0x300] ss:$16 sps:$4 sm:$0xff]  }
 0x3eb   :  { %3392 = vmatprep.subr.bf16.mxu0 %v8317_v30  ;;  %3498 = vmatprep.subr.bf16.mxu1 %v8320_v31  ;;  %v8378_v30 = vld [vmem:[#allocation2 + $0x308] ss:$16 sps:$4 sm:$0xff]   ;;  %v8383_v31 = vld [vmem:[#allocation2 + $0x324] ss:$16 sps:$4 sm:$0xff]  }
 0x3ee   :  { %3393 = vmatpush1.bf16.msra.mxu0 %v8315_v32  ;;  %3499 = vmatpush1.bf16.msra.mxu1 %v8318_v33  ;;  %v8386_v32 = vld [vmem:[#allocation2 + $0x32c] ss:$16 sps:$4 sm:$0xff]   ;;  %v8381_v33 = vld [vmem:[#allocation2 + $0x320] ss:$16 sps:$4 sm:$0xff]  }
 0x3ef   :  { %3394 = vmatprep.subr.bf16.mxu0 %v8323_v34  ;;  %3500 = vmatprep.subr.bf16.mxu1 %v8326_v35  ;;  %v8384_v34 = vld [vmem:[#allocation2 + $0x328] ss:$16 sps:$4 sm:$0xff]   ;;  %v8389_v35 = vld [vmem:[#allocation2 + $0x344] ss:$16 sps:$4 sm:$0xff]  }
 0x3f2   :  { %3395 = vmatpush1.bf16.msra.mxu0 %v8321_v52  ;;  %3501 = vmatpush1.bf16.msra.mxu1 %v8324_v36  ;;  %v8392_v52 = vld [vmem:[#allocation2 + $0x34c] ss:$16 sps:$4 sm:$0xff]   ;;  %v8387_v36 = vld [vmem:[#allocation2 + $0x340] ss:$16 sps:$4 sm:$0xff]  }
 0x3f3   :  { %3417 = vmatprep.subr.bf16.mxu0 %v8329_v38  ;;  %3523 = vmatprep.subr.bf16.mxu1 %v8332_v41  ;;  %v8398_v38 = vld [vmem:[#allocation2 + $0x36c] ss:$16 sps:$4 sm:$0xff]   ;;  %v8393_v41 = vld [vmem:[#allocation2 + $0x360] ss:$16 sps:$4 sm:$0xff]  }
 0x3f5   :  { %3397 = vmatmul.mubr.bf16.vlgmr.msra.gmra.mrb[12].mxu0 %v154_v42  ;;  %3503 = vmatmul.mubr.bf16.vlgmr.msra.gmra.mrb[12].mxu1 %v154_v42  ;;  %v8396_v42 = vld [vmem:[#allocation2 + $0x368] ss:$16 sps:$4 sm:$0xff]  }
 0x3f6   :  { %3418 = vmatpush1.bf16.msra.mxu0 %v8327_v45  ;;  %3524 = vmatpush1.bf16.msra.mxu1 %v8330_v46  ;;  %v8399_v45 = vld [vmem:[#allocation2 + $0x380] ss:$16 sps:$4 sm:$0xff]   ;;  %v8402_v46 = vld [vmem:[#allocation2 + $0x388] ss:$16 sps:$4 sm:$0xff]  }
 0x3f7   :  { %3419 = vmatprep.subr.bf16.mxu0 %v8335_v47  ;;  %3525 = vmatprep.subr.bf16.mxu1 %v8338_v55  ;;  %v8407_v47 = vld [vmem:[#allocation2 + $0x3a4] ss:$16 sps:$4 sm:$0xff]   ;;  %v8410_v55 = vld [vmem:[#allocation2 + $0x3ac] ss:$16 sps:$4 sm:$0xff]  }
 0x3f8   :  { %3406 = vmatprep.mubr.bf16.mxu0 %v159_v56  ;;  %3512 = vmatprep.mubr.bf16.mxu1 %v159_v56  ;;  %v8405_v56 = vld [vmem:[#allocation2 + $0x3a0] ss:$16 sps:$4 sm:$0xff]  }
 0x3fa   :  { %3420 = vmatpush1.bf16.msra.mxu0 %v8333_v57  ;;  %3526 = vmatpush1.bf16.msra.mxu1 %v8336_v58  ;;  %v8408_v57 = vld [vmem:[#allocation2 + $0x3a8] ss:$16 sps:$4 sm:$0xff]   ;;  %v8413_v58 = vld [vmem:[#allocation2 + $0x3c4] ss:$16 sps:$4 sm:$0xff]  }
 0x3fb   :  { %3421 = vmatprep.subr.bf16.mxu0 %v8341_v61  ;;  %3527 = vmatprep.subr.bf16.mxu1 %v8344_v62  ;;  %v8414_v61 = vld [vmem:[#allocation2 + $0x3c8] ss:$16 sps:$4 sm:$0xff]   ;;  %v8419_v62 = vld [vmem:[#allocation2 + $0x3e4] ss:$16 sps:$4 sm:$0xff]  }
 0x3fd   :  { %3407 = vmatmul.mubr.bf16.gmra.mrb[16].mxu0 %v158_v63  ;;  %3513 = vmatmul.mubr.bf16.gmra.mrb[16].mxu1 %v158_v63  ;;  %v8422_v63 = vld [vmem:[#allocation2 + $0x3ec] ss:$16 sps:$4 sm:$0xff]  }
 0x3fe   :  { %3422 = vmatpush1.bf16.msra.mxu0 %v8339_v2  ;;  %3528 = vmatpush1.bf16.msra.mxu1 %v8342_v3  ;;  %v9942_v2 = vld [vmem:[%s10394_s25 + $0x10] sm:$0xff] }
 0x3ff   :  { %3423 = vmatprep.subr.bf16.mxu0 %v8347_v4  ;;  %3529 = vmatprep.subr.bf16.mxu1 %v8350_v5  ;;  %v9947_v3 = vld [vmem:[%s10394_s25 + $0x30] sm:$0xff]  ;;  %v9952_v4 = vld [vmem:[%s10394_s25 + $0x58] sm:$0xff] }
 0x400   :  { %3449 = vmatprep.mubr.bf16.mxu0 %v157_v6  ;;  %3555 = vmatprep.mubr.bf16.mxu1 %v157_v6  ;;  %v9957_v5 = vld [vmem:[%s10394_s25 + $0x78] sm:$0xff]  ;;  %v8423_v6 = vld [vmem:[%s10380_s9 + $0x40] sm:$0xff]  }
 0x402   :  { %3424 = vmatpush1.bf16.msra.mxu0 %v8345_v7  ;;  %3530 = vmatpush1.bf16.msra.mxu1 %v8348_v8  ;;  %v8424_v7 = vld [vmem:[%s10380_s9 + $0xc0] sm:$0xff]   ;;  %v156_v8 = vpack.c.bf16 %v9947_v3, %v9942_v2 }
 0x403   :  { %3425 = vmatprep.subr.bf16.mxu0 %v8353_v10  ;;  %3531 = vmatprep.subr.bf16.mxu1 %v8356_v11  ;;  %v161_v10 = vpack.c.bf16 %v9957_v5, %v9952_v4  ;;  %v8425_v11 = vld [vmem:[%s10380_s9] sm:$0xff]  }
 0x406   :  { %3426 = vmatpush1.bf16.msra.mxu0 %v8351_v12  ;;  %3532 = vmatpush1.bf16.msra.mxu1 %v8354_v13  ;;  %v8426_v12 = vld [vmem:[%s10380_s9 + $0x80] sm:$0xff]   ;;  %v8427_v13 = vld [vmem:[%s10380_s9 + $0x48] sm:$0xff]  }
 0x407   :  { %3427 = vmatprep.subr.bf16.mxu0 %v8359_v14  ;;  %3533 = vmatprep.subr.bf16.mxu1 %v8362_v15  ;;  %v8428_v14 = vld [vmem:[%s10380_s9 + $0xc8] sm:$0xff]   ;;  %v9984_v15 = vld [vmem:[%s10394_s25 + $0x50] sm:$0xff] }
 0x40a   :  { %3428 = vmatpush1.bf16.msra.mxu0 %v8357_v16  ;;  %3534 = vmatpush1.bf16.msra.mxu1 %v8360_v18  ;;  %v9989_v16 = vld [vmem:[%s10394_s25 + $0x70] sm:$0xff]  ;;  %v8429_v18 = vld [vmem:[%s10380_s9 + $0x8] sm:$0xff]  }
 0x40b   :  { %3429 = vmatprep.subr.bf16.mxu0 %v8365_v19  ;;  %3535 = vmatprep.subr.bf16.mxu1 %v8368_v20  ;;  %v8430_v19 = vld [vmem:[%s10380_s9 + $0x88] sm:$0xff]   ;;  %v8431_v20 = vld [vmem:[%s10380_s9 + $0x50] sm:$0xff]  }
 0x40e   :  { %3430 = vmatpush1.bf16.msra.mxu0 %v8363_v21  ;;  %3536 = vmatpush1.bf16.msra.mxu1 %v8366_v22  ;;  %v8432_v21 = vld [vmem:[%s10380_s9 + $0xd0] sm:$0xff]   ;;  %v160_v22 = vpack.c.bf16 %v9989_v16, %v9984_v15 }
 0x40f   :  { %3431 = vmatprep.subr.bf16.mxu0 %v8371_v23  ;;  %3537 = vmatprep.subr.bf16.mxu1 %v8374_v24  ;;  %v8433_v23 = vld [vmem:[%s10380_s9 + $0x10] sm:$0xff]  }
 0x410   :  { %v8434_v24 = vld [vmem:[%s10380_s9 + $0x90] sm:$0xff]  }
 0x412   :  { %3432 = vmatpush1.bf16.msra.mxu0 %v8369_v25  ;;  %3538 = vmatpush1.bf16.msra.mxu1 %v8372_v26  ;;  %v1719_v25 = vld [vmem:[%s10379_s8] sm:$0xf]  ;;  %v9153_v26 = vmov 1966171168  }
 0x413   :  { %3433 = vmatprep.subr.bf16.mxu0 %v8377_v27  ;;  %3539 = vmatprep.subr.bf16.mxu1 %v8380_v28  ;;  %v3583_v27 = vunpack.c.l.s4 %v9153_v26  ;;  %v1724_v28 = vrot.slane %v1719_v25, %v9847_v49 }
 0x416   :  { %3434 = vmatpush1.bf16.msra.mxu0 %v8375_v29  ;;  %3540 = vmatpush1.bf16.msra.mxu1 %v8378_v30  ;;  %v1732_v29 = vrot.slane %v1719_v25, %v9850_v51  ;;  %v1728_v30 = vrot.slane %v1719_v25, %v9856_v53 }
 0x417   :  { %3435 = vmatprep.subr.bf16.mxu0 %v8383_v31  ;;  %3541 = vmatprep.subr.bf16.mxu1 %v8386_v32  ;;  %v3584_v31 = vunpack.c.0.s8 %v3583_v27  ;;  %v1736_v32 = vrot.slane %v1719_v25, %v9859_v54 }
 0x41a   :  { %3436 = vmatpush1.bf16.msra.mxu0 %v8381_v33  ;;  %3542 = vmatpush1.bf16.msra.mxu1 %v8384_v34 }
 0x41b   :  { %3437 = vmatprep.subr.bf16.mxu0 %v8389_v35  ;;  %3543 = vmatprep.subr.bf16.mxu1 %v8392_v52 }
 0x41e   :  { %3438 = vmatpush1.bf16.msra.mxu0 %v8387_v36  ;;  %3544 = vmatpush1.bf16.msra.mxu1 %v8390_v39 }
 0x41f   :  { %3439 = vmatprep.subr.bf16.mxu0 %v8395_v40  ;;  %3545 = vmatprep.subr.bf16.mxu1 %v8398_v38  ;;  %v10019_v38 = vsub.s32 %v3584_v31, %v9844_v48 }
 0x422   :  { %3440 = vmatpush1.bf16.msra.mxu0 %v8393_v41  ;;  %3546 = vmatpush1.bf16.msra.mxu1 %v8396_v42 }
 0x423   :  { %3441 = vmatprep.subr.bf16.mxu0 %v8401_v43  ;;  %3547 = vmatprep.subr.bf16.mxu1 %v8404_v44 }
 0x426   :  { %3442 = vmatpush1.bf16.msra.mxu0 %v8399_v45  ;;  %3548 = vmatpush1.bf16.msra.mxu1 %v8402_v46  ;;  %v8435_v46 = vld [vmem:[%s10380_s9 + $0x58] sm:$0xff]  }
 0x427   :  { %3443 = vmatprep.subr.bf16.mxu0 %v8407_v47  ;;  %3549 = vmatprep.subr.bf16.mxu1 %v8410_v55  ;;  %v8436_v47 = vld [vmem:[%s10380_s9 + $0xd8] sm:$0xff]  }
 0x42a   :  { %3444 = vmatpush1.bf16.msra.mxu0 %v8405_v56  ;;  %3550 = vmatpush1.bf16.msra.mxu1 %v8408_v57  ;;  %v8437_v57 = vld [vmem:[%s10380_s9 + $0x18] sm:$0xff]  }
 0x42b   :  { %3445 = vmatprep.subr.bf16.mxu0 %v8413_v58  ;;  %3551 = vmatprep.subr.bf16.mxu1 %v8416_v59  ;;  %v8438_v58 = vld [vmem:[%s10380_s9 + $0x98] sm:$0xff]  }
 0x42e   :  { %3446 = vmatpush1.bf16.msra.mxu0 %v8411_v60  ;;  %3552 = vmatpush1.bf16.msra.mxu1 %v8414_v61 }
 0x42f   :  { %3447 = vmatprep.subr.bf16.mxu0 %v8419_v62  ;;  %3553 = vmatprep.subr.bf16.mxu1 %v8422_v63  ;;  %v8439_v63 = vld [vmem:[%s10380_s9 + $0x60] sm:$0xff]  }
 0x432   :  { %3448 = vmatpush1.bf16.msra.mxu0 %v8417_v0  ;;  %3554 = vmatpush1.bf16.msra.mxu1 %v8420_v1  ;;  %v8440_v0 = vld [vmem:[%s10380_s9 + $0xe0] sm:$0xff]  }
 0x433   :  { %7613 = vmatprep.subr.bf16.mxu0 %v8423_v6  ;;  %7641 = vmatprep.subr.bf16.mxu1 %v8424_v7  ;;  %v8441_v1 = vld [vmem:[%s10380_s9 + $0x20] sm:$0xff]   ;;  %v8443_v7 = vld [vmem:[%s10380_s9 + $0x68] sm:$0xff]  }
 0x434   :  { %v8442_v6 = vld [vmem:[%s10380_s9 + $0xa0] sm:$0xff]  }
 0x435   :  { %3450 = vmatmul.mubr.bf16.vlgmr.msra.gmra.mrb[12].mxu0 %v156_v8  ;;  %3556 = vmatmul.mubr.bf16.vlgmr.msra.gmra.mrb[12].mxu1 %v156_v8  ;;  %v8444_v8 = vld [vmem:[%s10380_s9 + $0xe8] sm:$0xff]  }
 0x436   :  { %3459 = vmatprep.mubr.bf16.mxu0 %v161_v10  ;;  %3565 = vmatprep.mubr.bf16.mxu1 %v161_v10  ;;  %v8445_v10 = vld [vmem:[%s10380_s9 + $0x28] sm:$0xff]  }
 0x437   :  { %7614 = vmatpush3.bf16.msra.mxu0 %v8425_v11  ;;  %7642 = vmatpush3.bf16.msra.mxu1 %v8426_v12  ;;  %v8446_v11 = vld [vmem:[%s10380_s9 + $0xa8] sm:$0xff]   ;;  %v8447_v12 = vld [vmem:[%s10380_s9 + $0x70] sm:$0xff]  }
 0x438   :  { %7615 = vmatprep.subr.bf16.mxu0 %v8427_v13  ;;  %7643 = vmatprep.subr.bf16.mxu1 %v8428_v14  ;;  %v8448_v13 = vld [vmem:[%s10380_s9 + $0xf0] sm:$0xff]  }
 0x439   :  { %v8449_v14 = vld [vmem:[%s10380_s9 + $0x30] sm:$0xff]  }
 0x43b   :  { %7616 = vmatpush3.bf16.msra.mxu0 %v8429_v18  ;;  %7644 = vmatpush3.bf16.msra.mxu1 %v8430_v19  ;;  %v8450_v18 = vld [vmem:[%s10380_s9 + $0xb0] sm:$0xff]   ;;  %v8451_v19 = vld [vmem:[%s10380_s9 + $0x78] sm:$0xff]  }
 0x43c   :  { %7617 = vmatprep.subr.bf16.mxu0 %v8431_v20  ;;  %7645 = vmatprep.subr.bf16.mxu1 %v8432_v21  ;;  %v8452_v20 = vld [vmem:[%s10380_s9 + $0xf8] sm:$0xff]  }
 0x43d   :  { %3460 = vmatmul.mubr.bf16.gmra.mrb[16].mxu0 %v160_v22  ;;  %3566 = vmatmul.mubr.bf16.gmra.mrb[16].mxu1 %v160_v22  ;;  %v8453_v21 = vld [vmem:[%s10380_s9 + $0x38] sm:$0xff]  }
 0x43e   :  { %v8454_v22 = vld [vmem:[%s10380_s9 + $0xb8] sm:$0xff]  }
 0x43f   :  { %7618 = vmatpush3.bf16.msra.mxu0 %v8433_v23  ;;  %7646 = vmatpush3.bf16.msra.mxu1 %v8434_v24  ;;  %v2702_v23 = vld [vmem:[%s10377_s6] sm:$0xf]  ;;  %s7247_s6 = sld [smem:[#allocation11 + $0x1]] }
 0x440   :  { %7619 = vmatprep.subr.bf16.mxu0 %v8435_v46  ;;  %7647 = vmatprep.subr.bf16.mxu1 %v8436_v47  ;;  %v2707_v25 = vrot.slane %v2702_v23, %v9847_v49  ;;  %v2715_v26 = vrot.slane %v2702_v23, %v9850_v51  ;;  %v10090_v27 = vrot.slane %v2702_v23, %v9856_v53 }
 0x443   :  { %7620 = vmatpush3.bf16.msra.mxu0 %v8437_v57  ;;  %7648 = vmatpush3.bf16.msra.mxu1 %v8438_v58 }
 0x444   :  { %7621 = vmatprep.subr.bf16.mxu0 %v8439_v63  ;;  %7649 = vmatprep.subr.bf16.mxu1 %v8440_v0 }
 0x447   :  { %7622 = vmatpush3.bf16.msra.mxu0 %v8441_v1  ;;  %7650 = vmatpush3.bf16.msra.mxu1 %v8442_v6 }
 0x448   :  { %7623 = vmatprep.subr.bf16.mxu0 %v8443_v7  ;;  %7651 = vmatprep.subr.bf16.mxu1 %v8444_v8 }
 0x44b   :  { %7624 = vmatpush3.bf16.msra.mxu0 %v8445_v10  ;;  %7652 = vmatpush3.bf16.msra.mxu1 %v8446_v11 }
 0x44c   :  { %7625 = vmatprep.subr.bf16.mxu0 %v8447_v12  ;;  %7653 = vmatprep.subr.bf16.mxu1 %v8448_v13 }
 0x44f   :  { %7626 = vmatpush3.bf16.msra.mxu0 %v8449_v14  ;;  %7654 = vmatpush3.bf16.msra.mxu1 %v8450_v18 }
 0x450   :  { %7627 = vmatprep.subr.bf16.mxu0 %v8451_v19  ;;  %7655 = vmatprep.subr.bf16.mxu1 %v8452_v20 }
 0x453   :  { %7628 = vmatpush3.bf16.msra.mxu0 %v8453_v21  ;;  %7656 = vmatpush3.bf16.msra.mxu1 %v8454_v22 }
 0x488   :  { %v2485_v33 = vpop.f32.mrb[8].mxu0  ;;  %v2567_v34 = vpop.f32.mrb[8].mxu1 }
 0x489   :  { %v7721_v35 = vadd.f32 %v2485_v33, %v1724_v28  ;;  %v7723_v52 = vadd.f32 %v2567_v34, %v1732_v29  ;;  %v2487_v36 = vpop.f32.mrb[9].mxu0  ;;  %v2569_v39 = vpop.f32.mrb[9].mxu1  ;;  %v10093_v28 = vrot.slane %v2702_v23, %v9859_v54 }
 0x48a   :  { %v7722_v40 = vadd.f32 %v2487_v36, %v1728_v30  ;;  %v7724_v41 = vadd.f32 %v2569_v39, %v1736_v32  ;;  %v2489_v42 = vpop.f32.mrb[10].mxu0  ;;  %v2571_v43 = vpop.f32.mrb[10].mxu1 }
 0x48b   :  { %v2490_v44 = vpop.f32.mrb[11].mxu0  ;;  %v2572_v45 = vpop.f32.mrb[11].mxu1 }
 0x48c   :  { %v3580_v55 = vcombine.low %v7721_v35, %v7722_v40  ;;  %v3581_v56 = vcombine.low %v7723_v52, %v7724_v41 }
 0x48e   :  { %v3588_v59 = vrot.slane %v3580_v55, %v10019_v38  ;;  %v3595_v60 = vrot.slane %v3581_v56, %v10019_v38 }
 0x490   :  { %v3596_v61 = vcombine.low %v3588_v59, %v3595_v60  ;;  %v3597_v62 = vcombine.high %v3588_v59, %v3595_v60 }
 0x492   :  { %v3604_v24 = vrot.slane %v3596_v61, %v10019_v38  ;;  %v3611_v29 = vrot.slane %v3597_v62, %v10019_v38 }
 0x494   :  { %v3615_v33 = vrot.slane %v3604_v24, %v9847_v49  ;;  %v3623_v35 = vrot.slane %v3604_v24, %v9850_v51  ;;  %v3619_v40 = vrot.slane %v3604_v24, %v9856_v53  ;;  %v3627_v42 = vrot.slane %v3604_v24, %v9859_v54 }
 0x495   :  { %v3631_v7 = vrot.slane %v3611_v29, %v9847_v49  ;;  %v3639_v10 = vrot.slane %v3611_v29, %v9850_v51  ;;  %v3635_v14 = vrot.slane %v3611_v29, %v9856_v53  ;;  %v3643_v21 = vrot.slane %v3611_v29, %v9859_v54 }
 0x508   :  { %v3451_v30 = vpop.f32.mrb[12].mxu0  ;;  %v3557_v31 = vpop.f32.mrb[12].mxu1 }
 0x509   :  { %v7725_v32 = vadd.f32 %v3451_v30, %v2707_v25  ;;  %v7733_v34 = vadd.f32 %v3557_v31, %v2715_v26  ;;  %v3453_v52 = vpop.f32.mrb[13].mxu0  ;;  %v3559_v36 = vpop.f32.mrb[13].mxu1 }
 0x50a   :  { %v7726_v39 = vadd.f32 %v3453_v52, %v10090_v27  ;;  %v7734_v41 = vadd.f32 %v3559_v36, %v10093_v28  ;;  %v3455_v43 = vpop.f32.mrb[14].mxu0  ;;  %v3561_v44 = vpop.f32.mrb[14].mxu1 }
 0x50b   :  { %v3652_v45 = vadd.f32 %v7725_v32, %v3615_v33  ;;  %v3654_v46 = vadd.f32 %v7733_v34, %v3623_v35  ;;  %v7727_v47 = vadd.f32 %v3455_v43, %v2707_v25  ;;  %v7735_v55 = vadd.f32 %v3561_v44, %v2715_v26  ;;  %v3457_v56 = vpop.f32.mrb[15].mxu0  ;;  %v3563_v57 = vpop.f32.mrb[15].mxu1 }
 0x50c   :  { %v3653_v58 = vadd.f32 %v7726_v39, %v3619_v40  ;;  %v3655_v59 = vadd.f32 %v7734_v41, %v3627_v42  ;;  %v7728_v60 = vadd.f32 %v3457_v56, %v10090_v27  ;;  %v7736_v61 = vadd.f32 %v3563_v57, %v10093_v28 }
 0x50d   :  { %8895 = vtanh.f32 %v3652_v45  ;;  %v3656_v62 = vadd.f32 %v7727_v47, %v3615_v33  ;;  %v3658_v63 = vadd.f32 %v7735_v55, %v3623_v35 }
 0x50e   :  { %8897 = vtanh.f32 %v3654_v46  ;;  %v3657_v0 = vadd.f32 %v7728_v60, %v3619_v40  ;;  %v3659_v1 = vadd.f32 %v7736_v61, %v3627_v42 }
 0x50f   :  { %8899 = vtanh.f32 %v3653_v58 }
 0x510   :  { %8901 = vtanh.f32 %v3655_v59  ;;  %v3461_v6 = vpop.f32.mrb[16].mxu0  ;;  %v3567_v8 = vpop.f32.mrb[16].mxu1 }
 0x511   :  { %8903 = vtanh.f32 %v3656_v62  ;;  %v7729_v11 = vadd.f32 %v3461_v6, %v2707_v25  ;;  %v7737_v12 = vadd.f32 %v3567_v8, %v2715_v26  ;;  %v3463_v13 = vpop.f32.mrb[17].mxu0  ;;  %v3569_v18 = vpop.f32.mrb[17].mxu1 }
 0x512   :  { %8905 = vtanh.f32 %v3658_v63  ;;  %v7730_v19 = vadd.f32 %v3463_v13, %v10090_v27  ;;  %v7738_v20 = vadd.f32 %v3569_v18, %v10093_v28  ;;  %v3465_v22 = vpop.f32.mrb[18].mxu0  ;;  %v3571_v23 = vpop.f32.mrb[18].mxu1  ;;  %v8458_v13 = vld [vmem:[#allocation9 + $0x8] ss:$16 sps:$4 sm:$0xff]   ;;  %v8463_v18 = vld [vmem:[#allocation9 + $0x24] ss:$16 sps:$4 sm:$0xff]  }
 0x513   :  { %8907 = vtanh.f32 %v3657_v0  ;;  %v3660_v24 = vadd.f32 %v7729_v11, %v3631_v7  ;;  %v3662_v30 = vadd.f32 %v7737_v12, %v3639_v10  ;;  %v7731_v31 = vadd.f32 %v3465_v22, %v2707_v25  ;;  %v3467_v32 = vpop.f32.mrb[19].mxu0  ;;  %v3573_v33 = vpop.f32.mrb[19].mxu1  ;;  %v8455_v11 = vld [vmem:[#allocation9] ss:$16 sps:$4 sm:$0xff]   ;;  %v8457_v12 = vld [vmem:[#allocation9 + $0x4] ss:$16 sps:$4 sm:$0xff]  }
 0x514   :  { %8909 = vtanh.f32 %v3659_v1  ;;  %v3661_v34 = vadd.f32 %v7730_v19, %v3635_v14  ;;  %v3663_v35 = vadd.f32 %v7738_v20, %v3643_v21  ;;  %v7739_v52 = vadd.f32 %v3571_v23, %v2715_v26  ;;  %5024 = vmatprep.subr.bf16.mxu0 %v8457_v12  ;;  %v8466_v19 = vld [vmem:[#allocation9 + $0x2c] ss:$16 sps:$4 sm:$0xff]   ;;  %v8461_v20 = vld [vmem:[#allocation9 + $0x20] ss:$16 sps:$4 sm:$0xff]   ;;  %v8469_v22 = vld [vmem:[#allocation9 + $0x44] ss:$16 sps:$4 sm:$0xff]  }
 0x515   :  { %8911 = vtanh.f32 %v3660_v24  ;;  %v3664_v36 = vadd.f32 %v7731_v31, %v3631_v7  ;;  %v7732_v39 = vadd.f32 %v3467_v32, %v10090_v27  ;;  %v7740_v40 = vadd.f32 %v3573_v33, %v10093_v28  ;;  %v8472_v23 = vld [vmem:[#allocation9 + $0x4c] ss:$16 sps:$4 sm:$0xff]   ;;  %v8467_v24 = vld [vmem:[#allocation9 + $0x40] ss:$16 sps:$4 sm:$0xff]   ;;  %v8475_v31 = vld [vmem:[#allocation9 + $0x64] ss:$16 sps:$4 sm:$0xff]  }
 0x516   :  { %8913 = vtanh.f32 %v3662_v30  ;;  %v3666_v29 = vadd.f32 %v7739_v52, %v3639_v10  ;;  %v8470_v30 = vld [vmem:[#allocation9 + $0x48] ss:$16 sps:$4 sm:$0xff]   ;;  %v8478_v32 = vld [vmem:[#allocation9 + $0x6c] ss:$16 sps:$4 sm:$0xff]   ;;  %v8473_v33 = vld [vmem:[#allocation9 + $0x60] ss:$16 sps:$4 sm:$0xff]  }
 0x517   :  { %v8896_v41 = vpop.eup %8895  ;;  %8915 = vtanh.f32 %v3661_v34  ;;  %v3665_v42 = vadd.f32 %v7732_v39, %v3635_v14  ;;  %v3667_v43 = vadd.f32 %v7740_v40, %v3643_v21  ;;  %v8460_v14 = vld [vmem:[#allocation9 + $0xc] ss:$16 sps:$4 sm:$0xff]   ;;  %v8464_v21 = vld [vmem:[#allocation9 + $0x28] ss:$16 sps:$4 sm:$0xff]   ;;  %v8487_v40 = vld [vmem:[#allocation9 + $0xa4] ss:$16 sps:$4 sm:$0xff]  }
 0x518   :  { %v8898_v44 = vpop.eup %8897  ;;  %8917 = vtanh.f32 %v3663_v35  ;;  %5106 = vmatprep.subr.bf16.mxu1 %v8460_v14  ;;  %v8476_v34 = vld [vmem:[#allocation9 + $0x68] ss:$16 sps:$4 sm:$0xff]   ;;  %v8481_v35 = vld [vmem:[#allocation9 + $0x84] ss:$16 sps:$4 sm:$0xff]   ;;  %v8484_v52 = vld [vmem:[#allocation9 + $0x8c] ss:$16 sps:$4 sm:$0xff]  }
 0x519   :  { %v8900_v25 = vpop.eup %8899  ;;  %8919 = vtanh.f32 %v3664_v36  ;;  %v8479_v36 = vld [vmem:[#allocation9 + $0x80] ss:$16 sps:$4 sm:$0xff]   ;;  %v8482_v39 = vld [vmem:[#allocation9 + $0x88] ss:$16 sps:$4 sm:$0xff]  }
 0x51a   :  { %v8902_v45 = vpop.eup %8901  ;;  %8921 = vtanh.f32 %v3666_v29  ;;  %v8490_v29 = vld [vmem:[#allocation9 + $0xac] ss:$16 sps:$4 sm:$0xff]  }
 0x51b   :  { %v8904_v46 = vpop.eup %8903  ;;  %8923 = vtanh.f32 %v3665_v42  ;;  %v8488_v42 = vld [vmem:[#allocation9 + $0xa8] ss:$16 sps:$4 sm:$0xff]  }
 0x51c   :  { %v8906_v26 = vpop.eup %8905  ;;  %8925 = vtanh.f32 %v3667_v43  ;;  %v3685_v47 = vpack.c.bf16 %v8904_v46, %v8896_v41  ;;  %v8485_v41 = vld [vmem:[#allocation9 + $0xa0] ss:$16 sps:$4 sm:$0xff]   ;;  %v8493_v43 = vld [vmem:[#allocation9 + $0xc4] ss:$16 sps:$4 sm:$0xff]  }
 0x51d   :  { %v8908_v27 = vpop.eup %8907  ;;  %v3687_v55 = vpack.c.bf16 %v8906_v26, %v8898_v44  ;;  %v8496_v44 = vld [vmem:[#allocation9 + $0xcc] ss:$16 sps:$4 sm:$0xff]   ;;  %v8499_v46 = vld [vmem:[#allocation9 + $0xe4] ss:$16 sps:$4 sm:$0xff]  }
 0x51e   :  { %v8910_v28 = vpop.eup %8909  ;;  %v3686_v56 = vpack.c.bf16 %v8908_v27, %v8900_v25  ;;  %v8491_v25 = vld [vmem:[#allocation9 + $0xc0] ss:$16 sps:$4 sm:$0xff]   ;;  %v8502_v26 = vld [vmem:[#allocation9 + $0xec] ss:$16 sps:$4 sm:$0xff]   ;;  %v8500_v27 = vld [vmem:[#allocation9 + $0xe8] ss:$16 sps:$4 sm:$0xff]  }
 0x51f   :  { %v8912_v57 = vpop.eup %8911  ;;  %v3688_v58 = vpack.c.bf16 %v8910_v28, %v8902_v45  ;;  %v8494_v45 = vld [vmem:[#allocation9 + $0xc8] ss:$16 sps:$4 sm:$0xff]   ;;  %v8508_v28 = vld [vmem:[#allocation9 + $0x10c] ss:$16 sps:$4 sm:$0xff]  }
 0x520   :  { %v8914_v59 = vpop.eup %8913  ;;  %3981 = vmatprep.mubr.bf16.mxu0 %v3686_v56  ;;  %v8503_v56 = vld [vmem:[#allocation9 + $0x100] ss:$16 sps:$4 sm:$0xff]  }
 0x521   :  { %v8916_v60 = vpop.eup %8915  ;;  %4030 = vmatprep.mubr.bf16.mxu1 %v3688_v58  ;;  %3982 = vmatmul.mubr.bf16.vlgmr.msra.gmra.mrb[20].mxu0 %v3685_v47  ;;  %v8497_v47 = vld [vmem:[#allocation9 + $0xe0] ss:$16 sps:$4 sm:$0xff]  }
 0x522   :  { %v8918_v61 = vpop.eup %8917  ;;  %4031 = vmatmul.mubr.bf16.vlgmr.msra.gmra.mrb[20].mxu1 %v3687_v55  ;;  %5025 = vmatpush1.bf16.msra.mxu0 %v8455_v11  ;;  %v8505_v55 = vld [vmem:[#allocation9 + $0x104] ss:$16 sps:$4 sm:$0xff]  }
 0x523   :  { %v8920_v62 = vpop.eup %8919  ;;  %5107 = vmatpush1.bf16.msra.mxu1 %v8458_v13  ;;  %5026 = vmatprep.subr.bf16.mxu0 %v8463_v18 }
 0x524   :  { %v8922_v63 = vpop.eup %8921  ;;  %v3689_v0 = vpack.c.bf16 %v8920_v62, %v8912_v57  ;;  %5108 = vmatprep.subr.bf16.mxu1 %v8466_v19  ;;  %v8506_v57 = vld [vmem:[#allocation9 + $0x108] ss:$16 sps:$4 sm:$0xff]  }
 0x525   :  { %v8924_v1 = vpop.eup %8923  ;;  %v3691_v6 = vpack.c.bf16 %v8922_v63, %v8914_v59 }
 0x526   :  { %v8926_v7 = vpop.eup %8925  ;;  %v3690_v8 = vpack.c.bf16 %v8924_v1, %v8916_v60  ;;  %5027 = vmatpush1.bf16.msra.mxu0 %v8461_v20 }
 0x527   :  { %v3692_v10 = vpack.c.bf16 %v8926_v7, %v8918_v61  ;;  %5109 = vmatpush1.bf16.msra.mxu1 %v8464_v21  ;;  %5028 = vmatprep.subr.bf16.mxu0 %v8469_v22  ;;  %v4047_v7 = vstv %s7247_s6 }
 0x528   :  { %3989 = vmatprep.mubr.bf16.mxu0 %v3690_v8  ;;  %5110 = vmatprep.subr.bf16.mxu1 %v8472_v23 }
 0x529   :  { %4038 = vmatprep.mubr.bf16.mxu1 %v3692_v10  ;;  %3990 = vmatmul.mubr.bf16.gmra.mrb[24].mxu0 %v3689_v0 }
 0x52a   :  { %4039 = vmatmul.mubr.bf16.gmra.mrb[24].mxu1 %v3691_v6  ;;  %5029 = vmatpush1.bf16.msra.mxu0 %v8467_v24 }
 0x52b   :  { %5111 = vmatpush1.bf16.msra.mxu1 %v8470_v30  ;;  %5030 = vmatprep.subr.bf16.mxu0 %v8475_v31 }
 0x52c   :  { %5112 = vmatprep.subr.bf16.mxu1 %v8478_v32 }
 0x52e   :  { %5031 = vmatpush1.bf16.msra.mxu0 %v8473_v33 }
 0x52f   :  { %5113 = vmatpush1.bf16.msra.mxu1 %v8476_v34  ;;  %5032 = vmatprep.subr.bf16.mxu0 %v8481_v35 }
 0x530   :  { %5114 = vmatprep.subr.bf16.mxu1 %v8484_v52 }
 0x532   :  { %5033 = vmatpush1.bf16.msra.mxu0 %v8479_v36 }
 0x533   :  { %5115 = vmatpush1.bf16.msra.mxu1 %v8482_v39  ;;  %5034 = vmatprep.subr.bf16.mxu0 %v8487_v40 }
 0x534   :  { %5116 = vmatprep.subr.bf16.mxu1 %v8490_v29 }
 0x536   :  { %5035 = vmatpush1.bf16.msra.mxu0 %v8485_v41 }
 0x537   :  { %5117 = vmatpush1.bf16.msra.mxu1 %v8488_v42  ;;  %5036 = vmatprep.subr.bf16.mxu0 %v8493_v43 }
 0x538   :  { %5118 = vmatprep.subr.bf16.mxu1 %v8496_v44 }
 0x53a   :  { %5037 = vmatpush1.bf16.msra.mxu0 %v8491_v25 }
 0x53b   :  { %5119 = vmatpush1.bf16.msra.mxu1 %v8494_v45  ;;  %5038 = vmatprep.subr.bf16.mxu0 %v8499_v46 }
 0x53c   :  { %5120 = vmatprep.subr.bf16.mxu1 %v8502_v26 }
 0x53e   :  { %5039 = vmatpush1.bf16.msra.mxu0 %v8497_v47 }
 0x53f   :  { %5121 = vmatpush1.bf16.msra.mxu1 %v8500_v27  ;;  %5040 = vmatprep.subr.bf16.mxu0 %v8505_v55 }
 0x540   :  { %5122 = vmatprep.subr.bf16.mxu1 %v8508_v28 }
 0x542   :  { %5041 = vmatpush1.bf16.msra.mxu0 %v8503_v56 }
 0x543   :  { %5123 = vmatpush1.bf16.msra.mxu1 %v8506_v57 }
 0x5f4   :  { %v7629_v58 = vpop.f32.mrb[20].mxu0 }
 0x5f5   :  { %v7657_v59 = vpop.f32.mrb[20].mxu1  ;;  %v7630_v60 = vpop.f32.mrb[21].mxu0 }
 0x5f6   :  { %v7631_v61 = vadd.f32 %v7630_v60, %v7629_v58  ;;  %v7658_v62 = vpop.f32.mrb[21].mxu1  ;;  %v7632_v63 = vpop.f32.mrb[22].mxu0 }
 0x5f7   :  { %v7659_v0 = vadd.f32 %v7658_v62, %v7657_v59  ;;  %v7660_v1 = vpop.f32.mrb[22].mxu1  ;;  %v7633_v6 = vpop.f32.mrb[23].mxu0 }
 0x5f8   :  { %v7634_v8 = vadd.f32 %v7633_v6, %v7632_v63  ;;  %v7661_v10 = vpop.f32.mrb[23].mxu1 }
 0x5f9   :  { %v4033_v11 = vadd.f32 %v7659_v0, %v7631_v61  ;;  %v7662_v12 = vadd.f32 %v7661_v10, %v7660_v1 }
 0x5fb   :  { %v4048_v13 = vadd.f32 %v4047_v7, %v4033_v11  ;;  %v4036_v14 = vadd.f32 %v7662_v12, %v7634_v8 }
 0x5fc   :  { %v7635_v18 = vpop.f32.mrb[24].mxu0 }
 0x5fd   :  { %v4049_v19 = vadd.f32 %v4047_v7, %v4036_v14  ;;  %v7663_v20 = vpop.f32.mrb[24].mxu1  ;;  %v7636_v21 = vpop.f32.mrb[25].mxu0  ;;  %v4052_v30 = vsel %vm1478_vm0, %v4048_v13, -inf }
 0x5fe   :  { %v7637_v22 = vadd.f32 %v7636_v21, %v7635_v18  ;;  %v7664_v23 = vpop.f32.mrb[25].mxu1  ;;  %v7638_v24 = vpop.f32.mrb[26].mxu0 }
 0x5ff   :  { %v4053_v31 = vsel %vm1478_vm0, %v4049_v19, -inf  ;;  %v7665_v32 = vadd.f32 %v7664_v23, %v7663_v20  ;;  %v7666_v33 = vpop.f32.mrb[26].mxu1  ;;  %v7639_v34 = vpop.f32.mrb[27].mxu0 }
 0x600   :  { %v4054_v35 = vmax.f32 %v4052_v30, %v4053_v31  ;;  %v7640_v52 = vadd.f32 %v7639_v34, %v7638_v24  ;;  %v7667_v36 = vpop.f32.mrb[27].mxu1 }
 0x601   :  { %v4041_v39 = vadd.f32 %v7665_v32, %v7637_v22  ;;  %v7668_v40 = vadd.f32 %v7667_v36, %v7666_v33 }
 0x602   :  { %v4055_v29 = vrot.slane %v4054_v35, 4 }
 0x603   :  { %v4050_v41 = vadd.f32 %v4047_v7, %v4041_v39  ;;  %v4044_v42 = vadd.f32 %v7668_v40, %v7640_v52 }
 0x604   :  { %v4056_v43 = vmax.f32 %v4054_v35, %v4055_v29 }
 0x605   :  { %v4051_v44 = vadd.f32 %v4047_v7, %v4044_v42  ;;  %v4061_v45 = vsel %vm1478_vm0, %v4050_v41, -inf }
 0x606   :  { %v4057_v25 = vrot.slane %v4056_v43, 2 }
 0x607   :  { %v4062_v46 = vsel %vm1478_vm0, %v4051_v44, -inf }
 0x608   :  { %v4058_v26 = vmax.f32 %v4056_v43, %v4057_v25  ;;  %v4063_v47 = vmax.f32 %v4061_v45, %v4062_v46  ;;  %v8509_v43 = vld [vmem:[#allocation9 + $0x120] ss:$16 sps:$4 sm:$0xff]   ;;  %v8512_v25 = vld [vmem:[#allocation9 + $0x128] ss:$16 sps:$4 sm:$0xff]   ;;  %v8514_v45 = vld [vmem:[#allocation9 + $0x12c] ss:$16 sps:$4 sm:$0xff]  }
 0x609   :  { %5124 = vmatprep.subr.bf16.mxu1 %v8514_v45 }
 0x60a   :  { %v4059_v27 = vrot.slane %v4058_v26, 1  ;;  %v4064_v55 = vrot.slane %v4063_v47, 4  ;;  %5125 = vmatpush1.bf16.msra.mxu1 %v8512_v25 }
 0x60c   :  { %v4060_v28 = vmax.f32 %v4058_v26, %v4059_v27  ;;  %v4065_v56 = vmax.f32 %v4063_v47, %v4064_v55  ;;  %v8517_v26 = vld [vmem:[#allocation9 + $0x144] ss:$16 sps:$4 sm:$0xff]   ;;  %v8520_v47 = vld [vmem:[#allocation9 + $0x14c] ss:$16 sps:$4 sm:$0xff]  }
 0x60d   :  { %5126 = vmatprep.subr.bf16.mxu1 %v8520_v47 }
 0x60e   :  { %v4070_v57 = vsub.f32 %v4048_v13, %v4060_v28  ;;  %v4071_v58 = vsub.f32 %v4049_v19, %v4060_v28  ;;  %v4066_v59 = vrot.slane %v4065_v56, 2  ;;  %v8515_v28 = vld [vmem:[#allocation9 + $0x140] ss:$16 sps:$4 sm:$0xff]  }
 0x610   :  { %v4074_v60 = vmul.f32 1.442695, %v4070_v57  ;;  %v4076_v61 = vmul.f32 1.442695, %v4071_v58  ;;  %v4067_v62 = vmax.f32 %v4065_v56, %v4066_v59  ;;  %v8518_v56 = vld [vmem:[#allocation9 + $0x148] ss:$16 sps:$4 sm:$0xff]  }
 0x611   :  { %5127 = vmatpush1.bf16.msra.mxu1 %v8518_v56  ;;  %v8523_v57 = vld [vmem:[#allocation9 + $0x164] ss:$16 sps:$4 sm:$0xff]   ;;  %v8526_v58 = vld [vmem:[#allocation9 + $0x16c] ss:$16 sps:$4 sm:$0xff]   ;;  %v8521_v59 = vld [vmem:[#allocation9 + $0x160] ss:$16 sps:$4 sm:$0xff]  }
 0x612   :  { %8927 = vpow2.f32 %v4074_v60  ;;  %v4068_v63 = vrot.slane %v4067_v62, 1  ;;  %v8524_v60 = vld [vmem:[#allocation9 + $0x168] ss:$16 sps:$4 sm:$0xff]   ;;  %5128 = vmatprep.subr.bf16.mxu1 %v8526_v58  ;;  %v8977_v56 = vld [vmem:[%s10394_s25 + $0x40] sm:$0xff] }
 0x613   :  { %8929 = vpow2.f32 %v4076_v61  ;;  %v8529_v61 = vld [vmem:[#allocation9 + $0x184] ss:$16 sps:$4 sm:$0xff]  }
 0x614   :  { %v4069_v0 = vmax.f32 %v4067_v62, %v4068_v63  ;;  %v8532_v62 = vld [vmem:[#allocation9 + $0x18c] ss:$16 sps:$4 sm:$0xff]   ;;  %v8527_v63 = vld [vmem:[#allocation9 + $0x180] ss:$16 sps:$4 sm:$0xff]  }
 0x615   :  { %5129 = vmatpush1.bf16.msra.mxu1 %v8524_v60 }
 0x616   :  { %v4072_v1 = vsub.f32 %v4050_v41, %v4069_v0  ;;  %v4073_v6 = vsub.f32 %v4051_v44, %v4069_v0  ;;  %v8511_v44 = vld [vmem:[#allocation9 + $0x124] ss:$16 sps:$4 sm:$0xff]   ;;  %v8530_v0 = vld [vmem:[#allocation9 + $0x188] ss:$16 sps:$4 sm:$0xff]   ;;  %5130 = vmatprep.subr.bf16.mxu1 %v8532_v62 }
 0x617   :  { %5042 = vmatprep.subr.bf16.mxu0 %v8511_v44 }
 0x618   :  { %v4078_v7 = vmul.f32 1.442695, %v4072_v1  ;;  %v4080_v8 = vmul.f32 1.442695, %v4073_v6  ;;  %5043 = vmatpush1.bf16.msra.mxu0 %v8509_v43  ;;  %v8535_v1 = vld [vmem:[#allocation9 + $0x1a4] ss:$16 sps:$4 sm:$0xff]  }
 0x619   :  { %5044 = vmatprep.subr.bf16.mxu0 %v8517_v26  ;;  %5131 = vmatpush1.bf16.msra.mxu1 %v8530_v0  ;;  %v8538_v6 = vld [vmem:[#allocation9 + $0x1ac] ss:$16 sps:$4 sm:$0xff]  }
 0x61a   :  { %8931 = vpow2.f32 %v4078_v7  ;;  %v8533_v7 = vld [vmem:[#allocation9 + $0x1a0] ss:$16 sps:$4 sm:$0xff]   ;;  %5132 = vmatprep.subr.bf16.mxu1 %v8538_v6 }
 0x61b   :  { %8933 = vpow2.f32 %v4080_v8  ;;  %v8536_v8 = vld [vmem:[#allocation9 + $0x1a8] ss:$16 sps:$4 sm:$0xff]  }
 0x61c   :  { %v8928_v10 = vpop.eup %8927  ;;  %5045 = vmatpush1.bf16.msra.mxu0 %v8515_v28 }
 0x61d   :  { %v8930_v11 = vpop.eup %8929  ;;  %v4082_v12 = vsel %vm1478_vm0, %v8928_v10, 0.0  ;;  %5046 = vmatprep.subr.bf16.mxu0 %v8523_v57  ;;  %5133 = vmatpush1.bf16.msra.mxu1 %v8536_v8  ;;  %v8978_v57 = vld [vmem:[%s10394_s25 + $0x48] sm:$0xff] }
 0x61e   :  { %v4083_v13 = vsel %vm1478_vm0, %v8930_v11, 0.0 }
 0x61f   :  { %v4084_v14 = vadd.f32 %v4083_v13, %v4082_v12  ;;  %v8539_v12 = vld [vmem:[#allocation9 + $0x1c0] ss:$16 sps:$4 sm:$0xff]   ;;  %v8542_v13 = vld [vmem:[#allocation9 + $0x1c8] ss:$16 sps:$4 sm:$0xff]  }
 0x620   :  { %5047 = vmatpush1.bf16.msra.mxu0 %v8521_v59 }
 0x621   :  { %v4085_v18 = vrot.slane %v4084_v14, 4  ;;  %5048 = vmatprep.subr.bf16.mxu0 %v8529_v61 }
 0x623   :  { %v4086_v19 = vadd.f32 %v4085_v18, %v4084_v14  ;;  %v8547_v14 = vld [vmem:[#allocation9 + $0x1e4] ss:$16 sps:$4 sm:$0xff]   ;;  %v8550_v18 = vld [vmem:[#allocation9 + $0x1ec] ss:$16 sps:$4 sm:$0xff]  }
 0x624   :  { %v8932_v20 = vpop.eup %8931  ;;  %5049 = vmatpush1.bf16.msra.mxu0 %v8527_v63 }
 0x625   :  { %v8934_v21 = vpop.eup %8933  ;;  %v4091_v22 = vsel %vm1478_vm0, %v8932_v20, 0.0  ;;  %v4087_v23 = vrot.slane %v4086_v19, 2  ;;  %5050 = vmatprep.subr.bf16.mxu0 %v8535_v1  ;;  %v8979_v1 = vld [vmem:[%s10394_s25 + $0x60] sm:$0xff] }
 0x626   :  { %v4092_v24 = vsel %vm1478_vm0, %v8934_v21, 0.0 }
 0x627   :  { %v4093_v30 = vadd.f32 %v4092_v24, %v4091_v22  ;;  %v4088_v31 = vadd.f32 %v4087_v23, %v4086_v19  ;;  %v8545_v19 = vld [vmem:[#allocation9 + $0x1e0] ss:$16 sps:$4 sm:$0xff]   ;;  %v8556_v22 = vld [vmem:[#allocation9 + $0x20c] ss:$16 sps:$4 sm:$0xff]  }
 0x628   :  { %5051 = vmatpush1.bf16.msra.mxu0 %v8533_v7  ;;  %v8971_v24 = vld [vmem:[%s10394_s25] sm:$0xff]  ;;  %v8980_v7 = vld [vmem:[%s10394_s25 + $0x68] sm:$0xff] }
 0x629   :  { %v4089_v32 = vrot.slane %v4088_v31, 1  ;;  %v4094_v33 = vrot.slane %v4093_v30, 4 }
 0x62b   :  { %v4090_v34 = vadd.f32 %v4089_v32, %v4088_v31  ;;  %v4095_v35 = vadd.f32 %v4094_v33, %v4093_v30  ;;  %v8972_v31 = vld [vmem:[%s10394_s25 + $0x8] sm:$0xff] }
 0x62d   :  { %8935 = vrcp.f32 %v4090_v34  ;;  %v4096_v52 = vrot.slane %v4095_v35, 2  ;;  %v8973_v34 = vld [vmem:[%s10394_s25 + $0x18] sm:$0xff] }
 0x62f   :  { %v4097_v36 = vadd.f32 %v4096_v52, %v4095_v35 }
 0x631   :  { %v4098_v39 = vrot.slane %v4097_v36, 1 }
 0x633   :  { %v4099_v40 = vadd.f32 %v4098_v39, %v4097_v36  ;;  %v8974_v36 = vld [vmem:[%s10394_s25 + $0x20] sm:$0xff] }
 0x635   :  { %8937 = vrcp.f32 %v4099_v40  ;;  %v8975_v40 = vld [vmem:[%s10394_s25 + $0x28] sm:$0xff] }
 0x637   :  { %v8936_v29 = vpop.eup %8935 }
 0x638   :  { %v4101_v41 = vmul.f32 %v8936_v29, %v8928_v10  ;;  %v4102_v42 = vmul.f32 %v8936_v29, %v8930_v11  ;;  %v8541_v10 = vld [vmem:[#allocation9 + $0x1c4] ss:$16 sps:$4 sm:$0xff]   ;;  %v8544_v11 = vld [vmem:[#allocation9 + $0x1cc] ss:$16 sps:$4 sm:$0xff]  }
 0x639   :  { %5052 = vmatprep.subr.bf16.mxu0 %v8541_v10  ;;  %5134 = vmatprep.subr.bf16.mxu1 %v8544_v11 }
 0x63a   :  { %4108 = vperm.xlu1 %7814, %v4101_v41   ;;  %5053 = vmatpush1.bf16.msra.mxu0 %v8539_v12 }
 0x63b   :  { %5135 = vmatpush1.bf16.msra.mxu1 %v8542_v13  ;;  %5054 = vmatprep.subr.bf16.mxu0 %v8547_v14 }
 0x63c   :  { %5136 = vmatprep.subr.bf16.mxu1 %v8550_v18 }
 0x63e   :  { %4113 = vperm.xlu1 %7814, %v4102_v42   ;;  %5055 = vmatpush1.bf16.msra.mxu0 %v8545_v19 }
 0x63f   :  { %v8938_v46 = vpop.eup %8937 }
 0x640   :  { %v4104_v27 = vmul.f32 %v8938_v46, %v8932_v20  ;;  %v4105_v55 = vmul.f32 %v8938_v46, %v8934_v21  ;;  %v8548_v20 = vld [vmem:[#allocation9 + $0x1e8] ss:$16 sps:$4 sm:$0xff]   ;;  %v8553_v21 = vld [vmem:[#allocation9 + $0x204] ss:$16 sps:$4 sm:$0xff]  }
 0x641   :  { %5137 = vmatpush1.bf16.msra.mxu1 %v8548_v20  ;;  %5065 = vmatprep.subr.bf16.mxu0 %v8553_v21 }
 0x642   :  { %4118 = vperm.xlu0 %7813, %v4104_v27   ;;  %4123 = vperm.xlu1 %7814, %v4105_v55  }
 0x643   :  { %5147 = vmatprep.subr.bf16.mxu1 %v8556_v22 }
 0x6b9   :  { %v4109_v23 = vpop.permute.xlu1 %4108 }
 0x6ba   :  { %v4126_v30 = vmul.f32 %v8971_v24, %v4109_v23  ;;  %v4127_v32 = vmul.f32 %v8972_v31, %v4109_v23  ;;  %v4128_v33 = vmul.f32 %v4109_v23, %v9942_v2  ;;  %v4129_v35 = vmul.f32 %v8973_v34, %v4109_v23  ;;  %v8976_v2 = vld [vmem:[%s10394_s25 + $0x38] sm:$0xff] }
 0x6bd   :  { %v4114_v52 = vpop.permute.xlu1 %4113 }
 0x6be   :  { %v4130_v39 = vmul.f32 %v8974_v36, %v4114_v52  ;;  %v4131_v29 = vmul.f32 %v8975_v40, %v4114_v52  ;;  %v4132_v41 = vmul.f32 %v4114_v52, %v9947_v3  ;;  %v4133_v42 = vmul.f32 %v8976_v2, %v4114_v52 }
 0x6c0   :  { %v4142_v43 = vadd.f32 %v4130_v39, %v4126_v30  ;;  %v4149_v44 = vadd.f32 %v4131_v29, %v4127_v32  ;;  %v4156_v25 = vadd.f32 %v4132_v41, %v4128_v33  ;;  %v4163_v45 = vadd.f32 %v4133_v42, %v4129_v35 }
 0x6c1   :  { %v4119_v46 = vpop.permute.xlu0 %4118  ;;  %v4124_v28 = vpop.permute.xlu1 %4123  ;;  %v9154_v29 = vmov 1983009808  }
 0x6c2   :  { %v4143_v26 = vrot.slane %v4142_v43, 4  ;;  %v4150_v47 = vrot.slane %v4149_v44, 4  ;;  %v4157_v27 = vrot.slane %v4156_v25, 4  ;;  %v4164_v55 = vrot.slane %v4163_v45, 4 }
 0x6c3   :  { %v4134_v3 = vmul.f32 %v8977_v56, %v4119_v46  ;;  %v4135_v58 = vmul.f32 %v8978_v57, %v4119_v46  ;;  %v4136_v59 = vmul.f32 %v4119_v46, %v9984_v15  ;;  %v4137_v60 = vmul.f32 %v4119_v46, %v9952_v4 }
 0x6c4   :  { %v4144_v61 = vadd.f32 %v4143_v26, %v4142_v43  ;;  %v4151_v62 = vadd.f32 %v4150_v47, %v4149_v44  ;;  %v4158_v63 = vadd.f32 %v4157_v27, %v4156_v25  ;;  %v4165_v0 = vadd.f32 %v4164_v55, %v4163_v45 }
 0x6c5   :  { %v4138_v6 = vmul.f32 %v8979_v1, %v4124_v28  ;;  %v4139_v8 = vmul.f32 %v8980_v7, %v4124_v28  ;;  %v4140_v10 = vmul.f32 %v4124_v28, %v9989_v16  ;;  %v4141_v15 = vmul.f32 %v4124_v28, %v9957_v5 }
 0x6c6   :  { %v4145_v11 = vrot.slane %v4144_v61, 2  ;;  %v4152_v4 = vrot.slane %v4151_v62, 2  ;;  %v4159_v12 = vrot.slane %v4158_v63, 2  ;;  %v4166_v13 = vrot.slane %v4165_v0, 2 }
 0x6c7   :  { %v4170_v14 = vadd.f32 %v4138_v6, %v4134_v3  ;;  %v4177_v18 = vadd.f32 %v4139_v8, %v4135_v58  ;;  %v4184_v19 = vadd.f32 %v4140_v10, %v4136_v59  ;;  %v4191_v20 = vadd.f32 %v4141_v15, %v4137_v60 }
 0x6c8   :  { %v4146_v21 = vadd.f32 %v4145_v11, %v4144_v61  ;;  %v4153_v22 = vadd.f32 %v4152_v4, %v4151_v62  ;;  %v4160_v23 = vadd.f32 %v4159_v12, %v4158_v63  ;;  %v4167_v24 = vadd.f32 %v4166_v13, %v4165_v0 }
 0x6c9   :  { %v4171_v30 = vrot.slane %v4170_v14, 4  ;;  %v4178_v31 = vrot.slane %v4177_v18, 4  ;;  %v4185_v32 = vrot.slane %v4184_v19, 4  ;;  %v4192_v33 = vrot.slane %v4191_v20, 4 }
 0x6ca   :  { %v4147_v34 = vrot.slane %v4146_v21, 1  ;;  %v4154_v16 = vrot.slane %v4153_v22, 1  ;;  %v4161_v39 = vrot.slane %v4160_v23, 1  ;;  %v4168_v40 = vrot.slane %v4167_v24, 1 }
 0x6cb   :  { %v4172_v35 = vadd.f32 %v4171_v30, %v4170_v14  ;;  %v4179_v5 = vadd.f32 %v4178_v31, %v4177_v18  ;;  %v4186_v52 = vadd.f32 %v4185_v32, %v4184_v19  ;;  %v4193_v36 = vadd.f32 %v4192_v33, %v4191_v20 }
 0x6cc   :  { %v6703_v41 = vunpack.c.l.s4 %v9154_v29  ;;  %v4148_v25 = vadd.f32 %v4147_v34, %v4146_v21  ;;  %v4155_v45 = vadd.f32 %v4154_v16, %v4153_v22  ;;  %v10156_v55 = vadd.f32 %v4161_v39, %v4160_v23  ;;  %v8551_v34 = vld [vmem:[#allocation9 + $0x200] ss:$16 sps:$4 sm:$0xff]   ;;  %v8554_v16 = vld [vmem:[#allocation9 + $0x208] ss:$16 sps:$4 sm:$0xff]   ;;  %v8562_v39 = vld [vmem:[#allocation9 + $0x22c] ss:$16 sps:$4 sm:$0xff]  }
 0x6cd   :  { %v4173_v2 = vrot.slane %v4172_v35, 2  ;;  %v4180_v42 = vrot.slane %v4179_v5, 2  ;;  %v4187_v43 = vrot.slane %v4186_v52, 2  ;;  %v4194_v44 = vrot.slane %v4193_v36, 2 }
 0x6ce   :  { %v4169_v28 = vadd.f32 %v4168_v40, %v4167_v24  ;;  %v6704_v56 = vunpack.c.0.s8 %v6703_v41  ;;  %v4198_v60 = vpack.c.bf16 %v4148_v25, %v4148_v25  ;;  %v4199_v61 = vpack.c.bf16 %v4155_v45, %v4155_v45 }
 0x6cf   :  { %v4174_v46 = vadd.f32 %v4173_v2, %v4172_v35  ;;  %v4181_v26 = vadd.f32 %v4180_v42, %v4179_v5  ;;  %v4188_v47 = vadd.f32 %v4187_v43, %v4186_v52  ;;  %v4195_v27 = vadd.f32 %v4194_v44, %v4193_v36  ;;  %v8559_v36 = vld [vmem:[#allocation9 + $0x224] ss:$16 sps:$4 sm:$0xff]   ;;  %v8557_v2 = vld [vmem:[#allocation9 + $0x220] ss:$16 sps:$4 sm:$0xff]   ;;  %v8560_v42 = vld [vmem:[#allocation9 + $0x228] ss:$16 sps:$4 sm:$0xff]  }
 0x6d0   :  { %v6700_v6 = vcombine.low %v4148_v25, %v4155_v45  ;;  %v4201_v7 = vpack.c.bf16 %v4169_v28, %v4169_v28  ;;  %v10161_v8 = vsub.s32 %v6704_v56, %v9844_v48  ;;  %v6701_v4 = vcombine.low %v10156_v55, %v4169_v28  ;;  %v8565_v43 = vld [vmem:[#allocation9 + $0x244] ss:$16 sps:$4 sm:$0xff]   ;;  %v8568_v44 = vld [vmem:[#allocation9 + $0x24c] ss:$16 sps:$4 sm:$0xff]  }
 0x6d1   :  { %v4175_v3 = vrot.slane %v4174_v46, 1  ;;  %v4189_v57 = vrot.slane %v4188_v47, 1  ;;  %v4182_v58 = vrot.slane %v4181_v26, 1  ;;  %v4196_v59 = vrot.slane %v4195_v27, 1  ;;  %v8571_v28 = vld [vmem:[#allocation9 + $0x264] ss:$16 sps:$4 sm:$0xff]  }
 0x6d2   :  { %v4364_v12 = vunpack.c.l.b16 %v4198_v60  ;;  %v4365_v19 = vunpack.c.l.b16 %v4199_v61  ;;  %v4367_v22 = vunpack.c.l.b16 %v4201_v7  ;;  %v6708_v31 = vrot.slane %v6700_v6, %v10161_v8  ;;  %v8574_v56 = vld [vmem:[#allocation9 + $0x26c] ss:$16 sps:$4 sm:$0xff]   ;;  %v8575_v60 = vld [vmem:[#allocation9 + $0x280] ss:$16 sps:$4 sm:$0xff]   ;;  %v8578_v61 = vld [vmem:[#allocation9 + $0x288] ss:$16 sps:$4 sm:$0xff]  }
 0x6d3   :  { %v4176_v62 = vadd.f32 %v4175_v3, %v4174_v46  ;;  %v10158_v63 = vadd.f32 %v4189_v57, %v4188_v47  ;;  %v4183_v0 = vadd.f32 %v4182_v58, %v4181_v26  ;;  %v4197_v1 = vadd.f32 %v4196_v59, %v4195_v27  ;;  %v8563_v26 = vld [vmem:[#allocation9 + $0x240] ss:$16 sps:$4 sm:$0xff]   ;;  %v8566_v47 = vld [vmem:[#allocation9 + $0x248] ss:$16 sps:$4 sm:$0xff]   ;;  %v8577_v58 = vld [vmem:[#allocation9 + $0x284] ss:$16 sps:$4 sm:$0xff]  }
 0x6d4   :  { %v6715_v32 = vrot.slane %v6701_v4, %v10161_v8  ;;  %v8569_v3 = vld [vmem:[#allocation9 + $0x260] ss:$16 sps:$4 sm:$0xff]   ;;  %v8572_v57 = vld [vmem:[#allocation9 + $0x268] ss:$16 sps:$4 sm:$0xff]   ;;  %v8580_v59 = vld [vmem:[#allocation9 + $0x28c] ss:$16 sps:$4 sm:$0xff]  }
 0x6d5   :  { %v4202_v10 = vpack.c.bf16 %v4176_v62, %v4176_v62  ;;  %v4203_v15 = vpack.c.bf16 %v4183_v0, %v4183_v0  ;;  %v4205_v11 = vpack.c.bf16 %v4197_v1, %v4197_v1  ;;  %v6717_v13 = vcombine.low %v4176_v62, %v4183_v0  ;;  %v8583_v62 = vld [vmem:[#allocation9 + $0x2a4] ss:$16 sps:$4 sm:$0xff]   ;;  %v8586_v0 = vld [vmem:[#allocation9 + $0x2ac] ss:$16 sps:$4 sm:$0xff]   ;;  %v8584_v6 = vld [vmem:[#allocation9 + $0x2a8] ss:$16 sps:$4 sm:$0xff]  }
 0x6d6   :  { %v6718_v14 = vcombine.low %v10158_v63, %v4197_v1  ;;  %v6716_v29 = vcombine.low %v6708_v31, %v6715_v32  ;;  %v8581_v1 = vld [vmem:[#allocation9 + $0x2a0] ss:$16 sps:$4 sm:$0xff]   ;;  %v8589_v7 = vld [vmem:[#allocation9 + $0x2c4] ss:$16 sps:$4 sm:$0xff]   ;;  %v8616_v31 = vld [vmem:[#allocation9 + $0x34c] ss:$16 sps:$4 sm:$0xff]  }
 0x6d7   :  { %v4368_v18 = vunpack.c.l.b16 %v4202_v10  ;;  %v4369_v20 = vunpack.c.l.b16 %v4203_v15  ;;  %v4371_v21 = vunpack.c.l.b16 %v4205_v11  ;;  %v6725_v23 = vrot.slane %v6717_v13, %v10161_v8  ;;  %v8592_v10 = vld [vmem:[#allocation9 + $0x2cc] ss:$16 sps:$4 sm:$0xff]   ;;  %v8587_v15 = vld [vmem:[#allocation9 + $0x2c0] ss:$16 sps:$4 sm:$0xff]   ;;  %v8590_v11 = vld [vmem:[#allocation9 + $0x2c8] ss:$16 sps:$4 sm:$0xff]  }
 0x6d8   :  { %v6732_v24 = vrot.slane %v6718_v14, %v10161_v8  ;;  %v8595_v4 = vld [vmem:[#allocation9 + $0x2e4] ss:$16 sps:$4 sm:$0xff]   ;;  %v8593_v13 = vld [vmem:[#allocation9 + $0x2e0] ss:$16 sps:$4 sm:$0xff]   ;;  %v8596_v14 = vld [vmem:[#allocation9 + $0x2e8] ss:$16 sps:$4 sm:$0xff]  }
 0x6d9   :  { %v4373_v48 = vsel %vm1757_vm1, %v4369_v20, %v4365_v19  ;;  %v4372_v30 = vsel %vm1757_vm1, %v4368_v18, %v4364_v12  ;;  %v4375_v5 = vsel %vm1757_vm1, %v4371_v21, %v4367_v22  ;;  %v8598_v12 = vld [vmem:[#allocation9 + $0x2ec] ss:$16 sps:$4 sm:$0xff]   ;;  %v8601_v18 = vld [vmem:[#allocation9 + $0x304] ss:$16 sps:$4 sm:$0xff]   ;;  %v8599_v20 = vld [vmem:[#allocation9 + $0x300] ss:$16 sps:$4 sm:$0xff]  }
 0x6da   :  { %v4377_v33 = vpack.c.b16 %v4373_v48, %v4373_v48  ;;  %v4376_v35 = vpack.c.b16 %v4372_v30, %v4372_v30  ;;  %v6733_v52 = vcombine.low %v6725_v23, %v6732_v24  ;;  %v4379_v40 = vpack.c.b16 %v4375_v5, %v4375_v5  ;;  %v8604_v19 = vld [vmem:[#allocation9 + $0x30c] ss:$16 sps:$4 sm:$0xff]   ;;  %v8602_v21 = vld [vmem:[#allocation9 + $0x308] ss:$16 sps:$4 sm:$0xff]   ;;  %v8607_v22 = vld [vmem:[#allocation9 + $0x324] ss:$16 sps:$4 sm:$0xff]  }
 0x6db   :  { %v8610_v23 = vld [vmem:[#allocation9 + $0x32c] ss:$16 sps:$4 sm:$0xff]   ;;  %v8605_v24 = vld [vmem:[#allocation9 + $0x320] ss:$16 sps:$4 sm:$0xff]   ;;  %v8608_v48 = vld [vmem:[#allocation9 + $0x328] ss:$16 sps:$4 sm:$0xff]  }
 0x6dc   :  { %5056 = vmatprep.mubr.bf16.mxu0 %v4377_v33  ;;  %5138 = vmatprep.mubr.bf16.mxu1 %v4377_v33  ;;  %v6738_v41 = vrot.slane %v6733_v52, 7  ;;  %v8613_v30 = vld [vmem:[#allocation9 + $0x344] ss:$16 sps:$4 sm:$0xff]   ;;  %v8611_v32 = vld [vmem:[#allocation9 + $0x340] ss:$16 sps:$4 sm:$0xff]  }
 0x6dd   :  { %5057 = vmatmul.mubr.bf16.vlgmr.msra.gmra.mrb[28].mxu0 %v4376_v35  ;;  %5139 = vmatmul.mubr.bf16.vlgmr.msra.gmra.mrb[28].mxu1 %v4376_v35  ;;  %v8614_v33 = vld [vmem:[#allocation9 + $0x348] ss:$16 sps:$4 sm:$0xff]   ;;  %v8617_v35 = vld [vmem:[#allocation9 + $0x360] ss:$16 sps:$4 sm:$0xff]   ;;  %v8625_v52 = vld [vmem:[#allocation9 + $0x384] ss:$16 sps:$4 sm:$0xff]  }
 0x6de   :  { %5066 = vmatpush1.bf16.msra.mxu0 %v8551_v34  ;;  %5148 = vmatpush1.bf16.msra.mxu1 %v8554_v16  ;;  %v6739_v25 = vsel %vm1757_vm1, %v6738_v41, %v6716_v29  ;;  %v8619_v34 = vld [vmem:[#allocation9 + $0x364] ss:$16 sps:$4 sm:$0xff]   ;;  %v8622_v16 = vld [vmem:[#allocation9 + $0x36c] ss:$16 sps:$4 sm:$0xff]   ;;  %v8620_v5 = vld [vmem:[#allocation9 + $0x368] ss:$16 sps:$4 sm:$0xff]  }
 0x6df   :  { %5097 = vmatprep.mubr.bf16.mxu0 %v4379_v40  ;;  %5179 = vmatprep.mubr.bf16.mxu1 %v4379_v40  ;;  %v6741_v45 = vsel %vm6740_vm2, %v6738_v41, %v6739_v25  ;;  %v8626_v40 = vld [vmem:[#allocation9 + $0x388] ss:$16 sps:$4 sm:$0xff]   ;;  %v8631_v29 = vld [vmem:[#allocation9 + $0x3a4] ss:$16 sps:$4 sm:$0xff]   ;;  %v4204_v25 = vpack.c.bf16 %v10158_v63, %v10158_v63 }
 0x6e0   :  { %5067 = vmatprep.subr.bf16.mxu0 %v8559_v36  ;;  %5149 = vmatprep.subr.bf16.mxu1 %v8562_v39  ;;  %v6743_v46 = vsel %vm6742_vm3, %v6738_v41, %v6741_v45  ;;  %v8628_v36 = vld [vmem:[#allocation9 + $0x38c] ss:$16 sps:$4 sm:$0xff]   ;;  %v8623_v39 = vld [vmem:[#allocation9 + $0x380] ss:$16 sps:$4 sm:$0xff]   ;;  %v8649_v63 = vld [vmem:[#allocation8 + $0x4] ss:$16 sps:$4 sm:$0xff]  }
 0x6e1   :  { %v6745_v27 = vsel %vm6744_vm4, %v6738_v41, %v6743_v46  ;;  %v8634_v41 = vld [vmem:[#allocation9 + $0x3ac] ss:$16 sps:$4 sm:$0xff]   ;;  %v8635_v45 = vld [vmem:[#allocation9 + $0x3c0] ss:$16 sps:$4 sm:$0xff]   ;;  %v8638_v46 = vld [vmem:[#allocation9 + $0x3c8] ss:$16 sps:$4 sm:$0xff]  }
 0x6e2   :  { %5068 = vmatpush1.bf16.msra.mxu0 %v8557_v2  ;;  %5150 = vmatpush1.bf16.msra.mxu1 %v8560_v42  ;;  %6747 = vst [vmem:[#allocation12] sm:$0xff] %v6745_v27  ;;  %v8629_v2 = vld [vmem:[#allocation9 + $0x3a0] ss:$16 sps:$4 sm:$0xff]   ;;  %v8632_v42 = vld [vmem:[#allocation9 + $0x3a8] ss:$16 sps:$4 sm:$0xff]  }
 0x6e3   :  { %5069 = vmatprep.subr.bf16.mxu0 %v8565_v43  ;;  %5151 = vmatprep.subr.bf16.mxu1 %v8568_v44  ;;  %v8637_v43 = vld [vmem:[#allocation9 + $0x3c4] ss:$16 sps:$4 sm:$0xff]   ;;  %v8640_v44 = vld [vmem:[#allocation9 + $0x3cc] ss:$16 sps:$4 sm:$0xff]  }
 0x6e4   :  { %v8646_v27 = vld [vmem:[#allocation9 + $0x3ec] ss:$16 sps:$4 sm:$0xff]  }
 0x6e6   :  { %5070 = vmatpush1.bf16.msra.mxu0 %v8563_v26  ;;  %5152 = vmatpush1.bf16.msra.mxu1 %v8566_v47  ;;  %v4200_v26 = vpack.c.bf16 %v10156_v55, %v10156_v55  ;;  %v8643_v47 = vld [vmem:[#allocation9 + $0x3e4] ss:$16 sps:$4 sm:$0xff]   ;;  %v8650_v55 = vld [vmem:[#allocation8 + $0x8] ss:$16 sps:$4 sm:$0xff]  }
 0x6e7   :  { %5071 = vmatprep.subr.bf16.mxu0 %v8571_v28  ;;  %5153 = vmatprep.subr.bf16.mxu1 %v8574_v56  ;;  %v4370_v28 = vunpack.c.l.b16 %v4204_v25  ;;  %v8641_v56 = vld [vmem:[#allocation9 + $0x3e0] ss:$16 sps:$4 sm:$0xff]   ;;  %v8710_v25 = vld [vmem:[#allocation8 + $0x148] ss:$16 sps:$4 sm:$0xff]  }
 0x6ea   :  { %5072 = vmatpush1.bf16.msra.mxu0 %v8569_v3  ;;  %5154 = vmatpush1.bf16.msra.mxu1 %v8572_v57  ;;  %v8644_v3 = vld [vmem:[#allocation9 + $0x3e8] ss:$16 sps:$4 sm:$0xff]   ;;  %v4366_v57 = vunpack.c.l.b16 %v4200_v26  ;;  %v8713_v26 = vld [vmem:[#allocation8 + $0x160] ss:$16 sps:$4 sm:$0xff]  }
 0x6eb   :  { %5073 = vmatprep.subr.bf16.mxu0 %v8577_v58  ;;  %5155 = vmatprep.subr.bf16.mxu1 %v8580_v59  ;;  %v8652_v58 = vld [vmem:[#allocation8 + $0xc] ss:$16 sps:$4 sm:$0xff]  }
 0x6ec   :  { %v4374_v59 = vsel %vm1757_vm1, %v4370_v28, %v4366_v57  ;;  %v8724_v28 = vld [vmem:[#allocation8 + $0x18c] ss:$16 sps:$4 sm:$0xff]   ;;  %v8727_v57 = vld [vmem:[#allocation8 + $0x1a4] ss:$16 sps:$4 sm:$0xff]  }
 0x6ee   :  { %5074 = vmatpush1.bf16.msra.mxu0 %v8575_v60  ;;  %5156 = vmatpush1.bf16.msra.mxu1 %v8578_v61  ;;  %v8647_v60 = vld [vmem:[#allocation8] ss:$16 sps:$4 sm:$0xff]   ;;  %v4378_v61 = vpack.c.b16 %v4374_v59, %v4374_v59  ;;  %v8728_v59 = vld [vmem:[#allocation8 + $0x1a8] ss:$16 sps:$4 sm:$0xff]  }
 0x6ef   :  { %5075 = vmatprep.subr.bf16.mxu0 %v8583_v62  ;;  %5157 = vmatprep.subr.bf16.mxu1 %v8586_v0  ;;  %v8655_v62 = vld [vmem:[#allocation8 + $0x24] ss:$16 sps:$4 sm:$0xff]   ;;  %v8658_v0 = vld [vmem:[#allocation8 + $0x2c] ss:$16 sps:$4 sm:$0xff]  }
 0x6f2   :  { %5076 = vmatpush1.bf16.msra.mxu0 %v8581_v1  ;;  %5158 = vmatpush1.bf16.msra.mxu1 %v8584_v6  ;;  %v8653_v1 = vld [vmem:[#allocation8 + $0x20] ss:$16 sps:$4 sm:$0xff]   ;;  %v8656_v6 = vld [vmem:[#allocation8 + $0x28] ss:$16 sps:$4 sm:$0xff]  }
 0x6f3   :  { %5077 = vmatprep.subr.bf16.mxu0 %v8589_v7  ;;  %5159 = vmatprep.subr.bf16.mxu1 %v8592_v10  ;;  %v8661_v7 = vld [vmem:[#allocation8 + $0x44] ss:$16 sps:$4 sm:$0xff]   ;;  %v8664_v10 = vld [vmem:[#allocation8 + $0x4c] ss:$16 sps:$4 sm:$0xff]  }
 0x6f6   :  { %5078 = vmatpush1.bf16.msra.mxu0 %v8587_v15  ;;  %5160 = vmatpush1.bf16.msra.mxu1 %v8590_v11  ;;  %v8659_v15 = vld [vmem:[#allocation8 + $0x40] ss:$16 sps:$4 sm:$0xff]   ;;  %v8662_v11 = vld [vmem:[#allocation8 + $0x48] ss:$16 sps:$4 sm:$0xff]  }
 0x6f7   :  { %5079 = vmatprep.subr.bf16.mxu0 %v8595_v4  ;;  %5161 = vmatprep.subr.bf16.mxu1 %v8598_v12  ;;  %v8667_v4 = vld [vmem:[#allocation8 + $0x64] ss:$16 sps:$4 sm:$0xff]   ;;  %v8670_v12 = vld [vmem:[#allocation8 + $0x6c] ss:$16 sps:$4 sm:$0xff]  }
 0x6fa   :  { %5080 = vmatpush1.bf16.msra.mxu0 %v8593_v13  ;;  %5162 = vmatpush1.bf16.msra.mxu1 %v8596_v14  ;;  %v8665_v13 = vld [vmem:[#allocation8 + $0x60] ss:$16 sps:$4 sm:$0xff]   ;;  %v8668_v14 = vld [vmem:[#allocation8 + $0x68] ss:$16 sps:$4 sm:$0xff]  }
 0x6fb   :  { %5081 = vmatprep.subr.bf16.mxu0 %v8601_v18  ;;  %5163 = vmatprep.subr.bf16.mxu1 %v8604_v19  ;;  %v8673_v18 = vld [vmem:[#allocation8 + $0x84] ss:$16 sps:$4 sm:$0xff]   ;;  %v8676_v19 = vld [vmem:[#allocation8 + $0x8c] ss:$16 sps:$4 sm:$0xff]  }
 0x6fe   :  { %5082 = vmatpush1.bf16.msra.mxu0 %v8599_v20  ;;  %5164 = vmatpush1.bf16.msra.mxu1 %v8602_v21  ;;  %v8671_v20 = vld [vmem:[#allocation8 + $0x80] ss:$16 sps:$4 sm:$0xff]   ;;  %v8679_v21 = vld [vmem:[#allocation8 + $0xa4] ss:$16 sps:$4 sm:$0xff]  }
 0x6ff   :  { %5083 = vmatprep.subr.bf16.mxu0 %v8607_v22  ;;  %5165 = vmatprep.subr.bf16.mxu1 %v8610_v23  ;;  %v8682_v22 = vld [vmem:[#allocation8 + $0xac] ss:$16 sps:$4 sm:$0xff]   ;;  %v8677_v23 = vld [vmem:[#allocation8 + $0xa0] ss:$16 sps:$4 sm:$0xff]  }
 0x702   :  { %5084 = vmatpush1.bf16.msra.mxu0 %v8605_v24  ;;  %5166 = vmatpush1.bf16.msra.mxu1 %v8608_v48  ;;  %v8680_v24 = vld [vmem:[#allocation8 + $0xa8] ss:$16 sps:$4 sm:$0xff]   ;;  %v8685_v48 = vld [vmem:[#allocation8 + $0xc4] ss:$16 sps:$4 sm:$0xff]  }
 0x703   :  { %5085 = vmatprep.subr.bf16.mxu0 %v8613_v30  ;;  %5167 = vmatprep.subr.bf16.mxu1 %v8616_v31  ;;  %v8688_v30 = vld [vmem:[#allocation8 + $0xcc] ss:$16 sps:$4 sm:$0xff]   ;;  %v8683_v31 = vld [vmem:[#allocation8 + $0xc0] ss:$16 sps:$4 sm:$0xff]  }
 0x706   :  { %5086 = vmatpush1.bf16.msra.mxu0 %v8611_v32  ;;  %5168 = vmatpush1.bf16.msra.mxu1 %v8614_v33  ;;  %v8686_v32 = vld [vmem:[#allocation8 + $0xc8] ss:$16 sps:$4 sm:$0xff]   ;;  %v8691_v33 = vld [vmem:[#allocation8 + $0xe4] ss:$16 sps:$4 sm:$0xff]  }
 0x707   :  { %5087 = vmatprep.subr.bf16.mxu0 %v8619_v34  ;;  %5169 = vmatprep.subr.bf16.mxu1 %v8622_v16  ;;  %v8694_v34 = vld [vmem:[#allocation8 + $0xec] ss:$16 sps:$4 sm:$0xff]   ;;  %v8689_v16 = vld [vmem:[#allocation8 + $0xe0] ss:$16 sps:$4 sm:$0xff]  }
 0x70a   :  { %5088 = vmatpush1.bf16.msra.mxu0 %v8617_v35  ;;  %5170 = vmatpush1.bf16.msra.mxu1 %v8620_v5  ;;  %v8692_v35 = vld [vmem:[#allocation8 + $0xe8] ss:$16 sps:$4 sm:$0xff]   ;;  %v8697_v5 = vld [vmem:[#allocation8 + $0x104] ss:$16 sps:$4 sm:$0xff]  }
 0x70b   :  { %5089 = vmatprep.subr.bf16.mxu0 %v8625_v52  ;;  %5171 = vmatprep.subr.bf16.mxu1 %v8628_v36  ;;  %v8700_v52 = vld [vmem:[#allocation8 + $0x10c] ss:$16 sps:$4 sm:$0xff]   ;;  %v8695_v36 = vld [vmem:[#allocation8 + $0x100] ss:$16 sps:$4 sm:$0xff]  }
 0x70e   :  { %5090 = vmatpush1.bf16.msra.mxu0 %v8623_v39  ;;  %5172 = vmatpush1.bf16.msra.mxu1 %v8626_v40  ;;  %v8698_v39 = vld [vmem:[#allocation8 + $0x108] ss:$16 sps:$4 sm:$0xff]   ;;  %v8703_v40 = vld [vmem:[#allocation8 + $0x124] ss:$16 sps:$4 sm:$0xff]  }
 0x70f   :  { %5091 = vmatprep.subr.bf16.mxu0 %v8631_v29  ;;  %5173 = vmatprep.subr.bf16.mxu1 %v8634_v41  ;;  %v8706_v29 = vld [vmem:[#allocation8 + $0x12c] ss:$16 sps:$4 sm:$0xff]   ;;  %v8701_v41 = vld [vmem:[#allocation8 + $0x120] ss:$16 sps:$4 sm:$0xff]  }
 0x712   :  { %5092 = vmatpush1.bf16.msra.mxu0 %v8629_v2  ;;  %5174 = vmatpush1.bf16.msra.mxu1 %v8632_v42  ;;  %v8704_v2 = vld [vmem:[#allocation8 + $0x128] ss:$16 sps:$4 sm:$0xff]   ;;  %v8709_v42 = vld [vmem:[#allocation8 + $0x144] ss:$16 sps:$4 sm:$0xff]  }
 0x713   :  { %5093 = vmatprep.subr.bf16.mxu0 %v8637_v43  ;;  %5175 = vmatprep.subr.bf16.mxu1 %v8640_v44  ;;  %v8712_v43 = vld [vmem:[#allocation8 + $0x14c] ss:$16 sps:$4 sm:$0xff]   ;;  %v8707_v44 = vld [vmem:[#allocation8 + $0x140] ss:$16 sps:$4 sm:$0xff]  }
 0x716   :  { %5094 = vmatpush1.bf16.msra.mxu0 %v8635_v45  ;;  %5176 = vmatpush1.bf16.msra.mxu1 %v8638_v46  ;;  %v8715_v45 = vld [vmem:[#allocation8 + $0x164] ss:$16 sps:$4 sm:$0xff]   ;;  %v8718_v46 = vld [vmem:[#allocation8 + $0x16c] ss:$16 sps:$4 sm:$0xff]  }
 0x717   :  { %5095 = vmatprep.subr.bf16.mxu0 %v8643_v47  ;;  %5177 = vmatprep.subr.bf16.mxu1 %v8646_v27  ;;  %v8716_v47 = vld [vmem:[#allocation8 + $0x168] ss:$16 sps:$4 sm:$0xff]   ;;  %v8721_v27 = vld [vmem:[#allocation8 + $0x184] ss:$16 sps:$4 sm:$0xff]  }
 0x71a   :  { %5096 = vmatpush1.bf16.msra.mxu0 %v8641_v56  ;;  %5178 = vmatpush1.bf16.msra.mxu1 %v8644_v3  ;;  %v8719_v56 = vld [vmem:[#allocation8 + $0x180] ss:$16 sps:$4 sm:$0xff]   ;;  %v8722_v3 = vld [vmem:[#allocation8 + $0x188] ss:$16 sps:$4 sm:$0xff]  }
 0x71b   :  { %5978 = vmatprep.subr.bf16.mxu0 %v8649_v63  ;;  %6064 = vmatprep.subr.bf16.mxu1 %v8652_v58  ;;  %v8730_v63 = vld [vmem:[#allocation8 + $0x1ac] ss:$16 sps:$4 sm:$0xff]   ;;  %v8725_v58 = vld [vmem:[#allocation8 + $0x1a0] ss:$16 sps:$4 sm:$0xff]  }
 0x71d   :  { %5098 = vmatmul.mubr.bf16.vlgmr.msra.gmra.mrb[28].mxu0 %v4378_v61  ;;  %5180 = vmatmul.mubr.bf16.vlgmr.msra.gmra.mrb[28].mxu1 %v4378_v61  ;;  %v8731_v61 = vld [vmem:[#allocation8 + $0x1c0] ss:$16 sps:$4 sm:$0xff]  }
 0x71e   :  { %5979 = vmatpush1.bf16.msra.mxu0 %v8647_v60  ;;  %6065 = vmatpush1.bf16.msra.mxu1 %v8650_v55  ;;  %v8733_v60 = vld [vmem:[#allocation8 + $0x1c4] ss:$16 sps:$4 sm:$0xff]   ;;  %v8736_v55 = vld [vmem:[#allocation8 + $0x1cc] ss:$16 sps:$4 sm:$0xff]  }
 0x71f   :  { %5980 = vmatprep.subr.bf16.mxu0 %v8655_v62  ;;  %6066 = vmatprep.subr.bf16.mxu1 %v8658_v0  ;;  %v8734_v62 = vld [vmem:[#allocation8 + $0x1c8] ss:$16 sps:$4 sm:$0xff]   ;;  %v8739_v0 = vld [vmem:[#allocation8 + $0x1e4] ss:$16 sps:$4 sm:$0xff]  }
 0x720   :  { %6010 = vmatprep.mubr.bf16.mxu0 %v9474_v50  ;;  %6096 = vmatprep.mubr.bf16.mxu1 %v9474_v50  ;;  %v8674_v50 = vld [vmem:[#allocation8 + $0x88] ss:$16 sps:$4 sm:$0xff]  }
 0x722   :  { %5981 = vmatpush1.bf16.msra.mxu0 %v8653_v1  ;;  %6067 = vmatpush1.bf16.msra.mxu1 %v8656_v6  ;;  %v8742_v1 = vld [vmem:[#allocation8 + $0x1ec] ss:$16 sps:$4 sm:$0xff]   ;;  %v8737_v6 = vld [vmem:[#allocation8 + $0x1e0] ss:$16 sps:$4 sm:$0xff]  }
 0x723   :  { %5982 = vmatprep.subr.bf16.mxu0 %v8661_v7  ;;  %6068 = vmatprep.subr.bf16.mxu1 %v8664_v10  ;;  %v8740_v7 = vld [vmem:[#allocation8 + $0x1e8] ss:$16 sps:$4 sm:$0xff]   ;;  %v8745_v10 = vld [vmem:[#allocation8 + $0x204] ss:$16 sps:$4 sm:$0xff]  }
 0x726   :  { %5983 = vmatpush1.bf16.msra.mxu0 %v8659_v15  ;;  %6069 = vmatpush1.bf16.msra.mxu1 %v8662_v11  ;;  %v8748_v15 = vld [vmem:[#allocation8 + $0x20c] ss:$16 sps:$4 sm:$0xff]   ;;  %v8743_v11 = vld [vmem:[#allocation8 + $0x200] ss:$16 sps:$4 sm:$0xff]  }
 0x727   :  { %5984 = vmatprep.subr.bf16.mxu0 %v8667_v4  ;;  %6070 = vmatprep.subr.bf16.mxu1 %v8670_v12  ;;  %v8746_v4 = vld [vmem:[#allocation8 + $0x208] ss:$16 sps:$4 sm:$0xff]   ;;  %v8751_v12 = vld [vmem:[#allocation8 + $0x224] ss:$16 sps:$4 sm:$0xff]  }
 0x72a   :  { %5985 = vmatpush1.bf16.msra.mxu0 %v8665_v13  ;;  %6071 = vmatpush1.bf16.msra.mxu1 %v8668_v14  ;;  %v8754_v13 = vld [vmem:[#allocation8 + $0x22c] ss:$16 sps:$4 sm:$0xff]   ;;  %v8749_v14 = vld [vmem:[#allocation8 + $0x220] ss:$16 sps:$4 sm:$0xff]  }
 0x72b   :  { %5986 = vmatprep.subr.bf16.mxu0 %v8673_v18  ;;  %6072 = vmatprep.subr.bf16.mxu1 %v8676_v19  ;;  %v8752_v18 = vld [vmem:[#allocation8 + $0x228] ss:$16 sps:$4 sm:$0xff]   ;;  %v8757_v19 = vld [vmem:[#allocation8 + $0x244] ss:$16 sps:$4 sm:$0xff]  }
 0x72e   :  { %5987 = vmatpush1.bf16.msra.mxu0 %v8671_v20  ;;  %6073 = vmatpush1.bf16.msra.mxu1 %v8674_v50  ;;  %v8760_v20 = vld [vmem:[#allocation8 + $0x24c] ss:$16 sps:$4 sm:$0xff]   ;;  %v8755_v50 = vld [vmem:[#allocation8 + $0x240] ss:$16 sps:$4 sm:$0xff]  }
 0x72f   :  { %5988 = vmatprep.subr.bf16.mxu0 %v8679_v21  ;;  %6074 = vmatprep.subr.bf16.mxu1 %v8682_v22  ;;  %v8758_v21 = vld [vmem:[#allocation8 + $0x248] ss:$16 sps:$4 sm:$0xff]   ;;  %v8763_v22 = vld [vmem:[#allocation8 + $0x264] ss:$16 sps:$4 sm:$0xff]  }
 0x732   :  { %5989 = vmatpush1.bf16.msra.mxu0 %v8677_v23  ;;  %6075 = vmatpush1.bf16.msra.mxu1 %v8680_v24  ;;  %v8761_v23 = vld [vmem:[#allocation8 + $0x260] ss:$16 sps:$4 sm:$0xff]   ;;  %v8764_v24 = vld [vmem:[#allocation8 + $0x268] ss:$16 sps:$4 sm:$0xff]  }
 0x733   :  { %5990 = vmatprep.subr.bf16.mxu0 %v8685_v48  ;;  %6076 = vmatprep.subr.bf16.mxu1 %v8688_v30  ;;  %v8769_v48 = vld [vmem:[#allocation8 + $0x284] ss:$16 sps:$4 sm:$0xff]   ;;  %v8772_v30 = vld [vmem:[#allocation8 + $0x28c] ss:$16 sps:$4 sm:$0xff]  }
 0x736   :  { %5991 = vmatpush1.bf16.msra.mxu0 %v8683_v31  ;;  %6077 = vmatpush1.bf16.msra.mxu1 %v8686_v32  ;;  %v8767_v31 = vld [vmem:[#allocation8 + $0x280] ss:$16 sps:$4 sm:$0xff]   ;;  %v8775_v32 = vld [vmem:[#allocation8 + $0x2a4] ss:$16 sps:$4 sm:$0xff]  }
 0x737   :  { %5992 = vmatprep.subr.bf16.mxu0 %v8691_v33  ;;  %6078 = vmatprep.subr.bf16.mxu1 %v8694_v34  ;;  %v8778_v33 = vld [vmem:[#allocation8 + $0x2ac] ss:$16 sps:$4 sm:$0xff]   ;;  %v8773_v34 = vld [vmem:[#allocation8 + $0x2a0] ss:$16 sps:$4 sm:$0xff]  }
 0x73a   :  { %5993 = vmatpush1.bf16.msra.mxu0 %v8689_v16  ;;  %6079 = vmatpush1.bf16.msra.mxu1 %v8692_v35  ;;  %v8776_v16 = vld [vmem:[#allocation8 + $0x2a8] ss:$16 sps:$4 sm:$0xff]   ;;  %v8781_v35 = vld [vmem:[#allocation8 + $0x2c4] ss:$16 sps:$4 sm:$0xff]  }
 0x73b   :  { %5994 = vmatprep.subr.bf16.mxu0 %v8697_v5  ;;  %6080 = vmatprep.subr.bf16.mxu1 %v8700_v52  ;;  %v8784_v5 = vld [vmem:[#allocation8 + $0x2cc] ss:$16 sps:$4 sm:$0xff]   ;;  %v8779_v52 = vld [vmem:[#allocation8 + $0x2c0] ss:$16 sps:$4 sm:$0xff]  }
 0x73e   :  { %5995 = vmatpush1.bf16.msra.mxu0 %v8695_v36  ;;  %6081 = vmatpush1.bf16.msra.mxu1 %v8698_v39  ;;  %v8782_v36 = vld [vmem:[#allocation8 + $0x2c8] ss:$16 sps:$4 sm:$0xff]   ;;  %v8787_v39 = vld [vmem:[#allocation8 + $0x2e4] ss:$16 sps:$4 sm:$0xff]  }
 0x73f   :  { %5996 = vmatprep.subr.bf16.mxu0 %v8703_v40  ;;  %6082 = vmatprep.subr.bf16.mxu1 %v8706_v29  ;;  %v8790_v40 = vld [vmem:[#allocation8 + $0x2ec] ss:$16 sps:$4 sm:$0xff]   ;;  %v8785_v29 = vld [vmem:[#allocation8 + $0x2e0] ss:$16 sps:$4 sm:$0xff]  }
 0x742   :  { %5997 = vmatpush1.bf16.msra.mxu0 %v8701_v41  ;;  %6083 = vmatpush1.bf16.msra.mxu1 %v8704_v2  ;;  %v8788_v41 = vld [vmem:[#allocation8 + $0x2e8] ss:$16 sps:$4 sm:$0xff]   ;;  %v8793_v2 = vld [vmem:[#allocation8 + $0x304] ss:$16 sps:$4 sm:$0xff]  }
 0x743   :  { %5998 = vmatprep.subr.bf16.mxu0 %v8709_v42  ;;  %6084 = vmatprep.subr.bf16.mxu1 %v8712_v43  ;;  %v8796_v42 = vld [vmem:[#allocation8 + $0x30c] ss:$16 sps:$4 sm:$0xff]   ;;  %v8791_v43 = vld [vmem:[#allocation8 + $0x300] ss:$16 sps:$4 sm:$0xff]  }
 0x746   :  { %5999 = vmatpush1.bf16.msra.mxu0 %v8707_v44  ;;  %6085 = vmatpush1.bf16.msra.mxu1 %v8710_v25  ;;  %v8794_v44 = vld [vmem:[#allocation8 + $0x308] ss:$16 sps:$4 sm:$0xff]   ;;  %v8799_v25 = vld [vmem:[#allocation8 + $0x324] ss:$16 sps:$4 sm:$0xff]  }
 0x747   :  { %6000 = vmatprep.subr.bf16.mxu0 %v8715_v45  ;;  %6086 = vmatprep.subr.bf16.mxu1 %v8718_v46  ;;  %v8802_v45 = vld [vmem:[#allocation8 + $0x32c] ss:$16 sps:$4 sm:$0xff]   ;;  %v8797_v46 = vld [vmem:[#allocation8 + $0x320] ss:$16 sps:$4 sm:$0xff]  }
 0x74a   :  { %6001 = vmatpush1.bf16.msra.mxu0 %v8713_v26  ;;  %6087 = vmatpush1.bf16.msra.mxu1 %v8716_v47  ;;  %v8800_v26 = vld [vmem:[#allocation8 + $0x328] ss:$16 sps:$4 sm:$0xff]   ;;  %v8805_v47 = vld [vmem:[#allocation8 + $0x344] ss:$16 sps:$4 sm:$0xff]  }
 0x74b   :  { %6002 = vmatprep.subr.bf16.mxu0 %v8721_v27  ;;  %6088 = vmatprep.subr.bf16.mxu1 %v8724_v28  ;;  %v8808_v27 = vld [vmem:[#allocation8 + $0x34c] ss:$16 sps:$4 sm:$0xff]   ;;  %v8803_v28 = vld [vmem:[#allocation8 + $0x340] ss:$16 sps:$4 sm:$0xff]  }
 0x74e   :  { %6003 = vmatpush1.bf16.msra.mxu0 %v8719_v56  ;;  %6089 = vmatpush1.bf16.msra.mxu1 %v8722_v3  ;;  %v8806_v56 = vld [vmem:[#allocation8 + $0x348] ss:$16 sps:$4 sm:$0xff]   ;;  %v8811_v3 = vld [vmem:[#allocation8 + $0x364] ss:$16 sps:$4 sm:$0xff]  }
 0x74f   :  { %6004 = vmatprep.subr.bf16.mxu0 %v8727_v57  ;;  %6090 = vmatprep.subr.bf16.mxu1 %v8730_v63  ;;  %v8814_v57 = vld [vmem:[#allocation8 + $0x36c] ss:$16 sps:$4 sm:$0xff]   ;;  %v8809_v63 = vld [vmem:[#allocation8 + $0x360] ss:$16 sps:$4 sm:$0xff]  }
 0x752   :  { %6005 = vmatpush1.bf16.msra.mxu0 %v8725_v58  ;;  %6091 = vmatpush1.bf16.msra.mxu1 %v8728_v59  ;;  %v8812_v58 = vld [vmem:[#allocation8 + $0x368] ss:$16 sps:$4 sm:$0xff]   ;;  %v8817_v59 = vld [vmem:[#allocation8 + $0x384] ss:$16 sps:$4 sm:$0xff]  }
 0x753   :  { %6006 = vmatprep.subr.bf16.mxu0 %v8733_v60  ;;  %6092 = vmatprep.subr.bf16.mxu1 %v8736_v55  ;;  %v8820_v60 = vld [vmem:[#allocation8 + $0x38c] ss:$16 sps:$4 sm:$0xff]   ;;  %v8815_v55 = vld [vmem:[#allocation8 + $0x380] ss:$16 sps:$4 sm:$0xff]  }
 0x756   :  { %6007 = vmatpush1.bf16.msra.mxu0 %v8731_v61  ;;  %6093 = vmatpush1.bf16.msra.mxu1 %v8734_v62  ;;  %v8818_v61 = vld [vmem:[#allocation8 + $0x388] ss:$16 sps:$4 sm:$0xff]   ;;  %v8823_v62 = vld [vmem:[#allocation8 + $0x3a4] ss:$16 sps:$4 sm:$0xff]  }
 0x757   :  { %6008 = vmatprep.subr.bf16.mxu0 %v8739_v0  ;;  %6094 = vmatprep.subr.bf16.mxu1 %v8742_v1  ;;  %v8826_v0 = vld [vmem:[#allocation8 + $0x3ac] ss:$16 sps:$4 sm:$0xff]   ;;  %v8821_v1 = vld [vmem:[#allocation8 + $0x3a0] ss:$16 sps:$4 sm:$0xff]  }
 0x75a   :  { %6009 = vmatpush1.bf16.msra.mxu0 %v8737_v6  ;;  %6095 = vmatpush1.bf16.msra.mxu1 %v8740_v7  ;;  %v8824_v6 = vld [vmem:[#allocation8 + $0x3a8] ss:$16 sps:$4 sm:$0xff]   ;;  %v8829_v7 = vld [vmem:[#allocation8 + $0x3c4] ss:$16 sps:$4 sm:$0xff]  }
 0x75b   :  { %6021 = vmatprep.subr.bf16.mxu0 %v8745_v10  ;;  %6107 = vmatprep.subr.bf16.mxu1 %v8748_v15  ;;  %v8832_v10 = vld [vmem:[#allocation8 + $0x3cc] ss:$16 sps:$4 sm:$0xff]   ;;  %v8827_v15 = vld [vmem:[#allocation8 + $0x3c0] ss:$16 sps:$4 sm:$0xff]  }
 0x75d   :  { %6011 = vmatmul.mubr.bf16.vlgmr.msra.gmra.mrb[32].mxu0 %v9544_v9  ;;  %6097 = vmatmul.mubr.bf16.vlgmr.msra.gmra.mrb[32].mxu1 %v9544_v9  ;;  %v8766_v9 = vld [vmem:[#allocation8 + $0x26c] ss:$16 sps:$4 sm:$0xff]  }
 0x75e   :  { %6022 = vmatpush1.bf16.msra.mxu0 %v8743_v11  ;;  %6108 = vmatpush1.bf16.msra.mxu1 %v8746_v4  ;;  %v8830_v11 = vld [vmem:[#allocation8 + $0x3c8] ss:$16 sps:$4 sm:$0xff]   ;;  %v8835_v4 = vld [vmem:[#allocation8 + $0x3e4] ss:$16 sps:$4 sm:$0xff]  }
 0x75f   :  { %6023 = vmatprep.subr.bf16.mxu0 %v8751_v12  ;;  %6109 = vmatprep.subr.bf16.mxu1 %v8754_v13  ;;  %v8838_v12 = vld [vmem:[#allocation8 + $0x3ec] ss:$16 sps:$4 sm:$0xff]   ;;  %v8833_v13 = vld [vmem:[#allocation8 + $0x3e0] ss:$16 sps:$4 sm:$0xff]  }
 0x760   :  { %6053 = vmatprep.mubr.bf16.mxu0 %v9629_v37  ;;  %6139 = vmatprep.mubr.bf16.mxu1 %v9629_v37  ;;  %v8770_v37 = vld [vmem:[#allocation8 + $0x288] ss:$16 sps:$4 sm:$0xff]  }
 0x762   :  { %6024 = vmatpush1.bf16.msra.mxu0 %v8749_v14  ;;  %6110 = vmatpush1.bf16.msra.mxu1 %v8752_v18  ;;  %v8836_v14 = vld [vmem:[#allocation8 + $0x3e8] ss:$16 sps:$4 sm:$0xff]   ;;  %v8839_v18 = vld [vmem:[%s10385_s14 + $0x40] sm:$0xff]  }
 0x763   :  { %6025 = vmatprep.subr.bf16.mxu0 %v8757_v19  ;;  %6111 = vmatprep.subr.bf16.mxu1 %v8760_v20  ;;  %v8840_v19 = vld [vmem:[%s10385_s14 + $0xc0] sm:$0xff]  }
 0x764   :  { %v8841_v20 = vld [vmem:[%s10385_s14] sm:$0xff]  }
 0x766   :  { %6026 = vmatpush1.bf16.msra.mxu0 %v8755_v50  ;;  %6112 = vmatpush1.bf16.msra.mxu1 %v8758_v21  ;;  %v8842_v50 = vld [vmem:[%s10385_s14 + $0x80] sm:$0xff]   ;;  %v8843_v21 = vld [vmem:[%s10385_s14 + $0x48] sm:$0xff]  }
 0x767   :  { %6027 = vmatprep.subr.bf16.mxu0 %v8763_v22  ;;  %6113 = vmatprep.subr.bf16.mxu1 %v8766_v9  ;;  %v8844_v22 = vld [vmem:[%s10385_s14 + $0xc8] sm:$0xff]  }
 0x768   :  { %v8845_v9 = vld [vmem:[%s10385_s14 + $0x8] sm:$0xff]  }
 0x76a   :  { %6028 = vmatpush1.bf16.msra.mxu0 %v8761_v23  ;;  %6114 = vmatpush1.bf16.msra.mxu1 %v8764_v24  ;;  %v8846_v23 = vld [vmem:[%s10385_s14 + $0x88] sm:$0xff]   ;;  %v8847_v24 = vld [vmem:[%s10385_s14 + $0x50] sm:$0xff]  }
 0x76b   :  { %6029 = vmatprep.subr.bf16.mxu0 %v8769_v48  ;;  %6115 = vmatprep.subr.bf16.mxu1 %v8772_v30  ;;  %v8849_v48 = vld [vmem:[%s10385_s14 + $0x10] sm:$0xff]  }
 0x76c   :  { %v8850_v30 = vld [vmem:[%s10385_s14 + $0x90] sm:$0xff]  }
 0x76e   :  { %6030 = vmatpush1.bf16.msra.mxu0 %v8767_v31  ;;  %6116 = vmatpush1.bf16.msra.mxu1 %v8770_v37  ;;  %v4334_v31 = vld [vmem:[%s10384_s13] sm:$0xf] }
 0x76f   :  { %6031 = vmatprep.subr.bf16.mxu0 %v8775_v32  ;;  %6117 = vmatprep.subr.bf16.mxu1 %v8778_v33  ;;  %v4339_v37 = vrot.slane %v4334_v31, %v9847_v49  ;;  %v4347_v32 = vrot.slane %v4334_v31, %v9850_v51  ;;  %v4343_v33 = vrot.slane %v4334_v31, %v9856_v53 }
 0x772   :  { %6032 = vmatpush1.bf16.msra.mxu0 %v8773_v34  ;;  %6118 = vmatpush1.bf16.msra.mxu1 %v8776_v16  ;;  %v4351_v34 = vrot.slane %v4334_v31, %v9859_v54 }
 0x773   :  { %6033 = vmatprep.subr.bf16.mxu0 %v8781_v35  ;;  %6119 = vmatprep.subr.bf16.mxu1 %v8784_v5 }
 0x776   :  { %6034 = vmatpush1.bf16.msra.mxu0 %v8779_v52  ;;  %6120 = vmatpush1.bf16.msra.mxu1 %v8782_v36 }
 0x777   :  { %6035 = vmatprep.subr.bf16.mxu0 %v8787_v39  ;;  %6121 = vmatprep.subr.bf16.mxu1 %v8790_v40 }
 0x77a   :  { %6036 = vmatpush1.bf16.msra.mxu0 %v8785_v29  ;;  %6122 = vmatpush1.bf16.msra.mxu1 %v8788_v41 }
 0x77b   :  { %6037 = vmatprep.subr.bf16.mxu0 %v8793_v2  ;;  %6123 = vmatprep.subr.bf16.mxu1 %v8796_v42 }
 0x77e   :  { %6038 = vmatpush1.bf16.msra.mxu0 %v8791_v43  ;;  %6124 = vmatpush1.bf16.msra.mxu1 %v8794_v44  ;;  %v8851_v44 = vld [vmem:[%s10385_s14 + $0x58] sm:$0xff]  }
 0x77f   :  { %6039 = vmatprep.subr.bf16.mxu0 %v8799_v25  ;;  %6125 = vmatprep.subr.bf16.mxu1 %v8802_v45  ;;  %v8852_v25 = vld [vmem:[%s10385_s14 + $0xd8] sm:$0xff]  }
 0x782   :  { %6040 = vmatpush1.bf16.msra.mxu0 %v8797_v46  ;;  %6126 = vmatpush1.bf16.msra.mxu1 %v8800_v26  ;;  %v8853_v26 = vld [vmem:[%s10385_s14 + $0x18] sm:$0xff]  }
 0x783   :  { %6041 = vmatprep.subr.bf16.mxu0 %v8805_v47  ;;  %6127 = vmatprep.subr.bf16.mxu1 %v8808_v27  ;;  %v8854_v47 = vld [vmem:[%s10385_s14 + $0x98] sm:$0xff]  }
 0x786   :  { %6042 = vmatpush1.bf16.msra.mxu0 %v8803_v28  ;;  %6128 = vmatpush1.bf16.msra.mxu1 %v8806_v56 }
 0x787   :  { %6043 = vmatprep.subr.bf16.mxu0 %v8811_v3  ;;  %6129 = vmatprep.subr.bf16.mxu1 %v8814_v57  ;;  %v8855_v57 = vld [vmem:[%s10385_s14 + $0x60] sm:$0xff]  }
 0x78a   :  { %6044 = vmatpush1.bf16.msra.mxu0 %v8809_v63  ;;  %6130 = vmatpush1.bf16.msra.mxu1 %v8812_v58  ;;  %v8856_v63 = vld [vmem:[%s10385_s14 + $0xe0] sm:$0xff]  }
 0x78b   :  { %6045 = vmatprep.subr.bf16.mxu0 %v8817_v59  ;;  %6131 = vmatprep.subr.bf16.mxu1 %v8820_v60  ;;  %v8857_v58 = vld [vmem:[%s10385_s14 + $0x20] sm:$0xff]   ;;  %v8859_v60 = vld [vmem:[%s10385_s14 + $0x68] sm:$0xff]  }
 0x78c   :  { %v8858_v59 = vld [vmem:[%s10385_s14 + $0xa0] sm:$0xff]  }
 0x78e   :  { %6046 = vmatpush1.bf16.msra.mxu0 %v8815_v55  ;;  %6132 = vmatpush1.bf16.msra.mxu1 %v8818_v61  ;;  %v8860_v55 = vld [vmem:[%s10385_s14 + $0xe8] sm:$0xff]  }
 0x78f   :  { %6047 = vmatprep.subr.bf16.mxu0 %v8823_v62  ;;  %6133 = vmatprep.subr.bf16.mxu1 %v8826_v0  ;;  %v8861_v61 = vld [vmem:[%s10385_s14 + $0x28] sm:$0xff]   ;;  %v8863_v0 = vld [vmem:[%s10385_s14 + $0x70] sm:$0xff]  }
 0x790   :  { %v8862_v62 = vld [vmem:[%s10385_s14 + $0xa8] sm:$0xff]  }
 0x792   :  { %6048 = vmatpush1.bf16.msra.mxu0 %v8821_v1  ;;  %6134 = vmatpush1.bf16.msra.mxu1 %v8824_v6  ;;  %v8864_v1 = vld [vmem:[%s10385_s14 + $0xf0] sm:$0xff]  }
 0x793   :  { %6049 = vmatprep.subr.bf16.mxu0 %v8829_v7  ;;  %6135 = vmatprep.subr.bf16.mxu1 %v8832_v10  ;;  %v8865_v6 = vld [vmem:[%s10385_s14 + $0x30] sm:$0xff]   ;;  %v8867_v10 = vld [vmem:[%s10385_s14 + $0x78] sm:$0xff]  }
 0x794   :  { %v8866_v7 = vld [vmem:[%s10385_s14 + $0xb0] sm:$0xff]  }
 0x796   :  { %6050 = vmatpush1.bf16.msra.mxu0 %v8827_v15  ;;  %6136 = vmatpush1.bf16.msra.mxu1 %v8830_v11  ;;  %v8868_v15 = vld [vmem:[%s10385_s14 + $0xf8] sm:$0xff]  }
 0x797   :  { %6051 = vmatprep.subr.bf16.mxu0 %v8835_v4  ;;  %6137 = vmatprep.subr.bf16.mxu1 %v8838_v12  ;;  %v8869_v11 = vld [vmem:[%s10385_s14 + $0x38] sm:$0xff]   ;;  %v5316_v12 = vld [vmem:[%s10382_s11] sm:$0xf]  ;;  %s7536_s11 = sld [smem:[#allocation11 + $0x2]] }
 0x798   :  { %v8870_v4 = vld [vmem:[%s10385_s14 + $0xb8] sm:$0xff]  }
 0x79a   :  { %6052 = vmatpush1.bf16.msra.mxu0 %v8833_v13  ;;  %6138 = vmatpush1.bf16.msra.mxu1 %v8836_v14 }
 0x79b   :  { %7669 = vmatprep.subr.bf16.mxu0 %v8839_v18  ;;  %7691 = vmatprep.subr.bf16.mxu1 %v8840_v19  ;;  %v5321_v18 = vrot.slane %v5316_v12, %v9847_v49  ;;  %v5329_v19 = vrot.slane %v5316_v12, %v9850_v51 }
 0x79d   :  { %6054 = vmatmul.mubr.bf16.vlgmr.msra.gmra.mrb[32].mxu0 %v9756_v17  ;;  %6140 = vmatmul.mubr.bf16.vlgmr.msra.gmra.mrb[32].mxu1 %v9756_v17  ;;  %v8848_v17 = vld [vmem:[%s10385_s14 + $0xd0] sm:$0xff]   ;;  %s9155_s14 = smov [#allocation12]  }
 0x79e   :  { %7670 = vmatpush3.bf16.msra.mxu0 %v8841_v20  ;;  %7692 = vmatpush3.bf16.msra.mxu1 %v8842_v50  ;;  %v5325_v20 = vrot.slane %v5316_v12, %v9856_v53  ;;  %v5333_v50 = vrot.slane %v5316_v12, %v9859_v54  ;;  %s6805_s2 = sshll.u32 %s9155_s14, 4  ;;  %s6806_s2 = int_to_ptr.vmem [resolvable:$true] %s6805_s2 }
 0x79f   :  { %7671 = vmatprep.subr.bf16.mxu0 %v8843_v21  ;;  %7693 = vmatprep.subr.bf16.mxu1 %v8844_v22  ;;  %s9089_s20 = scalar_lea.vmem %s6806_s2, 128  ;;  %p9094_p10 = scmp.lt.s32.totalorder %s6806_s2, %s6806_s2 }
 0x7a0   :  { %p9090_p9 = scmp.ne.s32.totalorder %s6806_s2, %s9089_s20  ;;  %p9095_p11 = scmp.lt.s32.totalorder %s9089_s20, %s9089_s20 }
 0x7a2   :  { %7672 = vmatpush3.bf16.msra.mxu0 %v8845_v9  ;;  %7694 = vmatpush3.bf16.msra.mxu1 %v8846_v23  ;;  %p9096_p12 = por %p9095_p11, %p9094_p10 }
 0x7a3   :  { %7673 = vmatprep.subr.bf16.mxu0 %v8847_v24  ;;  %7695 = vmatprep.subr.bf16.mxu1 %v8848_v17 }
 0x7a4   :  { %p9097_p13 = pnand %p9096_p12, %p9090_p9 }
 0x7a6   :  { %7674 = vmatpush3.bf16.msra.mxu0 %v8849_v48  ;;  %7696 = vmatpush3.bf16.msra.mxu1 %v8850_v30 }
 0x7a7   :  { %7675 = vmatprep.subr.bf16.mxu0 %v8851_v44  ;;  %7697 = vmatprep.subr.bf16.mxu1 %v8852_v25 }
 0x7aa   :  { %7676 = vmatpush3.bf16.msra.mxu0 %v8853_v26  ;;  %7698 = vmatpush3.bf16.msra.mxu1 %v8854_v47 }
 0x7ab   :  { %7677 = vmatprep.subr.bf16.mxu0 %v8855_v57  ;;  %7699 = vmatprep.subr.bf16.mxu1 %v8856_v63 }
 0x7ae   :  { %7678 = vmatpush3.bf16.msra.mxu0 %v8857_v58  ;;  %7700 = vmatpush3.bf16.msra.mxu1 %v8858_v59 }
 0x7af   :  { %7679 = vmatprep.subr.bf16.mxu0 %v8859_v60  ;;  %7701 = vmatprep.subr.bf16.mxu1 %v8860_v55 }
 0x7b2   :  { %7680 = vmatpush3.bf16.msra.mxu0 %v8861_v61  ;;  %7702 = vmatpush3.bf16.msra.mxu1 %v8862_v62 }
 0x7b3   :  { %7681 = vmatprep.subr.bf16.mxu0 %v8863_v0  ;;  %7703 = vmatprep.subr.bf16.mxu1 %v8864_v1 }
 0x7b6   :  { %7682 = vmatpush3.bf16.msra.mxu0 %v8865_v6  ;;  %7704 = vmatpush3.bf16.msra.mxu1 %v8866_v7 }
 0x7b7   :  { %7683 = vmatprep.subr.bf16.mxu0 %v8867_v10  ;;  %7705 = vmatprep.subr.bf16.mxu1 %v8868_v15  ;;  %v6585_v15 = vstv %s7536_s11 }
 0x7ba   :  { %7684 = vmatpush3.bf16.msra.mxu0 %v8869_v11  ;;  %7706 = vmatpush3.bf16.msra.mxu1 %v8870_v4 }
 0x7f0   :  { %v5099_v16 = vpop.f32.mrb[28].mxu0  ;;  %v5181_v35 = vpop.f32.mrb[28].mxu1 }
 0x7f1   :  { %v7741_v5 = vadd.f32 %v5099_v16, %v4339_v37  ;;  %v7743_v52 = vadd.f32 %v5181_v35, %v4347_v32  ;;  %v5101_v36 = vpop.f32.mrb[29].mxu0  ;;  %v5183_v39 = vpop.f32.mrb[29].mxu1 }
 0x7f2   :  { %v7742_v40 = vadd.f32 %v5101_v36, %v4343_v33  ;;  %v7744_v29 = vadd.f32 %v5183_v39, %v4351_v34  ;;  %v5103_v41 = vpop.f32.mrb[30].mxu0  ;;  %v5185_v2 = vpop.f32.mrb[30].mxu1 }
 0x7f3   :  { %v5104_v42 = vpop.f32.mrb[31].mxu0  ;;  %v5186_v43 = vpop.f32.mrb[31].mxu1 }
 0x7f4   :  { %v6154_v45 = vcombine.low %v7741_v5, %v7742_v40  ;;  %v6155_v46 = vcombine.low %v7743_v52, %v7744_v29 }
 0x7f6   :  { %v6162_v27 = vrot.slane %v6154_v45, %v10019_v38  ;;  %v6169_v28 = vrot.slane %v6155_v46, %v10019_v38 }
 0x7f8   :  { %v6170_v56 = vcombine.low %v6162_v27, %v6169_v28  ;;  %v6171_v3 = vcombine.high %v6162_v27, %v6169_v28 }
 0x7fa   :  { %v6178_v13 = vrot.slane %v6170_v56, %v10019_v38  ;;  %v6185_v14 = vrot.slane %v6171_v3, %v10019_v38 }
 0x7fc   :  { %v6189_v22 = vrot.slane %v6178_v13, %v9847_v49  ;;  %v6197_v23 = vrot.slane %v6178_v13, %v9850_v51  ;;  %v6193_v24 = vrot.slane %v6178_v13, %v9856_v53  ;;  %v6201_v17 = vrot.slane %v6178_v13, %v9859_v54 }
 0x7fd   :  { %v6205_v37 = vrot.slane %v6185_v14, %v9847_v49  ;;  %v6213_v32 = vrot.slane %v6185_v14, %v9850_v51  ;;  %v6209_v5 = vrot.slane %v6185_v14, %v9856_v53  ;;  %v6217_v52 = vrot.slane %v6185_v14, %v9859_v54 }
 0x870   :  { %v6055_v21 = vpop.f32.mrb[32].mxu0  ;;  %v6141_v9 = vpop.f32.mrb[32].mxu1 }
 0x871   :  { %v7745_v48 = vadd.f32 %v6055_v21, %v5321_v18  ;;  %v7749_v38 = vadd.f32 %v6141_v9, %v5329_v19  ;;  %v6057_v30 = vpop.f32.mrb[33].mxu0  ;;  %v6143_v31 = vpop.f32.mrb[33].mxu1 }
 0x872   :  { %v7746_v33 = vadd.f32 %v6057_v30, %v5325_v20  ;;  %v7750_v34 = vadd.f32 %v6143_v31, %v5333_v50  ;;  %v6059_v16 = vpop.f32.mrb[34].mxu0  ;;  %v6145_v35 = vpop.f32.mrb[34].mxu1 }
 0x873   :  { %v6226_v36 = vadd.f32 %v7745_v48, %v6189_v22  ;;  %v6228_v39 = vadd.f32 %v7749_v38, %v6197_v23  ;;  %v7747_v40 = vadd.f32 %v6059_v16, %v5321_v18  ;;  %v7751_v29 = vadd.f32 %v6145_v35, %v5329_v19  ;;  %v6061_v41 = vpop.f32.mrb[35].mxu0  ;;  %v6147_v2 = vpop.f32.mrb[35].mxu1 }
 0x874   :  { %v6227_v42 = vadd.f32 %v7746_v33, %v6193_v24  ;;  %v6229_v43 = vadd.f32 %v7750_v34, %v6201_v17  ;;  %v7748_v44 = vadd.f32 %v6061_v41, %v5325_v20  ;;  %v7752_v49 = vadd.f32 %v6147_v2, %v5333_v50 }
 0x875   :  { %8939 = vtanh.f32 %v6226_v36  ;;  %v6230_v51 = vadd.f32 %v7747_v40, %v6205_v37  ;;  %v6232_v25 = vadd.f32 %v7751_v29, %v6213_v32 }
 0x876   :  { %8941 = vtanh.f32 %v6228_v39  ;;  %v6231_v45 = vadd.f32 %v7748_v44, %v6209_v5  ;;  %v6233_v46 = vadd.f32 %v7752_v49, %v6217_v52 }
 0x877   :  { %8943 = vtanh.f32 %v6227_v42 }
 0x878   :  { %8945 = vtanh.f32 %v6229_v43 }
 0x879   :  { %8947 = vtanh.f32 %v6230_v51 }
 0x87a   :  { %8949 = vtanh.f32 %v6232_v25 }
 0x87b   :  { %8951 = vtanh.f32 %v6231_v45 }
 0x87c   :  { %8953 = vtanh.f32 %v6233_v46 }
 0x87f   :  { %v8940_v53 = vpop.eup %8939 }
 0x880   :  { %v8942_v54 = vpop.eup %8941 }
 0x881   :  { %v8944_v26 = vpop.eup %8943 }
 0x882   :  { %v8946_v47 = vpop.eup %8945 }
 0x883   :  { %v8948_v27 = vpop.eup %8947 }
 0x884   :  { %v8950_v28 = vpop.eup %8949  ;;  %v6243_v56 = vpack.c.bf16 %v8948_v27, %v8940_v53 }
 0x885   :  { %v8952_v3 = vpop.eup %8951  ;;  %v6245_v57 = vpack.c.bf16 %v8950_v28, %v8942_v54 }
 0x886   :  { %v8954_v63 = vpop.eup %8953  ;;  %v6244_v58 = vpack.c.bf16 %v8952_v3, %v8944_v26 }
 0x887   :  { %v6246_v59 = vpack.c.bf16 %v8954_v63, %v8946_v47 }
 0x888   :  { %6535 = vmatprep.mubr.bf16.mxu0 %v6244_v58 }
 0x889   :  { %6576 = vmatprep.mubr.bf16.mxu1 %v6246_v59  ;;  %6536 = vmatmul.mubr.bf16.vlgmr.msra.gmra.mrb[36].mxu0 %v6243_v56 }
 0x88a   :  { %6577 = vmatmul.mubr.bf16.vlgmr.msra.gmra.mrb[36].mxu1 %v6245_v57 }
 0x95c   :  { %v7685_v60 = vpop.f32.mrb[36].mxu0 }
 0x95d   :  { %v7707_v55 = vpop.f32.mrb[36].mxu1  ;;  %v7686_v61 = vpop.f32.mrb[37].mxu0 }
 0x95e   :  { %v7687_v62 = vadd.f32 %v7686_v61, %v7685_v60  ;;  %v7708_v0 = vpop.f32.mrb[37].mxu1  ;;  %v7688_v1 = vpop.f32.mrb[38].mxu0 }
 0x95f   :  { %v7709_v6 = vadd.f32 %v7708_v0, %v7707_v55  ;;  %v7710_v7 = vpop.f32.mrb[38].mxu1  ;;  %v7689_v10 = vpop.f32.mrb[39].mxu0 }
 0x960   :  { %v7690_v11 = vadd.f32 %v7689_v10, %v7688_v1  ;;  %v7711_v4 = vpop.f32.mrb[39].mxu1 }
 0x961   :  { %v6579_v12 = vadd.f32 %v7709_v6, %v7687_v62  ;;  %v7712_v13 = vadd.f32 %v7711_v4, %v7710_v7 }
 0x963   :  { %v6586_v14 = vadd.f32 %v6585_v15, %v6579_v12  ;;  %v6582_v18 = vadd.f32 %v7712_v13, %v7690_v11 }
 0x965   :  { %v6588_v19 = vsel %vm1478_vm0, %v6586_v14, -inf  ;;  %v6587_v20 = vadd.f32 %v6585_v15, %v6582_v18 }
 0x966   :  { %v6589_v50 = vrot.slane %v6588_v19, 4 }
 0x967   :  { %v6595_v21 = vsel %vm1478_vm0, %v6587_v20, -inf }
 0x968   :  { %v6590_v22 = vmax.f32 %v6588_v19, %v6589_v50  ;;  %v6596_v9 = vrot.slane %v6595_v21, 4 }
 0x96a   :  { %v6591_v23 = vrot.slane %v6590_v22, 2  ;;  %v6597_v24 = vmax.f32 %v6595_v21, %v6596_v9 }
 0x96c   :  { %v6592_v17 = vmax.f32 %v6590_v22, %v6591_v23  ;;  %v6598_v48 = vrot.slane %v6597_v24, 2 }
 0x96e   :  { %v6593_v38 = vrot.slane %v6592_v17, 1  ;;  %v6599_v30 = vmax.f32 %v6597_v24, %v6598_v48 }
 0x970   :  { %v6594_v31 = vmax.f32 %v6592_v17, %v6593_v38  ;;  %v6600_v37 = vrot.slane %v6599_v30, 1 }
 0x972   :  { %v6602_v32 = vsub.f32 %v6586_v14, %v6594_v31  ;;  %v6601_v33 = vmax.f32 %v6599_v30, %v6600_v37 }
 0x974   :  { %v6604_v34 = vmul.f32 1.442695, %v6602_v32  ;;  %v6603_v16 = vsub.f32 %v6587_v20, %v6601_v33 }
 0x976   :  { %8955 = vpow2.f32 %v6604_v34  ;;  %v6606_v35 = vmul.f32 1.442695, %v6603_v16 }
 0x978   :  { %8957 = vpow2.f32 %v6606_v35 }
 0x980   :  { %v8956_v5 = vpop.eup %8955 }
 0x981   :  { %v6608_v52 = vsel %vm1478_vm0, %v8956_v5, 0.0 }
 0x982   :  { %v8958_v36 = vpop.eup %8957  ;;  %v6609_v39 = vrot.slane %v6608_v52, 4 }
 0x983   :  { %v6615_v40 = vsel %vm1478_vm0, %v8958_v36, 0.0 }
 0x984   :  { %v6616_v29 = vrot.slane %v6615_v40, 4  ;;  %v6610_v41 = vadd.f32 %v6609_v39, %v6608_v52 }
 0x986   :  { %v6611_v2 = vrot.slane %v6610_v41, 2  ;;  %v6617_v42 = vadd.f32 %v6616_v29, %v6615_v40 }
 0x988   :  { %v6612_v43 = vadd.f32 %v6611_v2, %v6610_v41  ;;  %v6618_v44 = vrot.slane %v6617_v42, 2 }
 0x98a   :  { %v6613_v49 = vrot.slane %v6612_v43, 1  ;;  %v6619_v51 = vadd.f32 %v6618_v44, %v6617_v42 }
 0x98c   :  { %v6614_v25 = vadd.f32 %v6613_v49, %v6612_v43  ;;  %v6620_v45 = vrot.slane %v6619_v51, 1 }
 0x98e   :  { %8959 = vrcp.f32 %v6614_v25  ;;  %v6621_v46 = vadd.f32 %v6620_v45, %v6619_v51 }
 0x990   :  { %8961 = vrcp.f32 %v6621_v46 }
 0x998   :  { %v8960_v53 = vpop.eup %8959 }
 0x999   :  { %v6623_v54 = vmul.f32 %v8960_v53, %v8956_v5 }
 0x99a   :  { %v8962_v26 = vpop.eup %8961 }
 0x99b   :  { %6628 = vperm.xlu1 %7814, %v6623_v54   ;;  %v6625_v47 = vmul.f32 %v8962_v26, %v8958_v36 }
 0x99d   :  { %6633 = vperm.xlu0 %7813, %v6625_v47  }
 0x99e   :  { %9100 = shalt.err (!%p9097_p13)
}
 0x99f   :  { %s9101_s24 = scalar_lea.hbm %s10387_s16, 128 }
 0x9a0   :  { %p9102_p0 = scmp.ne.s32.totalorder %s10387_s16, %s9101_s24  ;;  %p9105_p1 = scmp.lt.u32.totalorder %s9101_s24, %s10387_s16 }
 0x9a2   :  { %p9107_p2 = pnand %p9105_p1, %p9102_p0 }
 0x9a4   :  { %9110 = shalt.err (!%p9107_p2)
}
 0x9a5   :  { %6808 = dma.vmem_to_hbm [thread:$0]  %s6806_s2, 128, %s10387_s16, [#allocation4]   ;;  %v8981_v28 = vld [vmem:[%s10393_s23] sm:$0xff]  ;;  %v8982_v3 = vld [vmem:[%s10393_s23 + $0x8] sm:$0xff]  ;;  %v8983_v63 = vld [vmem:[%s10393_s23 + $0x10] sm:$0xff] }
 0x9a6   :  { %v8984_v59 = vld [vmem:[%s10393_s23 + $0x18] sm:$0xff]  ;;  %v8985_v6 = vld [vmem:[%s10393_s23 + $0x20] sm:$0xff]  ;;  %v8986_v10 = vld [vmem:[%s10393_s23 + $0x28] sm:$0xff] }
 0x9a7   :  { %v8987_v11 = vld [vmem:[%s10393_s23 + $0x30] sm:$0xff]  ;;  %v8988_v12 = vld [vmem:[%s10393_s23 + $0x38] sm:$0xff]  ;;  %s9156_s23 = smov [#allocation13]  }
 0x9a8   :  { %s6815_s11 = sshll.u32 %s9156_s23, 4  ;;  %s6816_s11 = int_to_ptr.vmem [resolvable:$true] %s6815_s11 }
 0x9a9   :  { %s9111_s14 = scalar_lea.vmem %s6816_s11, 128  ;;  %p9116_p4 = scmp.lt.s32.totalorder %s6816_s11, %s6816_s11 }
 0x9aa   :  { %p9112_p3 = scmp.ne.s32.totalorder %s6816_s11, %s9111_s14  ;;  %p9117_p5 = scmp.lt.s32.totalorder %s9111_s14, %s9111_s14 }
 0x9ac   :  { %p9118_p6 = por %p9117_p5, %p9116_p4 }
 0x9ae   :  { %p9119_p7 = pnand %p9118_p6, %p9112_p3 }
 0xa1a   :  { %v6629_v27 = vpop.permute.xlu1 %6628 }
 0xa1b   :  { %v6636_v56 = vmul.f32 %v8981_v28, %v6629_v27  ;;  %v6637_v57 = vmul.f32 %v8982_v3, %v6629_v27  ;;  %v6638_v58 = vmul.f32 %v8983_v63, %v6629_v27  ;;  %v6639_v60 = vmul.f32 %v8984_v59, %v6629_v27 }
 0xa1c   :  { %v6634_v55 = vpop.permute.xlu0 %6633 }
 0xa1d   :  { %v6644_v61 = vrot.slane %v6636_v56, 4  ;;  %v6650_v62 = vrot.slane %v6637_v57, 4  ;;  %v6656_v0 = vrot.slane %v6638_v58, 4  ;;  %v6662_v1 = vrot.slane %v6639_v60, 4 }
 0xa1e   :  { %v6640_v7 = vmul.f32 %v8985_v6, %v6634_v55  ;;  %v6641_v15 = vmul.f32 %v8986_v10, %v6634_v55  ;;  %v6642_v4 = vmul.f32 %v8987_v11, %v6634_v55  ;;  %v6643_v13 = vmul.f32 %v8988_v12, %v6634_v55 }
 0xa1f   :  { %v6645_v14 = vadd.f32 %v6644_v61, %v6636_v56  ;;  %v6651_v18 = vadd.f32 %v6650_v62, %v6637_v57  ;;  %v6657_v19 = vadd.f32 %v6656_v0, %v6638_v58  ;;  %v6663_v20 = vadd.f32 %v6662_v1, %v6639_v60 }
 0xa20   :  { %v6668_v50 = vrot.slane %v6640_v7, 4  ;;  %v6674_v21 = vrot.slane %v6641_v15, 4  ;;  %v6680_v22 = vrot.slane %v6642_v4, 4  ;;  %v6686_v9 = vrot.slane %v6643_v13, 4 }
 0xa21   :  { %v6646_v23 = vrot.slane %v6645_v14, 2  ;;  %v6652_v24 = vrot.slane %v6651_v18, 2  ;;  %v6658_v17 = vrot.slane %v6657_v19, 2  ;;  %v6664_v48 = vrot.slane %v6663_v20, 2 }
 0xa22   :  { %v6669_v38 = vadd.f32 %v6668_v50, %v6640_v7  ;;  %v6675_v30 = vadd.f32 %v6674_v21, %v6641_v15  ;;  %v6681_v31 = vadd.f32 %v6680_v22, %v6642_v4  ;;  %v6687_v37 = vadd.f32 %v6686_v9, %v6643_v13 }
 0xa23   :  { %v6647_v32 = vadd.f32 %v6646_v23, %v6645_v14  ;;  %v6653_v33 = vadd.f32 %v6652_v24, %v6651_v18  ;;  %v6659_v34 = vadd.f32 %v6658_v17, %v6657_v19  ;;  %v6665_v16 = vadd.f32 %v6664_v48, %v6663_v20 }
 0xa24   :  { %v6670_v35 = vrot.slane %v6669_v38, 2  ;;  %v6676_v5 = vrot.slane %v6675_v30, 2  ;;  %v6682_v52 = vrot.slane %v6681_v31, 2  ;;  %v6688_v36 = vrot.slane %v6687_v37, 2 }
 0xa25   :  { %v6648_v39 = vrot.slane %v6647_v32, 1  ;;  %v6654_v40 = vrot.slane %v6653_v33, 1  ;;  %v6660_v29 = vrot.slane %v6659_v34, 1  ;;  %v6666_v41 = vrot.slane %v6665_v16, 1 }
 0xa26   :  { %v6671_v2 = vadd.f32 %v6670_v35, %v6669_v38  ;;  %v6677_v42 = vadd.f32 %v6676_v5, %v6675_v30  ;;  %v6683_v43 = vadd.f32 %v6682_v52, %v6681_v31  ;;  %v6689_v44 = vadd.f32 %v6688_v36, %v6687_v37 }
 0xa27   :  { %v6649_v49 = vadd.f32 %v6648_v39, %v6647_v32  ;;  %v6655_v51 = vadd.f32 %v6654_v40, %v6653_v33  ;;  %v6661_v25 = vadd.f32 %v6660_v29, %v6659_v34  ;;  %v6667_v45 = vadd.f32 %v6666_v41, %v6665_v16 }
 0xa28   :  { %v6672_v46 = vrot.slane %v6671_v2, 1  ;;  %v6678_v53 = vrot.slane %v6677_v42, 1  ;;  %v6684_v54 = vrot.slane %v6683_v43, 1  ;;  %v6690_v26 = vrot.slane %v6689_v44, 1 }
 0xa29   :  { %v6756_v47 = vcombine.low %v6649_v49, %v6655_v51  ;;  %v6757_v27 = vcombine.low %v6661_v25, %v6667_v45 }
 0xa2a   :  { %v6673_v28 = vadd.f32 %v6672_v46, %v6671_v2  ;;  %v6679_v56 = vadd.f32 %v6678_v53, %v6677_v42  ;;  %v6685_v3 = vadd.f32 %v6684_v54, %v6683_v43  ;;  %v6691_v57 = vadd.f32 %v6690_v26, %v6689_v44 }
 0xa2b   :  { %v6764_v59 = vrot.slane %v6756_v47, %v10161_v8  ;;  %v6771_v60 = vrot.slane %v6757_v27, %v10161_v8 }
 0xa2c   :  { %v6773_v63 = vcombine.low %v6673_v28, %v6679_v56  ;;  %v6774_v58 = vcombine.low %v6685_v3, %v6691_v57 }
 0xa2d   :  { %v6772_v0 = vcombine.low %v6764_v59, %v6771_v60 }
 0xa2e   :  { %v6781_v55 = vrot.slane %v6773_v63, %v10161_v8  ;;  %v6788_v61 = vrot.slane %v6774_v58, %v10161_v8 }
 0xa30   :  { %v6789_v62 = vcombine.low %v6781_v55, %v6788_v61 }
 0xa32   :  { %v6792_v1 = vrot.slane %v6789_v62, 7 }
 0xa34   :  { %v6793_v6 = vsel %vm1757_vm1, %v6792_v1, %v6772_v0 }
 0xa35   :  { %v6794_v7 = vsel %vm6740_vm2, %v6792_v1, %v6793_v6 }
 0xa36   :  { %v6795_v10 = vsel %vm6742_vm3, %v6792_v1, %v6794_v7 }
 0xa37   :  { %v6796_v15 = vsel %vm6744_vm4, %v6792_v1, %v6795_v10 }
 0xa38   :  { %6798 = vst [vmem:[#allocation13] sm:$0xff] %v6796_v15 }
 0xa39   :  { %9122 = shalt.err (!%p9119_p7)
}
 0xa3a   :  { %s9123_s3 = scalar_lea.hbm %s10388_s17, 128 }
 0xa3b   :  { %p9124_p8 = scmp.ne.s32.totalorder %s10388_s17, %s9123_s3  ;;  %p9127_p9 = scmp.lt.u32.totalorder %s9123_s3, %s10388_s17 }
 0xa3d   :  { %p9129_p10 = pnand %p9127_p9, %p9124_p8 }
 0xa3f   :  { %9132 = shalt.err (!%p9129_p10)
}
 0xa40   :  { %6818 = dma.vmem_to_hbm [thread:$0]  %s6816_s11, 128, %s10388_s17, [#allocation14]  }
 0xa41   :  { %9141 = dma.done.wait [#allocation4], 128  }
 0xa42   :  { %9142 = vsyncadd [#allocation4], 4294967168 }
 0xa43   :  { %9143 = dma.done.wait [#allocation14], 128  }
 0xa44   :  { %9144 = vsyncadd [#allocation14], 4294967168 }
 0xa45   :  { %6825 = vsyncpa [#allocation3], 1 }
 0xa46   :  { %6826 = vsyncpa [#allocation7], 1 }
 0xa47   :  { %6827 = vsyncpa [#allocation10], 1 }
 0xa48   :  { %6828 = vsyncpa [#allocation4], 1 }
 0xa49   :  { %6829 = vsyncpa [#allocation14], 1 }
 0xa4a   :  { %6830 = vsyncpa [#allocation5], 1 }

</bundles_post_ra>
